<compile_context>
chip_gen: v6e
topology: v6e:2x2x1
jax: 0.10.0
libtpu: 0.0.40
codegen_flags: <defaults>
</compile_context>

<pallas_src>
import functools
import math

import jax
import jax.numpy as jnp
from jax.experimental import pallas as pl
from jax.experimental.pallas import tpu as pltpu


def encdec_kernel(x_ref, ewx_ref, ewh_ref, eb_ref, dwx_ref, dwh_ref, db_ref,
                  wout_ref, bout_ref, wfb_ref, bfb_ref, out_ref, *,
                  num_layers, seq_len, target_len, hidden_size, feat):
    L, T, H, D = num_layers, seq_len, hidden_size, feat

    # Constant (1, 4H) lane masks for the single-sigmoid gate activation:
    #   i,f,o lanes: sigmoid(g);   g lanes: tanh(g) = 2*sigmoid(2*g) - 1
    lane = jax.lax.broadcasted_iota(jnp.int32, (1, 4 * H), 1)
    is_g = (lane >= 2 * H) & (lane < 3 * H)
    g_scale = jnp.where(is_g, 2.0, 1.0).astype(jnp.float32)   # (1, 4H)
    g_off = jnp.where(is_g, 1.0, 0.0).astype(jnp.float32)     # (1, 4H)

    def cell(x_in, w_x, hh, w_h, cc, b):
        # x_in: (BB, Din), w_x: (Din, 4H), hh/cc: (BB, H), w_h: (H, 4H), b: (1, 4H)
        gates = (jnp.dot(x_in, w_x, preferred_element_type=jnp.float32)
                 + jnp.dot(hh, w_h, preferred_element_type=jnp.float32)
                 + b)                                          # implicit (1,4H) bias broadcast
        s = jax.nn.sigmoid(gates * g_scale)                    # ONE EUP pass over (BB, 4H)
        act = s * g_scale - g_off                              # VPU fixup: g lanes -> tanh
        i = act[:, 0 * H:1 * H]
        f = act[:, 1 * H:2 * H]
        g = act[:, 2 * H:3 * H]
        o = act[:, 3 * H:4 * H]
        c_new = f * cc + i * g
        h_new = o * jnp.tanh(c_new)
        return h_new, c_new

    BB = x_ref.shape[0]
    # (h0, c0) = zeros, carried in registers (no scratch round trips).
    h = [jnp.zeros((BB, H), jnp.float32) for _ in range(L)]
    c = [jnp.zeros((BB, H), jnp.float32) for _ in range(L)]

    # ---------------- encoder: multi-layer LSTM over the sequence ----------------
    # Hoist encoder weight/bias loads out of the time loop; layers >= 1 only use the first H
    # input-weight rows (their LSTM input is h of width H), so slice once here.
    ew_x_full = [ewx_ref[l] for l in range(L)]                 # (D, 4H) each
    ew_x = [ew_x_full[0]] + [ew_x_full[l][:H, :] for l in range(1, L)]
    ew_h = [ewh_ref[l] for l in range(L)]                      # (H, 4H)
    eb = [eb_ref[l] for l in range(L)]                         # (1, 4H)

    for t in range(T):
        layer_in = x_ref[:, t * D:(t + 1) * D]                 # lane-dense static slice, (BB, D)
        for l in range(L):
            h[l], c[l] = cell(layer_in, ew_x[l], h[l], ew_h[l], c[l], eb[l])
            layer_in = h[l]                                    # width H -> next layer's W_x[:H]

    # ---------------- decoder: recursive single-step LSTM + fused linear head ----------------
    # Decoder weights hoisted here (after the encoder loop) to bound live ranges.
    dw_x0 = dwx_ref[0]                                         # (D, 4H), only for step 0
    dw_x_up = [dwx_ref[l][:H, :] for l in range(1, L)]         # layers >= 1
    dw_h = [dwh_ref[l] for l in range(L)]
    db = [db_ref[l] for l in range(L)]
    wfb = wfb_ref[...]                                         # (H, 4H) = wout @ dwx[0]
    db0_fb = db[0] + bfb_ref[...]                              # (1, 4H) = db[0] + bout @ dwx[0]
    wout = wout_ref[...]                                       # (H, D)
    bout = bout_ref[...]                                       # (1, D)

    dec_x = x_ref[:, (T - 1) * D:T * D]                        # decoder_input = input[:, -1, :]
    ys = []
    h_top = None
    for step in range(target_len):
        for l in range(L):
            if l == 0:
                if step == 0:
                    h[0], c[0] = cell(dec_x, dw_x0, h[0], dw_h[0], c[0], db[0])
                else:
                    # head-into-feedback fusion: y_prev @ dwx[0] == h_top_prev @ wfb + bfb
                    h[0], c[0] = cell(h_top, wfb, h[0], dw_h[0], c[0], db0_fb)
            else:
                h[l], c[l] = cell(h[l - 1], dw_x_up[l - 1], h[l], dw_h[l], c[l], db[l])
        h_top = h[L - 1]
        # Output projection — off the serial recurrence chain (next step consumes h_top via wfb).
        y = jnp.dot(h_top, wout, preferred_element_type=jnp.float32) + bout   # (BB, D)
        ys.append(y)

    # Single lane-dense store of all decoder steps: (BB, target_len * D) (= 128 lanes here).
    out_ref[...] = jnp.concatenate(ys, axis=1)


def _pick_batch_tile(B):
    """Batch tile BB: small for tiny B, big enough to fill MXU rows otherwise, and split into
    >= 2 grid steps when B allows it so both v7x TensorCores get work."""
    B_pad8 = max(8, ((B + 7) // 8) * 8)
    if B_pad8 <= 16:
        BB = 8
    elif B_pad8 <= 256:
        BB = max(8, ((B_pad8 // 2 + 7) // 8) * 8)   # two grid steps
    else:
        BB = 128
    B_pad = ((B + BB - 1) // BB) * BB
    return BB, B_pad


def base_encoder_decoder_forward(x, params, *, target_len, hidden_size, num_layers,
                                 output_size):
    """x: (B, T, input_size) float32. Returns (B, target_len * output_size)."""
    D = params["D"]
    H = hidden_size
    B, T, in_sz = x.shape

    BB, B_pad = _pick_batch_tile(B)
    # Pad batch (garbage rows are independent and sliced off) and feature lanes to D, then
    # flatten time into lanes so every per-timestep read is a lane-dense static slice.
    x_pad = jnp.zeros((B_pad, T, D), jnp.float32).at[:B, :, :in_sz].set(x)
    x_flat = x_pad.reshape(B_pad, T * D)

    kernel = functools.partial(encdec_kernel,
                               num_layers=num_layers, seq_len=T,
                               target_len=target_len, hidden_size=H, feat=D)

    # Only raise the scoped VMEM limit when the estimated footprint actually needs it.
    weight_bytes = 4 * (2 * num_layers * (D + H + 1) * 4 * H + H * D + D + H * 4 * H + 4 * H)
    io_bytes = 4 * (BB * T * D + BB * target_len * D)
    est = 2 * (weight_bytes + io_bytes)           # everything double-buffered by default
    cp_kwargs = dict(dimension_semantics=("parallel",))
    if est > 24 * 1024 * 1024:
        cp_kwargs["vmem_limit_bytes"] = int(min(est * 5 // 4, 100 * 1024 * 1024))

    out = pl.pallas_call(
        kernel,
        out_shape=jax.ShapeDtypeStruct((B_pad, target_len * D), jnp.float32),
        grid=(B_pad // BB,),
        in_specs=[
            pl.BlockSpec((BB, T * D), lambda b: (b, 0)),                        # x (flat, batch-tiled)
            pl.BlockSpec((num_layers, D, 4 * H), lambda b: (0, 0, 0)),          # encoder W_x
            pl.BlockSpec((num_layers, H, 4 * H), lambda b: (0, 0, 0)),          # encoder W_h
            pl.BlockSpec((num_layers, 1, 4 * H), lambda b: (0, 0, 0)),          # encoder bias
            pl.BlockSpec((num_layers, D, 4 * H), lambda b: (0, 0, 0)),          # decoder W_x
            pl.BlockSpec((num_layers, H, 4 * H), lambda b: (0, 0, 0)),          # decoder W_h
            pl.BlockSpec((num_layers, 1, 4 * H), lambda b: (0, 0, 0)),          # decoder bias
            pl.BlockSpec((H, D), lambda b: (0, 0)),                             # head weight
            pl.BlockSpec((1, D), lambda b: (0, 0)),                             # head bias
            pl.BlockSpec((H, 4 * H), lambda b: (0, 0)),                         # fused feedback W
            pl.BlockSpec((1, 4 * H), lambda b: (0, 0)),                         # fused feedback b
        ],
        out_specs=pl.BlockSpec((BB, target_len * D), lambda b: (b, 0)),
        compiler_params=pltpu.CompilerParams(**cp_kwargs),
    )(x_flat, params["ewx"], params["ewh"], params["eb"],
      params["dwx"], params["dwh"], params["db"],
      params["wout"], params["bout"], params["wfb"], params["bfb"])

    # torch.cat of (B, output_size) pieces along dim 1 == reshape of (B, target_len, output_size)
    out = out.reshape(B_pad, target_len, D)[:B, :, :output_size]
    return out.reshape(B, target_len * output_size)


def init_params(key, input_size, output_size, hidden_size, num_layers):
    """Deterministic init mirroring PyTorch's U(-1/sqrt(H), 1/sqrt(H)) for LSTM/Linear.

    Weights are stored split and transposed: per layer W_x (D, 4H) and W_h (H, 4H), zero-padded
    so padded feature lanes contribute exactly zero.  The decoder feedback fusion
    (wfb = wout @ dwx[0], bfb = bout @ dwx[0]) is precomputed here, off the kernel's chain.
    """
    H = hidden_size
    D = max(input_size, output_size, hidden_size)
    k = 1.0 / math.sqrt(H)
    keys = iter(jax.random.split(key, 8 * num_layers + 4))

    def u(shape):
        return jax.random.uniform(next(keys), shape, jnp.float32, -k, k)

    def lstm_stack(first_in):
        w_x = jnp.zeros((num_layers, D, 4 * H), jnp.float32)
        w_h = jnp.zeros((num_layers, H, 4 * H), jnp.float32)
        b = jnp.zeros((num_layers, 1, 4 * H), jnp.float32)
        for l in range(num_layers):
            in_l = first_in if l == 0 else H
            w_ih = u((4 * H, in_l))          # torch layout (4H, in)
            w_hh = u((4 * H, H))
            b_ih = u((4 * H,))
            b_hh = u((4 * H,))
            w_x = w_x.at[l, :in_l, :].set(w_ih.T)
            w_h = w_h.at[l].set(w_hh.T)
            b = b.at[l, 0, :].set(b_ih + b_hh)
        return w_x, w_h, b

    ewx, ewh, eb = lstm_stack(input_size)    # encoder LSTM: input_size -> H
    dwx, dwh, db = lstm_stack(output_size)   # decoder LSTM: output_size -> H

    w_lin = u((output_size, H))              # torch Linear(H, output_size)
    b_lin = u((output_size,))
    wout = jnp.zeros((H, D), jnp.float32).at[:, :output_size].set(w_lin.T)
    bout = jnp.zeros((1, D), jnp.float32).at[0, :output_size].set(b_lin)

    wfb = wout @ dwx[0]                      # (H, 4H)
    bfb = bout @ dwx[0]                      # (1, 4H)

    return dict(ewx=ewx, ewh=ewh, eb=eb, dwx=dwx, dwh=dwh, db=db,
                wout=wout, bout=bout, wfb=wfb, bfb=bfb, D=D)


def reference_forward(x, params, *, target_len, hidden_size, num_layers, output_size):
    """Pure-JAX mirror of the PyTorch forward (un-fused head, standard sigmoid/tanh)."""
    D = params["D"]
    H = hidden_size
    ewx, ewh, eb = params["ewx"], params["ewh"], params["eb"]
    dwx, dwh, db = params["dwx"], params["dwh"], params["db"]
    wout, bout = params["wout"], params["bout"]
    B, T, in_sz = x.shape
    x_pad = jnp.zeros((B, T, D), jnp.float32).at[:, :, :in_sz].set(x)
    h = [jnp.zeros((B, H), jnp.float32) for _ in range(num_layers)]
    c = [jnp.zeros((B, H), jnp.float32) for _ in range(num_layers)]

    def cell(xin, hh, cc, wx, wh, b):
        g = xin @ wx[:xin.shape[1], :] + hh @ wh + b
        i = jax.nn.sigmoid(g[:, :H])
        f = jax.nn.sigmoid(g[:, H:2 * H])
        gg = jnp.tanh(g[:, 2 * H:3 * H])
        o = jax.nn.sigmoid(g[:, 3 * H:])
        cn = f * cc + i * gg
        return o * jnp.tanh(cn), cn

    for t in range(T):
        layer_in = x_pad[:, t, :]
        for l in range(num_layers):
            h[l], c[l] = cell(layer_in, h[l], c[l], ewx[l], ewh[l], eb[l])
            layer_in = h[l]

    dec_in = x_pad[:, -1, :]
    outs = []
    for _ in range(target_len):
        layer_in = dec_in
        for l in range(num_layers):
            h[l], c[l] = cell(layer_in, h[l], c[l], dwx[l], dwh[l], db[l])
            layer_in = h[l]
        y = h[-1] @ wout + bout
        outs.append(y[:, :output_size])
        dec_in = y
    return jnp.concatenate(outs, axis=1)


if __name__ == "__main__":
    # small shapes consistent with the module's forward
    batch_size = 2
    seq_len = 8
    input_size = 3
    output_size = 3          # decoder feedback requires output_size == input_size (as in torch)
    hidden_size = 32
    num_layers = 2
    target_len = 4

    key = jax.random.PRNGKey(0)
    kx, kp = jax.random.split(key)
    x = jax.random.normal(kx, (batch_size, seq_len, input_size), jnp.float32)
    params = init_params(kp, input_size, output_size, hidden_size, num_layers)

    out = base_encoder_decoder_forward(
        x, params, target_len=target_len, hidden_size=hidden_size,
        num_layers=num_layers, output_size=output_size)
    out = jax.block_until_ready(out)

    ref = reference_forward(
        x, params, target_len=target_len, hidden_size=hidden_size,
        num_layers=num_layers, output_size=output_size)

    assert out.shape == (batch_size, target_len * output_size), out.shape
    assert jnp.allclose(out, ref, atol=1e-4, rtol=1e-4), \
        float(jnp.max(jnp.abs(out - ref)))

    print("KERNEL_OK")
</pallas_src>

<mosaic_0001>
module attributes {stable_mosaic.version = 11 : i64} {
  func.func @encdec_kernel(%arg0: i32, %arg1: memref<8x256xf32, #tpu.memory_space<vmem>>, %arg2: memref<2x32x128xf32, #tpu.memory_space<vmem>>, %arg3: memref<2x32x128xf32, #tpu.memory_space<vmem>>, %arg4: memref<2x1x128xf32, #tpu.memory_space<vmem>>, %arg5: memref<2x32x128xf32, #tpu.memory_space<vmem>>, %arg6: memref<2x32x128xf32, #tpu.memory_space<vmem>>, %arg7: memref<2x1x128xf32, #tpu.memory_space<vmem>>, %arg8: memref<32x32xf32, #tpu.memory_space<vmem>>, %arg9: memref<1x32xf32, #tpu.memory_space<vmem>>, %arg10: memref<32x128xf32, #tpu.memory_space<vmem>>, %arg11: memref<1x128xf32, #tpu.memory_space<vmem>>, %arg12: memref<8x128xf32, #tpu.memory_space<vmem>>) attributes {dimension_semantics = [#tpu.dimension_semantics<parallel>], iteration_bounds = array<i64: 1>, scalar_prefetch = 0 : i64, scratch_operands = 0 : i64, tpu.core_type = #tpu.core_type<tc>, window_params = [{transform_indices = @transform_0, window_bounds = array<i64: 8, 256>}, {pipeline_mode = #tpu.pipeline_mode<synchronous>, transform_indices = @transform_1, window_bounds = array<i64: 2, 32, 128>}, {pipeline_mode = #tpu.pipeline_mode<synchronous>, transform_indices = @transform_2, window_bounds = array<i64: 2, 32, 128>}, {pipeline_mode = #tpu.pipeline_mode<synchronous>, transform_indices = @transform_3, window_bounds = array<i64: 2, 1, 128>}, {pipeline_mode = #tpu.pipeline_mode<synchronous>, transform_indices = @transform_4, window_bounds = array<i64: 2, 32, 128>}, {pipeline_mode = #tpu.pipeline_mode<synchronous>, transform_indices = @transform_5, window_bounds = array<i64: 2, 32, 128>}, {pipeline_mode = #tpu.pipeline_mode<synchronous>, transform_indices = @transform_6, window_bounds = array<i64: 2, 1, 128>}, {pipeline_mode = #tpu.pipeline_mode<synchronous>, transform_indices = @transform_7, window_bounds = array<i64: 32, 32>}, {pipeline_mode = #tpu.pipeline_mode<synchronous>, transform_indices = @transform_8, window_bounds = array<i64: 1, 32>}, {pipeline_mode = #tpu.pipeline_mode<synchronous>, transform_indices = @transform_9, window_bounds = array<i64: 32, 128>}, {pipeline_mode = #tpu.pipeline_mode<synchronous>, transform_indices = @transform_10, window_bounds = array<i64: 1, 128>}, {transform_indices = @transform_11, window_bounds = array<i64: 8, 128>}]} {
    %0 = tpu.iota {dimensions = array<i32: 1>} : vector<1x128xi32>
    %c64_i32 = arith.constant 64 : i32
    %1 = vector.broadcast %c64_i32 : i32 to vector<1x128xi32>
    %2 = arith.cmpi sge, %0, %1 : vector<1x128xi32>
    %c96_i32 = arith.constant 96 : i32
    %3 = vector.broadcast %c96_i32 : i32 to vector<1x128xi32>
    %4 = arith.cmpi slt, %0, %3 : vector<1x128xi32>
    %5 = arith.andi %2, %4 : vector<1x128xi1>
    %cst = arith.constant 2.000000e+00 : f32
    %cst_0 = arith.constant 1.000000e+00 : f32
    %6 = vector.broadcast %cst : f32 to vector<1x128xf32>
    %7 = vector.broadcast %cst_0 : f32 to vector<1x128xf32>
    %8 = arith.select %5, %6, %7 : vector<1x128xi1>, vector<1x128xf32>
    %cst_1 = arith.constant 1.000000e+00 : f32
    %cst_2 = arith.constant 0.000000e+00 : f32
    %9 = vector.broadcast %cst_1 : f32 to vector<1x128xf32>
    %10 = vector.broadcast %cst_2 : f32 to vector<1x128xf32>
    %11 = arith.select %5, %9, %10 : vector<1x128xi1>, vector<1x128xf32>
    %cst_3 = arith.constant 0.000000e+00 : f32
    %12 = vector.broadcast %cst_3 : f32 to vector<8x32xf32>
    %cst_4 = arith.constant 0.000000e+00 : f32
    %13 = vector.broadcast %cst_4 : f32 to vector<8x32xf32>
    %cst_5 = arith.constant 0.000000e+00 : f32
    %14 = vector.broadcast %cst_5 : f32 to vector<8x32xf32>
    %cst_6 = arith.constant 0.000000e+00 : f32
    %15 = vector.broadcast %cst_6 : f32 to vector<8x32xf32>
    %c0 = arith.constant 0 : index
    %c0_7 = arith.constant 0 : index
    %c0_8 = arith.constant 0 : index
    %16 = vector.load %arg2[%c0, %c0_7, %c0_8] : memref<2x32x128xf32, #tpu.memory_space<vmem>>, vector<1x32x128xf32>
    %17 = vector.shape_cast %16 : vector<1x32x128xf32> to vector<32x128xf32>
    %c1 = arith.constant 1 : index
    %c0_9 = arith.constant 0 : index
    %c0_10 = arith.constant 0 : index
    %18 = vector.load %arg2[%c1, %c0_9, %c0_10] : memref<2x32x128xf32, #tpu.memory_space<vmem>>, vector<1x32x128xf32>
    %19 = vector.shape_cast %18 : vector<1x32x128xf32> to vector<32x128xf32>
    %c0_11 = arith.constant 0 : index
    %c0_12 = arith.constant 0 : index
    %c0_13 = arith.constant 0 : index
    %20 = vector.load %arg3[%c0_11, %c0_12, %c0_13] : memref<2x32x128xf32, #tpu.memory_space<vmem>>, vector<1x32x128xf32>
    %21 = vector.shape_cast %20 : vector<1x32x128xf32> to vector<32x128xf32>
    %c1_14 = arith.constant 1 : index
    %c0_15 = arith.constant 0 : index
    %c0_16 = arith.constant 0 : index
    %22 = vector.load %arg3[%c1_14, %c0_15, %c0_16] : memref<2x32x128xf32, #tpu.memory_space<vmem>>, vector<1x32x128xf32>
    %23 = vector.shape_cast %22 : vector<1x32x128xf32> to vector<32x128xf32>
    %c0_17 = arith.constant 0 : index
    %c0_18 = arith.constant 0 : index
    %c0_19 = arith.constant 0 : index
    %24 = vector.load %arg4[%c0_17, %c0_18, %c0_19] : memref<2x1x128xf32, #tpu.memory_space<vmem>>, vector<1x1x128xf32>
    %25 = vector.shape_cast %24 : vector<1x1x128xf32> to vector<1x128xf32>
    %c1_20 = arith.constant 1 : index
    %c0_21 = arith.constant 0 : index
    %c0_22 = arith.constant 0 : index
    %26 = vector.load %arg4[%c1_20, %c0_21, %c0_22] : memref<2x1x128xf32, #tpu.memory_space<vmem>>, vector<1x1x128xf32>
    %27 = vector.shape_cast %26 : vector<1x1x128xf32> to vector<1x128xf32>
    %c0_23 = arith.constant 0 : index
    %c0_24 = arith.constant 0 : index
    %28 = vector.load %arg1[%c0_23, %c0_24] : memref<8x256xf32, #tpu.memory_space<vmem>>, vector<8x32xf32>
    %cst_25 = arith.constant dense<0.000000e+00> : vector<8x128xf32>
    %29 = tpu.matmul %28, %17, %cst_25 {dimension_numbers = #tpu.dot_dimension_numbers<[1], [0], [0], [1], [0, 0, 1, 1], [], []>} : vector<8x32xf32>, vector<32x128xf32>, vector<8x128xf32> -> vector<8x128xf32>
    %cst_26 = arith.constant dense<0.000000e+00> : vector<8x128xf32>
    %30 = tpu.matmul %12, %21, %cst_26 {dimension_numbers = #tpu.dot_dimension_numbers<[1], [0], [0], [1], [0, 0, 1, 1], [], []>} : vector<8x32xf32>, vector<32x128xf32>, vector<8x128xf32> -> vector<8x128xf32>
    %31 = arith.addf %29, %30 : vector<8x128xf32>
    %32 = vector.broadcast %25 : vector<1x128xf32> to vector<8x128xf32>
    %33 = arith.addf %31, %32 : vector<8x128xf32>
    %34 = vector.broadcast %8 : vector<1x128xf32> to vector<8x128xf32>
    %35 = arith.mulf %33, %34 : vector<8x128xf32>
    %36 = arith.negf %35 : vector<8x128xf32>
    %37 = math.exp %36 : vector<8x128xf32>
    %cst_27 = arith.constant 1.000000e+00 : f32
    %38 = vector.broadcast %cst_27 : f32 to vector<8x128xf32>
    %39 = arith.addf %38, %37 : vector<8x128xf32>
    %40 = arith.divf %38, %39 : vector<8x128xf32>
    %41 = vector.broadcast %8 : vector<1x128xf32> to vector<8x128xf32>
    %42 = arith.mulf %40, %41 : vector<8x128xf32>
    %43 = vector.broadcast %11 : vector<1x128xf32> to vector<8x128xf32>
    %44 = arith.subf %42, %43 : vector<8x128xf32>
    %45 = vector.extract_strided_slice %44 {offsets = [0, 0], sizes = [8, 32], strides = [1, 1]} : vector<8x128xf32> to vector<8x32xf32>
    %46 = vector.extract_strided_slice %44 {offsets = [0, 32], sizes = [8, 32], strides = [1, 1]} : vector<8x128xf32> to vector<8x32xf32>
    %47 = vector.extract_strided_slice %44 {offsets = [0, 64], sizes = [8, 32], strides = [1, 1]} : vector<8x128xf32> to vector<8x32xf32>
    %48 = vector.extract_strided_slice %44 {offsets = [0, 96], sizes = [8, 32], strides = [1, 1]} : vector<8x128xf32> to vector<8x32xf32>
    %49 = arith.mulf %46, %14 : vector<8x32xf32>
    %50 = arith.mulf %45, %47 : vector<8x32xf32>
    %51 = arith.addf %49, %50 : vector<8x32xf32>
    %52 = math.tanh %51 : vector<8x32xf32>
    %53 = arith.mulf %48, %52 : vector<8x32xf32>
    %cst_28 = arith.constant dense<0.000000e+00> : vector<8x128xf32>
    %54 = tpu.matmul %53, %19, %cst_28 {dimension_numbers = #tpu.dot_dimension_numbers<[1], [0], [0], [1], [0, 0, 1, 1], [], []>} : vector<8x32xf32>, vector<32x128xf32>, vector<8x128xf32> -> vector<8x128xf32>
    %cst_29 = arith.constant dense<0.000000e+00> : vector<8x128xf32>
    %55 = tpu.matmul %13, %23, %cst_29 {dimension_numbers = #tpu.dot_dimension_numbers<[1], [0], [0], [1], [0, 0, 1, 1], [], []>} : vector<8x32xf32>, vector<32x128xf32>, vector<8x128xf32> -> vector<8x128xf32>
    %56 = arith.addf %54, %55 : vector<8x128xf32>
    %57 = vector.broadcast %27 : vector<1x128xf32> to vector<8x128xf32>
    %58 = arith.addf %56, %57 : vector<8x128xf32>
    %59 = vector.broadcast %8 : vector<1x128xf32> to vector<8x128xf32>
    %60 = arith.mulf %58, %59 : vector<8x128xf32>
    %61 = arith.negf %60 : vector<8x128xf32>
    %62 = math.exp %61 : vector<8x128xf32>
    %cst_30 = arith.constant 1.000000e+00 : f32
    %63 = vector.broadcast %cst_30 : f32 to vector<8x128xf32>
    %64 = arith.addf %63, %62 : vector<8x128xf32>
    %65 = arith.divf %63, %64 : vector<8x128xf32>
    %66 = vector.broadcast %8 : vector<1x128xf32> to vector<8x128xf32>
    %67 = arith.mulf %65, %66 : vector<8x128xf32>
    %68 = vector.broadcast %11 : vector<1x128xf32> to vector<8x128xf32>
    %69 = arith.subf %67, %68 : vector<8x128xf32>
    %70 = vector.extract_strided_slice %69 {offsets = [0, 0], sizes = [8, 32], strides = [1, 1]} : vector<8x128xf32> to vector<8x32xf32>
    %71 = vector.extract_strided_slice %69 {offsets = [0, 32], sizes = [8, 32], strides = [1, 1]} : vector<8x128xf32> to vector<8x32xf32>
    %72 = vector.extract_strided_slice %69 {offsets = [0, 64], sizes = [8, 32], strides = [1, 1]} : vector<8x128xf32> to vector<8x32xf32>
    %73 = vector.extract_strided_slice %69 {offsets = [0, 96], sizes = [8, 32], strides = [1, 1]} : vector<8x128xf32> to vector<8x32xf32>
    %74 = arith.mulf %71, %15 : vector<8x32xf32>
    %75 = arith.mulf %70, %72 : vector<8x32xf32>
    %76 = arith.addf %74, %75 : vector<8x32xf32>
    %77 = math.tanh %76 : vector<8x32xf32>
    %78 = arith.mulf %73, %77 : vector<8x32xf32>
    %c0_31 = arith.constant 0 : index
    %c32 = arith.constant 32 : index
    %79 = vector.load %arg1[%c0_31, %c32] : memref<8x256xf32, #tpu.memory_space<vmem>>, vector<8x32xf32>
    %cst_32 = arith.constant dense<0.000000e+00> : vector<8x128xf32>
    %80 = tpu.matmul %79, %17, %cst_32 {dimension_numbers = #tpu.dot_dimension_numbers<[1], [0], [0], [1], [0, 0, 1, 1], [], []>} : vector<8x32xf32>, vector<32x128xf32>, vector<8x128xf32> -> vector<8x128xf32>
    %cst_33 = arith.constant dense<0.000000e+00> : vector<8x128xf32>
    %81 = tpu.matmul %53, %21, %cst_33 {dimension_numbers = #tpu.dot_dimension_numbers<[1], [0], [0], [1], [0, 0, 1, 1], [], []>} : vector<8x32xf32>, vector<32x128xf32>, vector<8x128xf32> -> vector<8x128xf32>
    %82 = arith.addf %80, %81 : vector<8x128xf32>
    %83 = vector.broadcast %25 : vector<1x128xf32> to vector<8x128xf32>
    %84 = arith.addf %82, %83 : vector<8x128xf32>
    %85 = vector.broadcast %8 : vector<1x128xf32> to vector<8x128xf32>
    %86 = arith.mulf %84, %85 : vector<8x128xf32>
    %87 = arith.negf %86 : vector<8x128xf32>
    %88 = math.exp %87 : vector<8x128xf32>
    %cst_34 = arith.constant 1.000000e+00 : f32
    %89 = vector.broadcast %cst_34 : f32 to vector<8x128xf32>
    %90 = arith.addf %89, %88 : vector<8x128xf32>
    %91 = arith.divf %89, %90 : vector<8x128xf32>
    %92 = vector.broadcast %8 : vector<1x128xf32> to vector<8x128xf32>
    %93 = arith.mulf %91, %92 : vector<8x128xf32>
    %94 = vector.broadcast %11 : vector<1x128xf32> to vector<8x128xf32>
    %95 = arith.subf %93, %94 : vector<8x128xf32>
    %96 = vector.extract_strided_slice %95 {offsets = [0, 0], sizes = [8, 32], strides = [1, 1]} : vector<8x128xf32> to vector<8x32xf32>
    %97 = vector.extract_strided_slice %95 {offsets = [0, 32], sizes = [8, 32], strides = [1, 1]} : vector<8x128xf32> to vector<8x32xf32>
    %98 = vector.extract_strided_slice %95 {offsets = [0, 64], sizes = [8, 32], strides = [1, 1]} : vector<8x128xf32> to vector<8x32xf32>
    %99 = vector.extract_strided_slice %95 {offsets = [0, 96], sizes = [8, 32], strides = [1, 1]} : vector<8x128xf32> to vector<8x32xf32>
    %100 = arith.mulf %97, %51 : vector<8x32xf32>
    %101 = arith.mulf %96, %98 : vector<8x32xf32>
    %102 = arith.addf %100, %101 : vector<8x32xf32>
    %103 = math.tanh %102 : vector<8x32xf32>
    %104 = arith.mulf %99, %103 : vector<8x32xf32>
    %cst_35 = arith.constant dense<0.000000e+00> : vector<8x128xf32>
    %105 = tpu.matmul %104, %19, %cst_35 {dimension_numbers = #tpu.dot_dimension_numbers<[1], [0], [0], [1], [0, 0, 1, 1], [], []>} : vector<8x32xf32>, vector<32x128xf32>, vector<8x128xf32> -> vector<8x128xf32>
    %cst_36 = arith.constant dense<0.000000e+00> : vector<8x128xf32>
    %106 = tpu.matmul %78, %23, %cst_36 {dimension_numbers = #tpu.dot_dimension_numbers<[1], [0], [0], [1], [0, 0, 1, 1], [], []>} : vector<8x32xf32>, vector<32x128xf32>, vector<8x128xf32> -> vector<8x128xf32>
    %107 = arith.addf %105, %106 : vector<8x128xf32>
    %108 = vector.broadcast %27 : vector<1x128xf32> to vector<8x128xf32>
    %109 = arith.addf %107, %108 : vector<8x128xf32>
    %110 = vector.broadcast %8 : vector<1x128xf32> to vector<8x128xf32>
    %111 = arith.mulf %109, %110 : vector<8x128xf32>
    %112 = arith.negf %111 : vector<8x128xf32>
    %113 = math.exp %112 : vector<8x128xf32>
    %cst_37 = arith.constant 1.000000e+00 : f32
    %114 = vector.broadcast %cst_37 : f32 to vector<8x128xf32>
    %115 = arith.addf %114, %113 : vector<8x128xf32>
    %116 = arith.divf %114, %115 : vector<8x128xf32>
    %117 = vector.broadcast %8 : vector<1x128xf32> to vector<8x128xf32>
    %118 = arith.mulf %116, %117 : vector<8x128xf32>
    %119 = vector.broadcast %11 : vector<1x128xf32> to vector<8x128xf32>
    %120 = arith.subf %118, %119 : vector<8x128xf32>
    %121 = vector.extract_strided_slice %120 {offsets = [0, 0], sizes = [8, 32], strides = [1, 1]} : vector<8x128xf32> to vector<8x32xf32>
    %122 = vector.extract_strided_slice %120 {offsets = [0, 32], sizes = [8, 32], strides = [1, 1]} : vector<8x128xf32> to vector<8x32xf32>
    %123 = vector.extract_strided_slice %120 {offsets = [0, 64], sizes = [8, 32], strides = [1, 1]} : vector<8x128xf32> to vector<8x32xf32>
    %124 = vector.extract_strided_slice %120 {offsets = [0, 96], sizes = [8, 32], strides = [1, 1]} : vector<8x128xf32> to vector<8x32xf32>
    %125 = arith.mulf %122, %76 : vector<8x32xf32>
    %126 = arith.mulf %121, %123 : vector<8x32xf32>
    %127 = arith.addf %125, %126 : vector<8x32xf32>
    %128 = math.tanh %127 : vector<8x32xf32>
    %129 = arith.mulf %124, %128 : vector<8x32xf32>
    %c0_38 = arith.constant 0 : index
    %c64 = arith.constant 64 : index
    %130 = vector.load %arg1[%c0_38, %c64] : memref<8x256xf32, #tpu.memory_space<vmem>>, vector<8x32xf32>
    %cst_39 = arith.constant dense<0.000000e+00> : vector<8x128xf32>
    %131 = tpu.matmul %130, %17, %cst_39 {dimension_numbers = #tpu.dot_dimension_numbers<[1], [0], [0], [1], [0, 0, 1, 1], [], []>} : vector<8x32xf32>, vector<32x128xf32>, vector<8x128xf32> -> vector<8x128xf32>
    %cst_40 = arith.constant dense<0.000000e+00> : vector<8x128xf32>
    %132 = tpu.matmul %104, %21, %cst_40 {dimension_numbers = #tpu.dot_dimension_numbers<[1], [0], [0], [1], [0, 0, 1, 1], [], []>} : vector<8x32xf32>, vector<32x128xf32>, vector<8x128xf32> -> vector<8x128xf32>
    %133 = arith.addf %131, %132 : vector<8x128xf32>
    %134 = vector.broadcast %25 : vector<1x128xf32> to vector<8x128xf32>
    %135 = arith.addf %133, %134 : vector<8x128xf32>
    %136 = vector.broadcast %8 : vector<1x128xf32> to vector<8x128xf32>
    %137 = arith.mulf %135, %136 : vector<8x128xf32>
    %138 = arith.negf %137 : vector<8x128xf32>
    %139 = math.exp %138 : vector<8x128xf32>
    %cst_41 = arith.constant 1.000000e+00 : f32
    %140 = vector.broadcast %cst_41 : f32 to vector<8x128xf32>
    %141 = arith.addf %140, %139 : vector<8x128xf32>
    %142 = arith.divf %140, %141 : vector<8x128xf32>
    %143 = vector.broadcast %8 : vector<1x128xf32> to vector<8x128xf32>
    %144 = arith.mulf %142, %143 : vector<8x128xf32>
    %145 = vector.broadcast %11 : vector<1x128xf32> to vector<8x128xf32>
    %146 = arith.subf %144, %145 : vector<8x128xf32>
    %147 = vector.extract_strided_slice %146 {offsets = [0, 0], sizes = [8, 32], strides = [1, 1]} : vector<8x128xf32> to vector<8x32xf32>
    %148 = vector.extract_strided_slice %146 {offsets = [0, 32], sizes = [8, 32], strides = [1, 1]} : vector<8x128xf32> to vector<8x32xf32>
    %149 = vector.extract_strided_slice %146 {offsets = [0, 64], sizes = [8, 32], strides = [1, 1]} : vector<8x128xf32> to vector<8x32xf32>
    %150 = vector.extract_strided_slice %146 {offsets = [0, 96], sizes = [8, 32], strides = [1, 1]} : vector<8x128xf32> to vector<8x32xf32>
    %151 = arith.mulf %148, %102 : vector<8x32xf32>
    %152 = arith.mulf %147, %149 : vector<8x32xf32>
    %153 = arith.addf %151, %152 : vector<8x32xf32>
    %154 = math.tanh %153 : vector<8x32xf32>
    %155 = arith.mulf %150, %154 : vector<8x32xf32>
    %cst_42 = arith.constant dense<0.000000e+00> : vector<8x128xf32>
    %156 = tpu.matmul %155, %19, %cst_42 {dimension_numbers = #tpu.dot_dimension_numbers<[1], [0], [0], [1], [0, 0, 1, 1], [], []>} : vector<8x32xf32>, vector<32x128xf32>, vector<8x128xf32> -> vector<8x128xf32>
    %cst_43 = arith.constant dense<0.000000e+00> : vector<8x128xf32>
    %157 = tpu.matmul %129, %23, %cst_43 {dimension_numbers = #tpu.dot_dimension_numbers<[1], [0], [0], [1], [0, 0, 1, 1], [], []>} : vector<8x32xf32>, vector<32x128xf32>, vector<8x128xf32> -> vector<8x128xf32>
    %158 = arith.addf %156, %157 : vector<8x128xf32>
    %159 = vector.broadcast %27 : vector<1x128xf32> to vector<8x128xf32>
    %160 = arith.addf %158, %159 : vector<8x128xf32>
    %161 = vector.broadcast %8 : vector<1x128xf32> to vector<8x128xf32>
    %162 = arith.mulf %160, %161 : vector<8x128xf32>
    %163 = arith.negf %162 : vector<8x128xf32>
    %164 = math.exp %163 : vector<8x128xf32>
    %cst_44 = arith.constant 1.000000e+00 : f32
    %165 = vector.broadcast %cst_44 : f32 to vector<8x128xf32>
    %166 = arith.addf %165, %164 : vector<8x128xf32>
    %167 = arith.divf %165, %166 : vector<8x128xf32>
    %168 = vector.broadcast %8 : vector<1x128xf32> to vector<8x128xf32>
    %169 = arith.mulf %167, %168 : vector<8x128xf32>
    %170 = vector.broadcast %11 : vector<1x128xf32> to vector<8x128xf32>
    %171 = arith.subf %169, %170 : vector<8x128xf32>
    %172 = vector.extract_strided_slice %171 {offsets = [0, 0], sizes = [8, 32], strides = [1, 1]} : vector<8x128xf32> to vector<8x32xf32>
    %173 = vector.extract_strided_slice %171 {offsets = [0, 32], sizes = [8, 32], strides = [1, 1]} : vector<8x128xf32> to vector<8x32xf32>
    %174 = vector.extract_strided_slice %171 {offsets = [0, 64], sizes = [8, 32], strides = [1, 1]} : vector<8x128xf32> to vector<8x32xf32>
    %175 = vector.extract_strided_slice %171 {offsets = [0, 96], sizes = [8, 32], strides = [1, 1]} : vector<8x128xf32> to vector<8x32xf32>
    %176 = arith.mulf %173, %127 : vector<8x32xf32>
    %177 = arith.mulf %172, %174 : vector<8x32xf32>
    %178 = arith.addf %176, %177 : vector<8x32xf32>
    %179 = math.tanh %178 : vector<8x32xf32>
    %180 = arith.mulf %175, %179 : vector<8x32xf32>
    %c0_45 = arith.constant 0 : index
    %c96 = arith.constant 96 : index
    %181 = vector.load %arg1[%c0_45, %c96] : memref<8x256xf32, #tpu.memory_space<vmem>>, vector<8x32xf32>
    %cst_46 = arith.constant dense<0.000000e+00> : vector<8x128xf32>
    %182 = tpu.matmul %181, %17, %cst_46 {dimension_numbers = #tpu.dot_dimension_numbers<[1], [0], [0], [1], [0, 0, 1, 1], [], []>} : vector<8x32xf32>, vector<32x128xf32>, vector<8x128xf32> -> vector<8x128xf32>
    %cst_47 = arith.constant dense<0.000000e+00> : vector<8x128xf32>
    %183 = tpu.matmul %155, %21, %cst_47 {dimension_numbers = #tpu.dot_dimension_numbers<[1], [0], [0], [1], [0, 0, 1, 1], [], []>} : vector<8x32xf32>, vector<32x128xf32>, vector<8x128xf32> -> vector<8x128xf32>
    %184 = arith.addf %182, %183 : vector<8x128xf32>
    %185 = vector.broadcast %25 : vector<1x128xf32> to vector<8x128xf32>
    %186 = arith.addf %184, %185 : vector<8x128xf32>
    %187 = vector.broadcast %8 : vector<1x128xf32> to vector<8x128xf32>
    %188 = arith.mulf %186, %187 : vector<8x128xf32>
    %189 = arith.negf %188 : vector<8x128xf32>
    %190 = math.exp %189 : vector<8x128xf32>
    %cst_48 = arith.constant 1.000000e+00 : f32
    %191 = vector.broadcast %cst_48 : f32 to vector<8x128xf32>
    %192 = arith.addf %191, %190 : vector<8x128xf32>
    %193 = arith.divf %191, %192 : vector<8x128xf32>
    %194 = vector.broadcast %8 : vector<1x128xf32> to vector<8x128xf32>
    %195 = arith.mulf %193, %194 : vector<8x128xf32>
    %196 = vector.broadcast %11 : vector<1x128xf32> to vector<8x128xf32>
    %197 = arith.subf %195, %196 : vector<8x128xf32>
    %198 = vector.extract_strided_slice %197 {offsets = [0, 0], sizes = [8, 32], strides = [1, 1]} : vector<8x128xf32> to vector<8x32xf32>
    %199 = vector.extract_strided_slice %197 {offsets = [0, 32], sizes = [8, 32], strides = [1, 1]} : vector<8x128xf32> to vector<8x32xf32>
    %200 = vector.extract_strided_slice %197 {offsets = [0, 64], sizes = [8, 32], strides = [1, 1]} : vector<8x128xf32> to vector<8x32xf32>
    %201 = vector.extract_strided_slice %197 {offsets = [0, 96], sizes = [8, 32], strides = [1, 1]} : vector<8x128xf32> to vector<8x32xf32>
    %202 = arith.mulf %199, %153 : vector<8x32xf32>
    %203 = arith.mulf %198, %200 : vector<8x32xf32>
    %204 = arith.addf %202, %203 : vector<8x32xf32>
    %205 = math.tanh %204 : vector<8x32xf32>
    %206 = arith.mulf %201, %205 : vector<8x32xf32>
    %cst_49 = arith.constant dense<0.000000e+00> : vector<8x128xf32>
    %207 = tpu.matmul %206, %19, %cst_49 {dimension_numbers = #tpu.dot_dimension_numbers<[1], [0], [0], [1], [0, 0, 1, 1], [], []>} : vector<8x32xf32>, vector<32x128xf32>, vector<8x128xf32> -> vector<8x128xf32>
    %cst_50 = arith.constant dense<0.000000e+00> : vector<8x128xf32>
    %208 = tpu.matmul %180, %23, %cst_50 {dimension_numbers = #tpu.dot_dimension_numbers<[1], [0], [0], [1], [0, 0, 1, 1], [], []>} : vector<8x32xf32>, vector<32x128xf32>, vector<8x128xf32> -> vector<8x128xf32>
    %209 = arith.addf %207, %208 : vector<8x128xf32>
    %210 = vector.broadcast %27 : vector<1x128xf32> to vector<8x128xf32>
    %211 = arith.addf %209, %210 : vector<8x128xf32>
    %212 = vector.broadcast %8 : vector<1x128xf32> to vector<8x128xf32>
    %213 = arith.mulf %211, %212 : vector<8x128xf32>
    %214 = arith.negf %213 : vector<8x128xf32>
    %215 = math.exp %214 : vector<8x128xf32>
    %cst_51 = arith.constant 1.000000e+00 : f32
    %216 = vector.broadcast %cst_51 : f32 to vector<8x128xf32>
    %217 = arith.addf %216, %215 : vector<8x128xf32>
    %218 = arith.divf %216, %217 : vector<8x128xf32>
    %219 = vector.broadcast %8 : vector<1x128xf32> to vector<8x128xf32>
    %220 = arith.mulf %218, %219 : vector<8x128xf32>
    %221 = vector.broadcast %11 : vector<1x128xf32> to vector<8x128xf32>
    %222 = arith.subf %220, %221 : vector<8x128xf32>
    %223 = vector.extract_strided_slice %222 {offsets = [0, 0], sizes = [8, 32], strides = [1, 1]} : vector<8x128xf32> to vector<8x32xf32>
    %224 = vector.extract_strided_slice %222 {offsets = [0, 32], sizes = [8, 32], strides = [1, 1]} : vector<8x128xf32> to vector<8x32xf32>
    %225 = vector.extract_strided_slice %222 {offsets = [0, 64], sizes = [8, 32], strides = [1, 1]} : vector<8x128xf32> to vector<8x32xf32>
    %226 = vector.extract_strided_slice %222 {offsets = [0, 96], sizes = [8, 32], strides = [1, 1]} : vector<8x128xf32> to vector<8x32xf32>
    %227 = arith.mulf %224, %178 : vector<8x32xf32>
    %228 = arith.mulf %223, %225 : vector<8x32xf32>
    %229 = arith.addf %227, %228 : vector<8x32xf32>
    %230 = math.tanh %229 : vector<8x32xf32>
    %231 = arith.mulf %226, %230 : vector<8x32xf32>
    %c0_52 = arith.constant 0 : index
    %c128 = arith.constant 128 : index
    %232 = vector.load %arg1[%c0_52, %c128] : memref<8x256xf32, #tpu.memory_space<vmem>>, vector<8x32xf32>
    %cst_53 = arith.constant dense<0.000000e+00> : vector<8x128xf32>
    %233 = tpu.matmul %232, %17, %cst_53 {dimension_numbers = #tpu.dot_dimension_numbers<[1], [0], [0], [1], [0, 0, 1, 1], [], []>} : vector<8x32xf32>, vector<32x128xf32>, vector<8x128xf32> -> vector<8x128xf32>
    %cst_54 = arith.constant dense<0.000000e+00> : vector<8x128xf32>
    %234 = tpu.matmul %206, %21, %cst_54 {dimension_numbers = #tpu.dot_dimension_numbers<[1], [0], [0], [1], [0, 0, 1, 1], [], []>} : vector<8x32xf32>, vector<32x128xf32>, vector<8x128xf32> -> vector<8x128xf32>
    %235 = arith.addf %233, %234 : vector<8x128xf32>
    %236 = vector.broadcast %25 : vector<1x128xf32> to vector<8x128xf32>
    %237 = arith.addf %235, %236 : vector<8x128xf32>
    %238 = vector.broadcast %8 : vector<1x128xf32> to vector<8x128xf32>
    %239 = arith.mulf %237, %238 : vector<8x128xf32>
    %240 = arith.negf %239 : vector<8x128xf32>
    %241 = math.exp %240 : vector<8x128xf32>
    %cst_55 = arith.constant 1.000000e+00 : f32
    %242 = vector.broadcast %cst_55 : f32 to vector<8x128xf32>
    %243 = arith.addf %242, %241 : vector<8x128xf32>
    %244 = arith.divf %242, %243 : vector<8x128xf32>
    %245 = vector.broadcast %8 : vector<1x128xf32> to vector<8x128xf32>
    %246 = arith.mulf %244, %245 : vector<8x128xf32>
    %247 = vector.broadcast %11 : vector<1x128xf32> to vector<8x128xf32>
    %248 = arith.subf %246, %247 : vector<8x128xf32>
    %249 = vector.extract_strided_slice %248 {offsets = [0, 0], sizes = [8, 32], strides = [1, 1]} : vector<8x128xf32> to vector<8x32xf32>
    %250 = vector.extract_strided_slice %248 {offsets = [0, 32], sizes = [8, 32], strides = [1, 1]} : vector<8x128xf32> to vector<8x32xf32>
    %251 = vector.extract_strided_slice %248 {offsets = [0, 64], sizes = [8, 32], strides = [1, 1]} : vector<8x128xf32> to vector<8x32xf32>
    %252 = vector.extract_strided_slice %248 {offsets = [0, 96], sizes = [8, 32], strides = [1, 1]} : vector<8x128xf32> to vector<8x32xf32>
    %253 = arith.mulf %250, %204 : vector<8x32xf32>
    %254 = arith.mulf %249, %251 : vector<8x32xf32>
    %255 = arith.addf %253, %254 : vector<8x32xf32>
    %256 = math.tanh %255 : vector<8x32xf32>
    %257 = arith.mulf %252, %256 : vector<8x32xf32>
    %cst_56 = arith.constant dense<0.000000e+00> : vector<8x128xf32>
    %258 = tpu.matmul %257, %19, %cst_56 {dimension_numbers = #tpu.dot_dimension_numbers<[1], [0], [0], [1], [0, 0, 1, 1], [], []>} : vector<8x32xf32>, vector<32x128xf32>, vector<8x128xf32> -> vector<8x128xf32>
    %cst_57 = arith.constant dense<0.000000e+00> : vector<8x128xf32>
    %259 = tpu.matmul %231, %23, %cst_57 {dimension_numbers = #tpu.dot_dimension_numbers<[1], [0], [0], [1], [0, 0, 1, 1], [], []>} : vector<8x32xf32>, vector<32x128xf32>, vector<8x128xf32> -> vector<8x128xf32>
    %260 = arith.addf %258, %259 : vector<8x128xf32>
    %261 = vector.broadcast %27 : vector<1x128xf32> to vector<8x128xf32>
    %262 = arith.addf %260, %261 : vector<8x128xf32>
    %263 = vector.broadcast %8 : vector<1x128xf32> to vector<8x128xf32>
    %264 = arith.mulf %262, %263 : vector<8x128xf32>
    %265 = arith.negf %264 : vector<8x128xf32>
    %266 = math.exp %265 : vector<8x128xf32>
    %cst_58 = arith.constant 1.000000e+00 : f32
    %267 = vector.broadcast %cst_58 : f32 to vector<8x128xf32>
    %268 = arith.addf %267, %266 : vector<8x128xf32>
    %269 = arith.divf %267, %268 : vector<8x128xf32>
    %270 = vector.broadcast %8 : vector<1x128xf32> to vector<8x128xf32>
    %271 = arith.mulf %269, %270 : vector<8x128xf32>
    %272 = vector.broadcast %11 : vector<1x128xf32> to vector<8x128xf32>
    %273 = arith.subf %271, %272 : vector<8x128xf32>
    %274 = vector.extract_strided_slice %273 {offsets = [0, 0], sizes = [8, 32], strides = [1, 1]} : vector<8x128xf32> to vector<8x32xf32>
    %275 = vector.extract_strided_slice %273 {offsets = [0, 32], sizes = [8, 32], strides = [1, 1]} : vector<8x128xf32> to vector<8x32xf32>
    %276 = vector.extract_strided_slice %273 {offsets = [0, 64], sizes = [8, 32], strides = [1, 1]} : vector<8x128xf32> to vector<8x32xf32>
    %277 = vector.extract_strided_slice %273 {offsets = [0, 96], sizes = [8, 32], strides = [1, 1]} : vector<8x128xf32> to vector<8x32xf32>
    %278 = arith.mulf %275, %229 : vector<8x32xf32>
    %279 = arith.mulf %274, %276 : vector<8x32xf32>
    %280 = arith.addf %278, %279 : vector<8x32xf32>
    %281 = math.tanh %280 : vector<8x32xf32>
    %282 = arith.mulf %277, %281 : vector<8x32xf32>
    %c0_59 = arith.constant 0 : index
    %c160 = arith.constant 160 : index
    %283 = vector.load %arg1[%c0_59, %c160] : memref<8x256xf32, #tpu.memory_space<vmem>>, vector<8x32xf32>
    %cst_60 = arith.constant dense<0.000000e+00> : vector<8x128xf32>
    %284 = tpu.matmul %283, %17, %cst_60 {dimension_numbers = #tpu.dot_dimension_numbers<[1], [0], [0], [1], [0, 0, 1, 1], [], []>} : vector<8x32xf32>, vector<32x128xf32>, vector<8x128xf32> -> vector<8x128xf32>
    %cst_61 = arith.constant dense<0.000000e+00> : vector<8x128xf32>
    %285 = tpu.matmul %257, %21, %cst_61 {dimension_numbers = #tpu.dot_dimension_numbers<[1], [0], [0], [1], [0, 0, 1, 1], [], []>} : vector<8x32xf32>, vector<32x128xf32>, vector<8x128xf32> -> vector<8x128xf32>
    %286 = arith.addf %284, %285 : vector<8x128xf32>
    %287 = vector.broadcast %25 : vector<1x128xf32> to vector<8x128xf32>
    %288 = arith.addf %286, %287 : vector<8x128xf32>
    %289 = vector.broadcast %8 : vector<1x128xf32> to vector<8x128xf32>
    %290 = arith.mulf %288, %289 : vector<8x128xf32>
    %291 = arith.negf %290 : vector<8x128xf32>
    %292 = math.exp %291 : vector<8x128xf32>
    %cst_62 = arith.constant 1.000000e+00 : f32
    %293 = vector.broadcast %cst_62 : f32 to vector<8x128xf32>
    %294 = arith.addf %293, %292 : vector<8x128xf32>
    %295 = arith.divf %293, %294 : vector<8x128xf32>
    %296 = vector.broadcast %8 : vector<1x128xf32> to vector<8x128xf32>
    %297 = arith.mulf %295, %296 : vector<8x128xf32>
    %298 = vector.broadcast %11 : vector<1x128xf32> to vector<8x128xf32>
    %299 = arith.subf %297, %298 : vector<8x128xf32>
    %300 = vector.extract_strided_slice %299 {offsets = [0, 0], sizes = [8, 32], strides = [1, 1]} : vector<8x128xf32> to vector<8x32xf32>
    %301 = vector.extract_strided_slice %299 {offsets = [0, 32], sizes = [8, 32], strides = [1, 1]} : vector<8x128xf32> to vector<8x32xf32>
    %302 = vector.extract_strided_slice %299 {offsets = [0, 64], sizes = [8, 32], strides = [1, 1]} : vector<8x128xf32> to vector<8x32xf32>
    %303 = vector.extract_strided_slice %299 {offsets = [0, 96], sizes = [8, 32], strides = [1, 1]} : vector<8x128xf32> to vector<8x32xf32>
    %304 = arith.mulf %301, %255 : vector<8x32xf32>
    %305 = arith.mulf %300, %302 : vector<8x32xf32>
    %306 = arith.addf %304, %305 : vector<8x32xf32>
    %307 = math.tanh %306 : vector<8x32xf32>
    %308 = arith.mulf %303, %307 : vector<8x32xf32>
    %cst_63 = arith.constant dense<0.000000e+00> : vector<8x128xf32>
    %309 = tpu.matmul %308, %19, %cst_63 {dimension_numbers = #tpu.dot_dimension_numbers<[1], [0], [0], [1], [0, 0, 1, 1], [], []>} : vector<8x32xf32>, vector<32x128xf32>, vector<8x128xf32> -> vector<8x128xf32>
    %cst_64 = arith.constant dense<0.000000e+00> : vector<8x128xf32>
    %310 = tpu.matmul %282, %23, %cst_64 {dimension_numbers = #tpu.dot_dimension_numbers<[1], [0], [0], [1], [0, 0, 1, 1], [], []>} : vector<8x32xf32>, vector<32x128xf32>, vector<8x128xf32> -> vector<8x128xf32>
    %311 = arith.addf %309, %310 : vector<8x128xf32>
    %312 = vector.broadcast %27 : vector<1x128xf32> to vector<8x128xf32>
    %313 = arith.addf %311, %312 : vector<8x128xf32>
    %314 = vector.broadcast %8 : vector<1x128xf32> to vector<8x128xf32>
    %315 = arith.mulf %313, %314 : vector<8x128xf32>
    %316 = arith.negf %315 : vector<8x128xf32>
    %317 = math.exp %316 : vector<8x128xf32>
    %cst_65 = arith.constant 1.000000e+00 : f32
    %318 = vector.broadcast %cst_65 : f32 to vector<8x128xf32>
    %319 = arith.addf %318, %317 : vector<8x128xf32>
    %320 = arith.divf %318, %319 : vector<8x128xf32>
    %321 = vector.broadcast %8 : vector<1x128xf32> to vector<8x128xf32>
    %322 = arith.mulf %320, %321 : vector<8x128xf32>
    %323 = vector.broadcast %11 : vector<1x128xf32> to vector<8x128xf32>
    %324 = arith.subf %322, %323 : vector<8x128xf32>
    %325 = vector.extract_strided_slice %324 {offsets = [0, 0], sizes = [8, 32], strides = [1, 1]} : vector<8x128xf32> to vector<8x32xf32>
    %326 = vector.extract_strided_slice %324 {offsets = [0, 32], sizes = [8, 32], strides = [1, 1]} : vector<8x128xf32> to vector<8x32xf32>
    %327 = vector.extract_strided_slice %324 {offsets = [0, 64], sizes = [8, 32], strides = [1, 1]} : vector<8x128xf32> to vector<8x32xf32>
    %328 = vector.extract_strided_slice %324 {offsets = [0, 96], sizes = [8, 32], strides = [1, 1]} : vector<8x128xf32> to vector<8x32xf32>
    %329 = arith.mulf %326, %280 : vector<8x32xf32>
    %330 = arith.mulf %325, %327 : vector<8x32xf32>
    %331 = arith.addf %329, %330 : vector<8x32xf32>
    %332 = math.tanh %331 : vector<8x32xf32>
    %333 = arith.mulf %328, %332 : vector<8x32xf32>
    %c0_66 = arith.constant 0 : index
    %c192 = arith.constant 192 : index
    %334 = vector.load %arg1[%c0_66, %c192] : memref<8x256xf32, #tpu.memory_space<vmem>>, vector<8x32xf32>
    %cst_67 = arith.constant dense<0.000000e+00> : vector<8x128xf32>
    %335 = tpu.matmul %334, %17, %cst_67 {dimension_numbers = #tpu.dot_dimension_numbers<[1], [0], [0], [1], [0, 0, 1, 1], [], []>} : vector<8x32xf32>, vector<32x128xf32>, vector<8x128xf32> -> vector<8x128xf32>
    %cst_68 = arith.constant dense<0.000000e+00> : vector<8x128xf32>
    %336 = tpu.matmul %308, %21, %cst_68 {dimension_numbers = #tpu.dot_dimension_numbers<[1], [0], [0], [1], [0, 0, 1, 1], [], []>} : vector<8x32xf32>, vector<32x128xf32>, vector<8x128xf32> -> vector<8x128xf32>
    %337 = arith.addf %335, %336 : vector<8x128xf32>
    %338 = vector.broadcast %25 : vector<1x128xf32> to vector<8x128xf32>
    %339 = arith.addf %337, %338 : vector<8x128xf32>
    %340 = vector.broadcast %8 : vector<1x128xf32> to vector<8x128xf32>
    %341 = arith.mulf %339, %340 : vector<8x128xf32>
    %342 = arith.negf %341 : vector<8x128xf32>
    %343 = math.exp %342 : vector<8x128xf32>
    %cst_69 = arith.constant 1.000000e+00 : f32
    %344 = vector.broadcast %cst_69 : f32 to vector<8x128xf32>
    %345 = arith.addf %344, %343 : vector<8x128xf32>
    %346 = arith.divf %344, %345 : vector<8x128xf32>
    %347 = vector.broadcast %8 : vector<1x128xf32> to vector<8x128xf32>
    %348 = arith.mulf %346, %347 : vector<8x128xf32>
    %349 = vector.broadcast %11 : vector<1x128xf32> to vector<8x128xf32>
    %350 = arith.subf %348, %349 : vector<8x128xf32>
    %351 = vector.extract_strided_slice %350 {offsets = [0, 0], sizes = [8, 32], strides = [1, 1]} : vector<8x128xf32> to vector<8x32xf32>
    %352 = vector.extract_strided_slice %350 {offsets = [0, 32], sizes = [8, 32], strides = [1, 1]} : vector<8x128xf32> to vector<8x32xf32>
    %353 = vector.extract_strided_slice %350 {offsets = [0, 64], sizes = [8, 32], strides = [1, 1]} : vector<8x128xf32> to vector<8x32xf32>
    %354 = vector.extract_strided_slice %350 {offsets = [0, 96], sizes = [8, 32], strides = [1, 1]} : vector<8x128xf32> to vector<8x32xf32>
    %355 = arith.mulf %352, %306 : vector<8x32xf32>
    %356 = arith.mulf %351, %353 : vector<8x32xf32>
    %357 = arith.addf %355, %356 : vector<8x32xf32>
    %358 = math.tanh %357 : vector<8x32xf32>
    %359 = arith.mulf %354, %358 : vector<8x32xf32>
    %cst_70 = arith.constant dense<0.000000e+00> : vector<8x128xf32>
    %360 = tpu.matmul %359, %19, %cst_70 {dimension_numbers = #tpu.dot_dimension_numbers<[1], [0], [0], [1], [0, 0, 1, 1], [], []>} : vector<8x32xf32>, vector<32x128xf32>, vector<8x128xf32> -> vector<8x128xf32>
    %cst_71 = arith.constant dense<0.000000e+00> : vector<8x128xf32>
    %361 = tpu.matmul %333, %23, %cst_71 {dimension_numbers = #tpu.dot_dimension_numbers<[1], [0], [0], [1], [0, 0, 1, 1], [], []>} : vector<8x32xf32>, vector<32x128xf32>, vector<8x128xf32> -> vector<8x128xf32>
    %362 = arith.addf %360, %361 : vector<8x128xf32>
    %363 = vector.broadcast %27 : vector<1x128xf32> to vector<8x128xf32>
    %364 = arith.addf %362, %363 : vector<8x128xf32>
    %365 = vector.broadcast %8 : vector<1x128xf32> to vector<8x128xf32>
    %366 = arith.mulf %364, %365 : vector<8x128xf32>
    %367 = arith.negf %366 : vector<8x128xf32>
    %368 = math.exp %367 : vector<8x128xf32>
    %cst_72 = arith.constant 1.000000e+00 : f32
    %369 = vector.broadcast %cst_72 : f32 to vector<8x128xf32>
    %370 = arith.addf %369, %368 : vector<8x128xf32>
    %371 = arith.divf %369, %370 : vector<8x128xf32>
    %372 = vector.broadcast %8 : vector<1x128xf32> to vector<8x128xf32>
    %373 = arith.mulf %371, %372 : vector<8x128xf32>
    %374 = vector.broadcast %11 : vector<1x128xf32> to vector<8x128xf32>
    %375 = arith.subf %373, %374 : vector<8x128xf32>
    %376 = vector.extract_strided_slice %375 {offsets = [0, 0], sizes = [8, 32], strides = [1, 1]} : vector<8x128xf32> to vector<8x32xf32>
    %377 = vector.extract_strided_slice %375 {offsets = [0, 32], sizes = [8, 32], strides = [1, 1]} : vector<8x128xf32> to vector<8x32xf32>
    %378 = vector.extract_strided_slice %375 {offsets = [0, 64], sizes = [8, 32], strides = [1, 1]} : vector<8x128xf32> to vector<8x32xf32>
    %379 = vector.extract_strided_slice %375 {offsets = [0, 96], sizes = [8, 32], strides = [1, 1]} : vector<8x128xf32> to vector<8x32xf32>
    %380 = arith.mulf %377, %331 : vector<8x32xf32>
    %381 = arith.mulf %376, %378 : vector<8x32xf32>
    %382 = arith.addf %380, %381 : vector<8x32xf32>
    %383 = math.tanh %382 : vector<8x32xf32>
    %384 = arith.mulf %379, %383 : vector<8x32xf32>
    %c0_73 = arith.constant 0 : index
    %c224 = arith.constant 224 : index
    %385 = vector.load %arg1[%c0_73, %c224] : memref<8x256xf32, #tpu.memory_space<vmem>>, vector<8x32xf32>
    %cst_74 = arith.constant dense<0.000000e+00> : vector<8x128xf32>
    %386 = tpu.matmul %385, %17, %cst_74 {dimension_numbers = #tpu.dot_dimension_numbers<[1], [0], [0], [1], [0, 0, 1, 1], [], []>} : vector<8x32xf32>, vector<32x128xf32>, vector<8x128xf32> -> vector<8x128xf32>
    %cst_75 = arith.constant dense<0.000000e+00> : vector<8x128xf32>
    %387 = tpu.matmul %359, %21, %cst_75 {dimension_numbers = #tpu.dot_dimension_numbers<[1], [0], [0], [1], [0, 0, 1, 1], [], []>} : vector<8x32xf32>, vector<32x128xf32>, vector<8x128xf32> -> vector<8x128xf32>
    %388 = arith.addf %386, %387 : vector<8x128xf32>
    %389 = vector.broadcast %25 : vector<1x128xf32> to vector<8x128xf32>
    %390 = arith.addf %388, %389 : vector<8x128xf32>
    %391 = vector.broadcast %8 : vector<1x128xf32> to vector<8x128xf32>
    %392 = arith.mulf %390, %391 : vector<8x128xf32>
    %393 = arith.negf %392 : vector<8x128xf32>
    %394 = math.exp %393 : vector<8x128xf32>
    %cst_76 = arith.constant 1.000000e+00 : f32
    %395 = vector.broadcast %cst_76 : f32 to vector<8x128xf32>
    %396 = arith.addf %395, %394 : vector<8x128xf32>
    %397 = arith.divf %395, %396 : vector<8x128xf32>
    %398 = vector.broadcast %8 : vector<1x128xf32> to vector<8x128xf32>
    %399 = arith.mulf %397, %398 : vector<8x128xf32>
    %400 = vector.broadcast %11 : vector<1x128xf32> to vector<8x128xf32>
    %401 = arith.subf %399, %400 : vector<8x128xf32>
    %402 = vector.extract_strided_slice %401 {offsets = [0, 0], sizes = [8, 32], strides = [1, 1]} : vector<8x128xf32> to vector<8x32xf32>
    %403 = vector.extract_strided_slice %401 {offsets = [0, 32], sizes = [8, 32], strides = [1, 1]} : vector<8x128xf32> to vector<8x32xf32>
    %404 = vector.extract_strided_slice %401 {offsets = [0, 64], sizes = [8, 32], strides = [1, 1]} : vector<8x128xf32> to vector<8x32xf32>
    %405 = vector.extract_strided_slice %401 {offsets = [0, 96], sizes = [8, 32], strides = [1, 1]} : vector<8x128xf32> to vector<8x32xf32>
    %406 = arith.mulf %403, %357 : vector<8x32xf32>
    %407 = arith.mulf %402, %404 : vector<8x32xf32>
    %408 = arith.addf %406, %407 : vector<8x32xf32>
    %409 = math.tanh %408 : vector<8x32xf32>
    %410 = arith.mulf %405, %409 : vector<8x32xf32>
    %cst_77 = arith.constant dense<0.000000e+00> : vector<8x128xf32>
    %411 = tpu.matmul %410, %19, %cst_77 {dimension_numbers = #tpu.dot_dimension_numbers<[1], [0], [0], [1], [0, 0, 1, 1], [], []>} : vector<8x32xf32>, vector<32x128xf32>, vector<8x128xf32> -> vector<8x128xf32>
    %cst_78 = arith.constant dense<0.000000e+00> : vector<8x128xf32>
    %412 = tpu.matmul %384, %23, %cst_78 {dimension_numbers = #tpu.dot_dimension_numbers<[1], [0], [0], [1], [0, 0, 1, 1], [], []>} : vector<8x32xf32>, vector<32x128xf32>, vector<8x128xf32> -> vector<8x128xf32>
    %413 = arith.addf %411, %412 : vector<8x128xf32>
    %414 = vector.broadcast %27 : vector<1x128xf32> to vector<8x128xf32>
    %415 = arith.addf %413, %414 : vector<8x128xf32>
    %416 = vector.broadcast %8 : vector<1x128xf32> to vector<8x128xf32>
    %417 = arith.mulf %415, %416 : vector<8x128xf32>
    %418 = arith.negf %417 : vector<8x128xf32>
    %419 = math.exp %418 : vector<8x128xf32>
    %cst_79 = arith.constant 1.000000e+00 : f32
    %420 = vector.broadcast %cst_79 : f32 to vector<8x128xf32>
    %421 = arith.addf %420, %419 : vector<8x128xf32>
    %422 = arith.divf %420, %421 : vector<8x128xf32>
    %423 = vector.broadcast %8 : vector<1x128xf32> to vector<8x128xf32>
    %424 = arith.mulf %422, %423 : vector<8x128xf32>
    %425 = vector.broadcast %11 : vector<1x128xf32> to vector<8x128xf32>
    %426 = arith.subf %424, %425 : vector<8x128xf32>
    %427 = vector.extract_strided_slice %426 {offsets = [0, 0], sizes = [8, 32], strides = [1, 1]} : vector<8x128xf32> to vector<8x32xf32>
    %428 = vector.extract_strided_slice %426 {offsets = [0, 32], sizes = [8, 32], strides = [1, 1]} : vector<8x128xf32> to vector<8x32xf32>
    %429 = vector.extract_strided_slice %426 {offsets = [0, 64], sizes = [8, 32], strides = [1, 1]} : vector<8x128xf32> to vector<8x32xf32>
    %430 = vector.extract_strided_slice %426 {offsets = [0, 96], sizes = [8, 32], strides = [1, 1]} : vector<8x128xf32> to vector<8x32xf32>
    %431 = arith.mulf %428, %382 : vector<8x32xf32>
    %432 = arith.mulf %427, %429 : vector<8x32xf32>
    %433 = arith.addf %431, %432 : vector<8x32xf32>
    %434 = math.tanh %433 : vector<8x32xf32>
    %435 = arith.mulf %430, %434 : vector<8x32xf32>
    %c0_80 = arith.constant 0 : index
    %c0_81 = arith.constant 0 : index
    %c0_82 = arith.constant 0 : index
    %436 = vector.load %arg5[%c0_80, %c0_81, %c0_82] : memref<2x32x128xf32, #tpu.memory_space<vmem>>, vector<1x32x128xf32>
    %437 = vector.shape_cast %436 : vector<1x32x128xf32> to vector<32x128xf32>
    %c1_83 = arith.constant 1 : index
    %c0_84 = arith.constant 0 : index
    %c0_85 = arith.constant 0 : index
    %438 = vector.load %arg5[%c1_83, %c0_84, %c0_85] : memref<2x32x128xf32, #tpu.memory_space<vmem>>, vector<1x32x128xf32>
    %439 = vector.shape_cast %438 : vector<1x32x128xf32> to vector<32x128xf32>
    %c0_86 = arith.constant 0 : index
    %c0_87 = arith.constant 0 : index
    %c0_88 = arith.constant 0 : index
    %440 = vector.load %arg6[%c0_86, %c0_87, %c0_88] : memref<2x32x128xf32, #tpu.memory_space<vmem>>, vector<1x32x128xf32>
    %441 = vector.shape_cast %440 : vector<1x32x128xf32> to vector<32x128xf32>
    %c1_89 = arith.constant 1 : index
    %c0_90 = arith.constant 0 : index
    %c0_91 = arith.constant 0 : index
    %442 = vector.load %arg6[%c1_89, %c0_90, %c0_91] : memref<2x32x128xf32, #tpu.memory_space<vmem>>, vector<1x32x128xf32>
    %443 = vector.shape_cast %442 : vector<1x32x128xf32> to vector<32x128xf32>
    %c0_92 = arith.constant 0 : index
    %c0_93 = arith.constant 0 : index
    %c0_94 = arith.constant 0 : index
    %444 = vector.load %arg7[%c0_92, %c0_93, %c0_94] : memref<2x1x128xf32, #tpu.memory_space<vmem>>, vector<1x1x128xf32>
    %445 = vector.shape_cast %444 : vector<1x1x128xf32> to vector<1x128xf32>
    %c1_95 = arith.constant 1 : index
    %c0_96 = arith.constant 0 : index
    %c0_97 = arith.constant 0 : index
    %446 = vector.load %arg7[%c1_95, %c0_96, %c0_97] : memref<2x1x128xf32, #tpu.memory_space<vmem>>, vector<1x1x128xf32>
    %447 = vector.shape_cast %446 : vector<1x1x128xf32> to vector<1x128xf32>
    %c0_98 = arith.constant 0 : index
    %c0_99 = arith.constant 0 : index
    %448 = vector.load %arg10[%c0_98, %c0_99] : memref<32x128xf32, #tpu.memory_space<vmem>>, vector<32x128xf32>
    %c0_100 = arith.constant 0 : index
    %c0_101 = arith.constant 0 : index
    %449 = vector.load %arg11[%c0_100, %c0_101] : memref<1x128xf32, #tpu.memory_space<vmem>>, vector<1x128xf32>
    %450 = arith.addf %445, %449 : vector<1x128xf32>
    %c0_102 = arith.constant 0 : index
    %c0_103 = arith.constant 0 : index
    %451 = vector.load %arg8[%c0_102, %c0_103] : memref<32x32xf32, #tpu.memory_space<vmem>>, vector<32x32xf32>
    %c0_104 = arith.constant 0 : index
    %c0_105 = arith.constant 0 : index
    %452 = vector.load %arg9[%c0_104, %c0_105] : memref<1x32xf32, #tpu.memory_space<vmem>>, vector<1x32xf32>
    %c0_106 = arith.constant 0 : index
    %c224_107 = arith.constant 224 : index
    %453 = vector.load %arg1[%c0_106, %c224_107] : memref<8x256xf32, #tpu.memory_space<vmem>>, vector<8x32xf32>
    %cst_108 = arith.constant dense<0.000000e+00> : vector<8x128xf32>
    %454 = tpu.matmul %453, %437, %cst_108 {dimension_numbers = #tpu.dot_dimension_numbers<[1], [0], [0], [1], [0, 0, 1, 1], [], []>} : vector<8x32xf32>, vector<32x128xf32>, vector<8x128xf32> -> vector<8x128xf32>
    %cst_109 = arith.constant dense<0.000000e+00> : vector<8x128xf32>
    %455 = tpu.matmul %410, %441, %cst_109 {dimension_numbers = #tpu.dot_dimension_numbers<[1], [0], [0], [1], [0, 0, 1, 1], [], []>} : vector<8x32xf32>, vector<32x128xf32>, vector<8x128xf32> -> vector<8x128xf32>
    %456 = arith.addf %454, %455 : vector<8x128xf32>
    %457 = vector.broadcast %445 : vector<1x128xf32> to vector<8x128xf32>
    %458 = arith.addf %456, %457 : vector<8x128xf32>
    %459 = vector.broadcast %8 : vector<1x128xf32> to vector<8x128xf32>
    %460 = arith.mulf %458, %459 : vector<8x128xf32>
    %461 = arith.negf %460 : vector<8x128xf32>
    %462 = math.exp %461 : vector<8x128xf32>
    %cst_110 = arith.constant 1.000000e+00 : f32
    %463 = vector.broadcast %cst_110 : f32 to vector<8x128xf32>
    %464 = arith.addf %463, %462 : vector<8x128xf32>
    %465 = arith.divf %463, %464 : vector<8x128xf32>
    %466 = vector.broadcast %8 : vector<1x128xf32> to vector<8x128xf32>
    %467 = arith.mulf %465, %466 : vector<8x128xf32>
    %468 = vector.broadcast %11 : vector<1x128xf32> to vector<8x128xf32>
    %469 = arith.subf %467, %468 : vector<8x128xf32>
    %470 = vector.extract_strided_slice %469 {offsets = [0, 0], sizes = [8, 32], strides = [1, 1]} : vector<8x128xf32> to vector<8x32xf32>
    %471 = vector.extract_strided_slice %469 {offsets = [0, 32], sizes = [8, 32], strides = [1, 1]} : vector<8x128xf32> to vector<8x32xf32>
    %472 = vector.extract_strided_slice %469 {offsets = [0, 64], sizes = [8, 32], strides = [1, 1]} : vector<8x128xf32> to vector<8x32xf32>
    %473 = vector.extract_strided_slice %469 {offsets = [0, 96], sizes = [8, 32], strides = [1, 1]} : vector<8x128xf32> to vector<8x32xf32>
    %474 = arith.mulf %471, %408 : vector<8x32xf32>
    %475 = arith.mulf %470, %472 : vector<8x32xf32>
    %476 = arith.addf %474, %475 : vector<8x32xf32>
    %477 = math.tanh %476 : vector<8x32xf32>
    %478 = arith.mulf %473, %477 : vector<8x32xf32>
    %cst_111 = arith.constant dense<0.000000e+00> : vector<8x128xf32>
    %479 = tpu.matmul %478, %439, %cst_111 {dimension_numbers = #tpu.dot_dimension_numbers<[1], [0], [0], [1], [0, 0, 1, 1], [], []>} : vector<8x32xf32>, vector<32x128xf32>, vector<8x128xf32> -> vector<8x128xf32>
    %cst_112 = arith.constant dense<0.000000e+00> : vector<8x128xf32>
    %480 = tpu.matmul %435, %443, %cst_112 {dimension_numbers = #tpu.dot_dimension_numbers<[1], [0], [0], [1], [0, 0, 1, 1], [], []>} : vector<8x32xf32>, vector<32x128xf32>, vector<8x128xf32> -> vector<8x128xf32>
    %481 = arith.addf %479, %480 : vector<8x128xf32>
    %482 = vector.broadcast %447 : vector<1x128xf32> to vector<8x128xf32>
    %483 = arith.addf %481, %482 : vector<8x128xf32>
    %484 = vector.broadcast %8 : vector<1x128xf32> to vector<8x128xf32>
    %485 = arith.mulf %483, %484 : vector<8x128xf32>
    %486 = arith.negf %485 : vector<8x128xf32>
    %487 = math.exp %486 : vector<8x128xf32>
    %cst_113 = arith.constant 1.000000e+00 : f32
    %488 = vector.broadcast %cst_113 : f32 to vector<8x128xf32>
    %489 = arith.addf %488, %487 : vector<8x128xf32>
    %490 = arith.divf %488, %489 : vector<8x128xf32>
    %491 = vector.broadcast %8 : vector<1x128xf32> to vector<8x128xf32>
    %492 = arith.mulf %490, %491 : vector<8x128xf32>
    %493 = vector.broadcast %11 : vector<1x128xf32> to vector<8x128xf32>
    %494 = arith.subf %492, %493 : vector<8x128xf32>
    %495 = vector.extract_strided_slice %494 {offsets = [0, 0], sizes = [8, 32], strides = [1, 1]} : vector<8x128xf32> to vector<8x32xf32>
    %496 = vector.extract_strided_slice %494 {offsets = [0, 32], sizes = [8, 32], strides = [1, 1]} : vector<8x128xf32> to vector<8x32xf32>
    %497 = vector.extract_strided_slice %494 {offsets = [0, 64], sizes = [8, 32], strides = [1, 1]} : vector<8x128xf32> to vector<8x32xf32>
    %498 = vector.extract_strided_slice %494 {offsets = [0, 96], sizes = [8, 32], strides = [1, 1]} : vector<8x128xf32> to vector<8x32xf32>
    %499 = arith.mulf %496, %433 : vector<8x32xf32>
    %500 = arith.mulf %495, %497 : vector<8x32xf32>
    %501 = arith.addf %499, %500 : vector<8x32xf32>
    %502 = math.tanh %501 : vector<8x32xf32>
    %503 = arith.mulf %498, %502 : vector<8x32xf32>
    %cst_114 = arith.constant dense<0.000000e+00> : vector<8x32xf32>
    %504 = tpu.matmul %503, %451, %cst_114 {dimension_numbers = #tpu.dot_dimension_numbers<[1], [0], [0], [1], [0, 0, 1, 1], [], []>} : vector<8x32xf32>, vector<32x32xf32>, vector<8x32xf32> -> vector<8x32xf32>
    %505 = vector.broadcast %452 : vector<1x32xf32> to vector<8x32xf32>
    %506 = arith.addf %504, %505 : vector<8x32xf32>
    %cst_115 = arith.constant dense<0.000000e+00> : vector<8x128xf32>
    %507 = tpu.matmul %503, %448, %cst_115 {dimension_numbers = #tpu.dot_dimension_numbers<[1], [0], [0], [1], [0, 0, 1, 1], [], []>} : vector<8x32xf32>, vector<32x128xf32>, vector<8x128xf32> -> vector<8x128xf32>
    %cst_116 = arith.constant dense<0.000000e+00> : vector<8x128xf32>
    %508 = tpu.matmul %478, %441, %cst_116 {dimension_numbers = #tpu.dot_dimension_numbers<[1], [0], [0], [1], [0, 0, 1, 1], [], []>} : vector<8x32xf32>, vector<32x128xf32>, vector<8x128xf32> -> vector<8x128xf32>
    %509 = arith.addf %507, %508 : vector<8x128xf32>
    %510 = vector.broadcast %450 : vector<1x128xf32> to vector<8x128xf32>
    %511 = arith.addf %509, %510 : vector<8x128xf32>
    %512 = vector.broadcast %8 : vector<1x128xf32> to vector<8x128xf32>
    %513 = arith.mulf %511, %512 : vector<8x128xf32>
    %514 = arith.negf %513 : vector<8x128xf32>
    %515 = math.exp %514 : vector<8x128xf32>
    %cst_117 = arith.constant 1.000000e+00 : f32
    %516 = vector.broadcast %cst_117 : f32 to vector<8x128xf32>
    %517 = arith.addf %516, %515 : vector<8x128xf32>
    %518 = arith.divf %516, %517 : vector<8x128xf32>
    %519 = vector.broadcast %8 : vector<1x128xf32> to vector<8x128xf32>
    %520 = arith.mulf %518, %519 : vector<8x128xf32>
    %521 = vector.broadcast %11 : vector<1x128xf32> to vector<8x128xf32>
    %522 = arith.subf %520, %521 : vector<8x128xf32>
    %523 = vector.extract_strided_slice %522 {offsets = [0, 0], sizes = [8, 32], strides = [1, 1]} : vector<8x128xf32> to vector<8x32xf32>
    %524 = vector.extract_strided_slice %522 {offsets = [0, 32], sizes = [8, 32], strides = [1, 1]} : vector<8x128xf32> to vector<8x32xf32>
    %525 = vector.extract_strided_slice %522 {offsets = [0, 64], sizes = [8, 32], strides = [1, 1]} : vector<8x128xf32> to vector<8x32xf32>
    %526 = vector.extract_strided_slice %522 {offsets = [0, 96], sizes = [8, 32], strides = [1, 1]} : vector<8x128xf32> to vector<8x32xf32>
    %527 = arith.mulf %524, %476 : vector<8x32xf32>
    %528 = arith.mulf %523, %525 : vector<8x32xf32>
    %529 = arith.addf %527, %528 : vector<8x32xf32>
    %530 = math.tanh %529 : vector<8x32xf32>
    %531 = arith.mulf %526, %530 : vector<8x32xf32>
    %cst_118 = arith.constant dense<0.000000e+00> : vector<8x128xf32>
    %532 = tpu.matmul %531, %439, %cst_118 {dimension_numbers = #tpu.dot_dimension_numbers<[1], [0], [0], [1], [0, 0, 1, 1], [], []>} : vector<8x32xf32>, vector<32x128xf32>, vector<8x128xf32> -> vector<8x128xf32>
    %cst_119 = arith.constant dense<0.000000e+00> : vector<8x128xf32>
    %533 = tpu.matmul %503, %443, %cst_119 {dimension_numbers = #tpu.dot_dimension_numbers<[1], [0], [0], [1], [0, 0, 1, 1], [], []>} : vector<8x32xf32>, vector<32x128xf32>, vector<8x128xf32> -> vector<8x128xf32>
    %534 = arith.addf %532, %533 : vector<8x128xf32>
    %535 = vector.broadcast %447 : vector<1x128xf32> to vector<8x128xf32>
    %536 = arith.addf %534, %535 : vector<8x128xf32>
    %537 = vector.broadcast %8 : vector<1x128xf32> to vector<8x128xf32>
    %538 = arith.mulf %536, %537 : vector<8x128xf32>
    %539 = arith.negf %538 : vector<8x128xf32>
    %540 = math.exp %539 : vector<8x128xf32>
    %cst_120 = arith.constant 1.000000e+00 : f32
    %541 = vector.broadcast %cst_120 : f32 to vector<8x128xf32>
    %542 = arith.addf %541, %540 : vector<8x128xf32>
    %543 = arith.divf %541, %542 : vector<8x128xf32>
    %544 = vector.broadcast %8 : vector<1x128xf32> to vector<8x128xf32>
    %545 = arith.mulf %543, %544 : vector<8x128xf32>
    %546 = vector.broadcast %11 : vector<1x128xf32> to vector<8x128xf32>
    %547 = arith.subf %545, %546 : vector<8x128xf32>
    %548 = vector.extract_strided_slice %547 {offsets = [0, 0], sizes = [8, 32], strides = [1, 1]} : vector<8x128xf32> to vector<8x32xf32>
    %549 = vector.extract_strided_slice %547 {offsets = [0, 32], sizes = [8, 32], strides = [1, 1]} : vector<8x128xf32> to vector<8x32xf32>
    %550 = vector.extract_strided_slice %547 {offsets = [0, 64], sizes = [8, 32], strides = [1, 1]} : vector<8x128xf32> to vector<8x32xf32>
    %551 = vector.extract_strided_slice %547 {offsets = [0, 96], sizes = [8, 32], strides = [1, 1]} : vector<8x128xf32> to vector<8x32xf32>
    %552 = arith.mulf %549, %501 : vector<8x32xf32>
    %553 = arith.mulf %548, %550 : vector<8x32xf32>
    %554 = arith.addf %552, %553 : vector<8x32xf32>
    %555 = math.tanh %554 : vector<8x32xf32>
    %556 = arith.mulf %551, %555 : vector<8x32xf32>
    %cst_121 = arith.constant dense<0.000000e+00> : vector<8x32xf32>
    %557 = tpu.matmul %556, %451, %cst_121 {dimension_numbers = #tpu.dot_dimension_numbers<[1], [0], [0], [1], [0, 0, 1, 1], [], []>} : vector<8x32xf32>, vector<32x32xf32>, vector<8x32xf32> -> vector<8x32xf32>
    %558 = vector.broadcast %452 : vector<1x32xf32> to vector<8x32xf32>
    %559 = arith.addf %557, %558 : vector<8x32xf32>
    %cst_122 = arith.constant dense<0.000000e+00> : vector<8x128xf32>
    %560 = tpu.matmul %556, %448, %cst_122 {dimension_numbers = #tpu.dot_dimension_numbers<[1], [0], [0], [1], [0, 0, 1, 1], [], []>} : vector<8x32xf32>, vector<32x128xf32>, vector<8x128xf32> -> vector<8x128xf32>
    %cst_123 = arith.constant dense<0.000000e+00> : vector<8x128xf32>
    %561 = tpu.matmul %531, %441, %cst_123 {dimension_numbers = #tpu.dot_dimension_numbers<[1], [0], [0], [1], [0, 0, 1, 1], [], []>} : vector<8x32xf32>, vector<32x128xf32>, vector<8x128xf32> -> vector<8x128xf32>
    %562 = arith.addf %560, %561 : vector<8x128xf32>
    %563 = vector.broadcast %450 : vector<1x128xf32> to vector<8x128xf32>
    %564 = arith.addf %562, %563 : vector<8x128xf32>
    %565 = vector.broadcast %8 : vector<1x128xf32> to vector<8x128xf32>
    %566 = arith.mulf %564, %565 : vector<8x128xf32>
    %567 = arith.negf %566 : vector<8x128xf32>
    %568 = math.exp %567 : vector<8x128xf32>
    %cst_124 = arith.constant 1.000000e+00 : f32
    %569 = vector.broadcast %cst_124 : f32 to vector<8x128xf32>
    %570 = arith.addf %569, %568 : vector<8x128xf32>
    %571 = arith.divf %569, %570 : vector<8x128xf32>
    %572 = vector.broadcast %8 : vector<1x128xf32> to vector<8x128xf32>
    %573 = arith.mulf %571, %572 : vector<8x128xf32>
    %574 = vector.broadcast %11 : vector<1x128xf32> to vector<8x128xf32>
    %575 = arith.subf %573, %574 : vector<8x128xf32>
    %576 = vector.extract_strided_slice %575 {offsets = [0, 0], sizes = [8, 32], strides = [1, 1]} : vector<8x128xf32> to vector<8x32xf32>
    %577 = vector.extract_strided_slice %575 {offsets = [0, 32], sizes = [8, 32], strides = [1, 1]} : vector<8x128xf32> to vector<8x32xf32>
    %578 = vector.extract_strided_slice %575 {offsets = [0, 64], sizes = [8, 32], strides = [1, 1]} : vector<8x128xf32> to vector<8x32xf32>
    %579 = vector.extract_strided_slice %575 {offsets = [0, 96], sizes = [8, 32], strides = [1, 1]} : vector<8x128xf32> to vector<8x32xf32>
    %580 = arith.mulf %577, %529 : vector<8x32xf32>
    %581 = arith.mulf %576, %578 : vector<8x32xf32>
    %582 = arith.addf %580, %581 : vector<8x32xf32>
    %583 = math.tanh %582 : vector<8x32xf32>
    %584 = arith.mulf %579, %583 : vector<8x32xf32>
    %cst_125 = arith.constant dense<0.000000e+00> : vector<8x128xf32>
    %585 = tpu.matmul %584, %439, %cst_125 {dimension_numbers = #tpu.dot_dimension_numbers<[1], [0], [0], [1], [0, 0, 1, 1], [], []>} : vector<8x32xf32>, vector<32x128xf32>, vector<8x128xf32> -> vector<8x128xf32>
    %cst_126 = arith.constant dense<0.000000e+00> : vector<8x128xf32>
    %586 = tpu.matmul %556, %443, %cst_126 {dimension_numbers = #tpu.dot_dimension_numbers<[1], [0], [0], [1], [0, 0, 1, 1], [], []>} : vector<8x32xf32>, vector<32x128xf32>, vector<8x128xf32> -> vector<8x128xf32>
    %587 = arith.addf %585, %586 : vector<8x128xf32>
    %588 = vector.broadcast %447 : vector<1x128xf32> to vector<8x128xf32>
    %589 = arith.addf %587, %588 : vector<8x128xf32>
    %590 = vector.broadcast %8 : vector<1x128xf32> to vector<8x128xf32>
    %591 = arith.mulf %589, %590 : vector<8x128xf32>
    %592 = arith.negf %591 : vector<8x128xf32>
    %593 = math.exp %592 : vector<8x128xf32>
    %cst_127 = arith.constant 1.000000e+00 : f32
    %594 = vector.broadcast %cst_127 : f32 to vector<8x128xf32>
    %595 = arith.addf %594, %593 : vector<8x128xf32>
    %596 = arith.divf %594, %595 : vector<8x128xf32>
    %597 = vector.broadcast %8 : vector<1x128xf32> to vector<8x128xf32>
    %598 = arith.mulf %596, %597 : vector<8x128xf32>
    %599 = vector.broadcast %11 : vector<1x128xf32> to vector<8x128xf32>
    %600 = arith.subf %598, %599 : vector<8x128xf32>
    %601 = vector.extract_strided_slice %600 {offsets = [0, 0], sizes = [8, 32], strides = [1, 1]} : vector<8x128xf32> to vector<8x32xf32>
    %602 = vector.extract_strided_slice %600 {offsets = [0, 32], sizes = [8, 32], strides = [1, 1]} : vector<8x128xf32> to vector<8x32xf32>
    %603 = vector.extract_strided_slice %600 {offsets = [0, 64], sizes = [8, 32], strides = [1, 1]} : vector<8x128xf32> to vector<8x32xf32>
    %604 = vector.extract_strided_slice %600 {offsets = [0, 96], sizes = [8, 32], strides = [1, 1]} : vector<8x128xf32> to vector<8x32xf32>
    %605 = arith.mulf %602, %554 : vector<8x32xf32>
    %606 = arith.mulf %601, %603 : vector<8x32xf32>
    %607 = arith.addf %605, %606 : vector<8x32xf32>
    %608 = math.tanh %607 : vector<8x32xf32>
    %609 = arith.mulf %604, %608 : vector<8x32xf32>
    %cst_128 = arith.constant dense<0.000000e+00> : vector<8x32xf32>
    %610 = tpu.matmul %609, %451, %cst_128 {dimension_numbers = #tpu.dot_dimension_numbers<[1], [0], [0], [1], [0, 0, 1, 1], [], []>} : vector<8x32xf32>, vector<32x32xf32>, vector<8x32xf32> -> vector<8x32xf32>
    %611 = vector.broadcast %452 : vector<1x32xf32> to vector<8x32xf32>
    %612 = arith.addf %610, %611 : vector<8x32xf32>
    %cst_129 = arith.constant dense<0.000000e+00> : vector<8x128xf32>
    %613 = tpu.matmul %609, %448, %cst_129 {dimension_numbers = #tpu.dot_dimension_numbers<[1], [0], [0], [1], [0, 0, 1, 1], [], []>} : vector<8x32xf32>, vector<32x128xf32>, vector<8x128xf32> -> vector<8x128xf32>
    %cst_130 = arith.constant dense<0.000000e+00> : vector<8x128xf32>
    %614 = tpu.matmul %584, %441, %cst_130 {dimension_numbers = #tpu.dot_dimension_numbers<[1], [0], [0], [1], [0, 0, 1, 1], [], []>} : vector<8x32xf32>, vector<32x128xf32>, vector<8x128xf32> -> vector<8x128xf32>
    %615 = arith.addf %613, %614 : vector<8x128xf32>
    %616 = vector.broadcast %450 : vector<1x128xf32> to vector<8x128xf32>
    %617 = arith.addf %615, %616 : vector<8x128xf32>
    %618 = vector.broadcast %8 : vector<1x128xf32> to vector<8x128xf32>
    %619 = arith.mulf %617, %618 : vector<8x128xf32>
    %620 = arith.negf %619 : vector<8x128xf32>
    %621 = math.exp %620 : vector<8x128xf32>
    %cst_131 = arith.constant 1.000000e+00 : f32
    %622 = vector.broadcast %cst_131 : f32 to vector<8x128xf32>
    %623 = arith.addf %622, %621 : vector<8x128xf32>
    %624 = arith.divf %622, %623 : vector<8x128xf32>
    %625 = vector.broadcast %8 : vector<1x128xf32> to vector<8x128xf32>
    %626 = arith.mulf %624, %625 : vector<8x128xf32>
    %627 = vector.broadcast %11 : vector<1x128xf32> to vector<8x128xf32>
    %628 = arith.subf %626, %627 : vector<8x128xf32>
    %629 = vector.extract_strided_slice %628 {offsets = [0, 0], sizes = [8, 32], strides = [1, 1]} : vector<8x128xf32> to vector<8x32xf32>
    %630 = vector.extract_strided_slice %628 {offsets = [0, 32], sizes = [8, 32], strides = [1, 1]} : vector<8x128xf32> to vector<8x32xf32>
    %631 = vector.extract_strided_slice %628 {offsets = [0, 64], sizes = [8, 32], strides = [1, 1]} : vector<8x128xf32> to vector<8x32xf32>
    %632 = vector.extract_strided_slice %628 {offsets = [0, 96], sizes = [8, 32], strides = [1, 1]} : vector<8x128xf32> to vector<8x32xf32>
    %633 = arith.mulf %630, %582 : vector<8x32xf32>
    %634 = arith.mulf %629, %631 : vector<8x32xf32>
    %635 = arith.addf %633, %634 : vector<8x32xf32>
    %636 = math.tanh %635 : vector<8x32xf32>
    %637 = arith.mulf %632, %636 : vector<8x32xf32>
    %cst_132 = arith.constant dense<0.000000e+00> : vector<8x128xf32>
    %638 = tpu.matmul %637, %439, %cst_132 {dimension_numbers = #tpu.dot_dimension_numbers<[1], [0], [0], [1], [0, 0, 1, 1], [], []>} : vector<8x32xf32>, vector<32x128xf32>, vector<8x128xf32> -> vector<8x128xf32>
    %cst_133 = arith.constant dense<0.000000e+00> : vector<8x128xf32>
    %639 = tpu.matmul %609, %443, %cst_133 {dimension_numbers = #tpu.dot_dimension_numbers<[1], [0], [0], [1], [0, 0, 1, 1], [], []>} : vector<8x32xf32>, vector<32x128xf32>, vector<8x128xf32> -> vector<8x128xf32>
    %640 = arith.addf %638, %639 : vector<8x128xf32>
    %641 = vector.broadcast %447 : vector<1x128xf32> to vector<8x128xf32>
    %642 = arith.addf %640, %641 : vector<8x128xf32>
    %643 = vector.broadcast %8 : vector<1x128xf32> to vector<8x128xf32>
    %644 = arith.mulf %642, %643 : vector<8x128xf32>
    %645 = arith.negf %644 : vector<8x128xf32>
    %646 = math.exp %645 : vector<8x128xf32>
    %cst_134 = arith.constant 1.000000e+00 : f32
    %647 = vector.broadcast %cst_134 : f32 to vector<8x128xf32>
    %648 = arith.addf %647, %646 : vector<8x128xf32>
    %649 = arith.divf %647, %648 : vector<8x128xf32>
    %650 = vector.broadcast %8 : vector<1x128xf32> to vector<8x128xf32>
    %651 = arith.mulf %649, %650 : vector<8x128xf32>
    %652 = vector.broadcast %11 : vector<1x128xf32> to vector<8x128xf32>
    %653 = arith.subf %651, %652 : vector<8x128xf32>
    %654 = vector.extract_strided_slice %653 {offsets = [0, 0], sizes = [8, 32], strides = [1, 1]} : vector<8x128xf32> to vector<8x32xf32>
    %655 = vector.extract_strided_slice %653 {offsets = [0, 32], sizes = [8, 32], strides = [1, 1]} : vector<8x128xf32> to vector<8x32xf32>
    %656 = vector.extract_strided_slice %653 {offsets = [0, 64], sizes = [8, 32], strides = [1, 1]} : vector<8x128xf32> to vector<8x32xf32>
    %657 = vector.extract_strided_slice %653 {offsets = [0, 96], sizes = [8, 32], strides = [1, 1]} : vector<8x128xf32> to vector<8x32xf32>
    %658 = arith.mulf %655, %607 : vector<8x32xf32>
    %659 = arith.mulf %654, %656 : vector<8x32xf32>
    %660 = arith.addf %658, %659 : vector<8x32xf32>
    %661 = math.tanh %660 : vector<8x32xf32>
    %662 = arith.mulf %657, %661 : vector<8x32xf32>
    %cst_135 = arith.constant dense<0.000000e+00> : vector<8x32xf32>
    %663 = tpu.matmul %662, %451, %cst_135 {dimension_numbers = #tpu.dot_dimension_numbers<[1], [0], [0], [1], [0, 0, 1, 1], [], []>} : vector<8x32xf32>, vector<32x32xf32>, vector<8x32xf32> -> vector<8x32xf32>
    %664 = vector.broadcast %452 : vector<1x32xf32> to vector<8x32xf32>
    %665 = arith.addf %663, %664 : vector<8x32xf32>
    %666 = tpu.concatenate %506, %559, %612, %665 in 1 : vector<8x32xf32>, vector<8x32xf32>, vector<8x32xf32>, vector<8x32xf32> -> vector<8x128xf32>
    %c0_136 = arith.constant 0 : index
    %c0_137 = arith.constant 0 : index
    %667 = vector.load %arg12[%c0_136, %c0_137] : memref<8x128xf32, #tpu.memory_space<vmem>>, vector<8x128xf32>
    tpu.vector_store %arg12[%c0_136, %c0_137], %666 {strides = array<i32>} : memref<8x128xf32, #tpu.memory_space<vmem>>, vector<8x128xf32>,
    return
  }
  func.func @transform_0(%arg0: i32) -> (i32, i32) {
    %c0_i32 = arith.constant 0 : i32
    %c0_i32_0 = arith.constant 0 : i32
    return %arg0, %c0_i32 : i32, i32
  }
  func.func @transform_1(%arg0: i32) -> (i32, i32, i32) {
    %c0_i32 = arith.constant 0 : i32
    %c0_i32_0 = arith.constant 0 : i32
    %c0_i32_1 = arith.constant 0 : i32
    %c0_i32_2 = arith.constant 0 : i32
    return %c0_i32, %c0_i32_0, %c0_i32_1 : i32, i32, i32
  }
  func.func @transform_2(%arg0: i32) -> (i32, i32, i32) {
    %c0_i32 = arith.constant 0 : i32
    %c0_i32_0 = arith.constant 0 : i32
    %c0_i32_1 = arith.constant 0 : i32
    %c0_i32_2 = arith.constant 0 : i32
    return %c0_i32, %c0_i32_0, %c0_i32_1 : i32, i32, i32
  }
  func.func @transform_3(%arg0: i32) -> (i32, i32, i32) {
    %c0_i32 = arith.constant 0 : i32
    %c0_i32_0 = arith.constant 0 : i32
    %c0_i32_1 = arith.constant 0 : i32
    %c0_i32_2 = arith.constant 0 : i32
    return %c0_i32, %c0_i32_0, %c0_i32_1 : i32, i32, i32
  }
  func.func @transform_4(%arg0: i32) -> (i32, i32, i32) {
    %c0_i32 = arith.constant 0 : i32
    %c0_i32_0 = arith.constant 0 : i32
    %c0_i32_1 = arith.constant 0 : i32
    %c0_i32_2 = arith.constant 0 : i32
    return %c0_i32, %c0_i32_0, %c0_i32_1 : i32, i32, i32
  }
  func.func @transform_5(%arg0: i32) -> (i32, i32, i32) {
    %c0_i32 = arith.constant 0 : i32
    %c0_i32_0 = arith.constant 0 : i32
    %c0_i32_1 = arith.constant 0 : i32
    %c0_i32_2 = arith.constant 0 : i32
    return %c0_i32, %c0_i32_0, %c0_i32_1 : i32, i32, i32
  }
  func.func @transform_6(%arg0: i32) -> (i32, i32, i32) {
    %c0_i32 = arith.constant 0 : i32
    %c0_i32_0 = arith.constant 0 : i32
    %c0_i32_1 = arith.constant 0 : i32
    %c0_i32_2 = arith.constant 0 : i32
    return %c0_i32, %c0_i32_0, %c0_i32_1 : i32, i32, i32
  }
  func.func @transform_7(%arg0: i32) -> (i32, i32) {
    %c0_i32 = arith.constant 0 : i32
    %c0_i32_0 = arith.constant 0 : i32
    %c0_i32_1 = arith.constant 0 : i32
    return %c0_i32, %c0_i32_0 : i32, i32
  }
  func.func @transform_8(%arg0: i32) -> (i32, i32) {
    %c0_i32 = arith.constant 0 : i32
    %c0_i32_0 = arith.constant 0 : i32
    %c0_i32_1 = arith.constant 0 : i32
    return %c0_i32, %c0_i32_0 : i32, i32
  }
  func.func @transform_9(%arg0: i32) -> (i32, i32) {
    %c0_i32 = arith.constant 0 : i32
    %c0_i32_0 = arith.constant 0 : i32
    %c0_i32_1 = arith.constant 0 : i32
    return %c0_i32, %c0_i32_0 : i32, i32
  }
  func.func @transform_10(%arg0: i32) -> (i32, i32) {
    %c0_i32 = arith.constant 0 : i32
    %c0_i32_0 = arith.constant 0 : i32
    %c0_i32_1 = arith.constant 0 : i32
    return %c0_i32, %c0_i32_0 : i32, i32
  }
  func.func @transform_11(%arg0: i32) -> (i32, i32) {
    %c0_i32 = arith.constant 0 : i32
    %c0_i32_0 = arith.constant 0 : i32
    return %arg0, %c0_i32 : i32, i32
  }
}

</mosaic_0001>

<bundles_post_ra>
// kernel: tpu_custom_call.1
= control target key start
LH: loop header
LB: loop body
LE: loop exit
PB: predicated region body
PF: predicated region fallthrough
CT: control target
= control target key end

     0   :  { %16 = vsyncpa [#allocation3], 0  ;;  %s7134_s0 = inlined_call_operand.hbm [shape: f32[8,256], index: 0, kind: input, shape index: {}]   ;;  %s7135_s1 = inlined_call_operand.hbm [shape: f32[2,32,128], index: 1, kind: input, shape index: {}]   ;;  %s7136_s2 = inlined_call_operand.hbm [shape: f32[2,32,128], index: 2, kind: input, shape index: {}]   ;;  %s7137_s3 = inlined_call_operand.vmem [shape: f32[2,1,128], index: 3, kind: input, shape index: {}]   ;;  %s7138_s4 = inlined_call_operand.hbm [shape: f32[2,32,128], index: 4, kind: input, shape index: {}]   ;;  %s7139_s5 = inlined_call_operand.hbm [shape: f32[2,32,128], index: 5, kind: input, shape index: {}]   ;;  %s7140_s6 = inlined_call_operand.vmem [shape: f32[2,1,128], index: 6, kind: input, shape index: {}]   ;;  %s7141_s7 = inlined_call_operand.hbm [shape: f32[32,32], index: 7, kind: input, shape index: {}]   ;;  %s7142_s8 = inlined_call_operand.vmem [shape: f32[1,32], index: 8, kind: input, shape index: {}]   ;;  %s7143_s9 = inlined_call_operand.hbm [shape: f32[32,128], index: 9, kind: input, shape index: {}]   ;;  %s7144_s10 = inlined_call_operand.vmem [shape: f32[1,128], index: 10, kind: input, shape index: {}]   ;;  %s7145_s11 = inlined_call_operand.hbm [shape: f32[8,128], index: 11, kind: output, shape index: {}]  }
   0x1   :  { %17 = vsyncpa [#allocation6], 0 }
   0x2   :  { %18 = vsyncpa [#allocation9], 0 }
   0x3   :  { %19 = vsyncpa [#allocation12], 0 }
   0x4   :  { %20 = vsyncpa [#allocation4], 0  ;;  %s5968_s17 = smov [#allocation5]  }
   0x5   :  { %s36_s18 = sshll.u32 %s5968_s17, 4  ;;  %s37_s18 = int_to_ptr.vmem [resolvable:$true] %s36_s18 }
   0x6   :  { %s5806_s19 = scalar_lea.vmem %s37_s18, 1024  ;;  %p5811_p1 = scmp.lt.s32.totalorder %s37_s18, %s37_s18 }
   0x7   :  { %p5807_p0 = scmp.ne.s32.totalorder %s37_s18, %s5806_s19  ;;  %p5812_p2 = scmp.lt.s32.totalorder %s5806_s19, %s5806_s19 }
   0x9   :  { %p5813_p3 = por %p5812_p2, %p5811_p1 }
   0xb   :  { %p5814_p4 = pnand %p5813_p3, %p5807_p0 }
   0xd   :  { %5817 = shalt.err (!%p5814_p4)
}
   0xe   :  { %s5969_s20 = smov 128   ;;  %s5970_s21 = smov 8  }
   0xf   :  { %42 = dma.hbm_to_vmem [thread:$0]  %s7135_s1, 1024, %s37_s18, [#allocation6], %s5969_s20, %s5969_s20, %s5970_s21  }
  0x10   :  { %s5971_s24 = smov [#allocation8]   ;;  %s5972_s26 = smov [#allocation11]  }
  0x11   :  { %s62_s25 = sshll.u32 %s5971_s24, 4  ;;  %s88_s27 = sshll.u32 %s5972_s26, 4  ;;  %s63_s25 = int_to_ptr.vmem [resolvable:$true] %s62_s25  ;;  %s89_s27 = int_to_ptr.vmem [resolvable:$true] %s88_s27 }
  0x12   :  { %s5826_s28 = scalar_lea.vmem %s63_s25, 1024  ;;  %p5831_p6 = scmp.lt.s32.totalorder %s63_s25, %s63_s25 }
  0x13   :  { %p5827_p5 = scmp.ne.s32.totalorder %s63_s25, %s5826_s28  ;;  %p5832_p7 = scmp.lt.s32.totalorder %s5826_s28, %s5826_s28 }
  0x15   :  { %p5833_p8 = por %p5832_p7, %p5831_p6 }
  0x17   :  { %p5834_p9 = pnand %p5833_p8, %p5827_p5 }
  0x19   :  { %5837 = shalt.err (!%p5834_p9)
}
  0x1a   :  { %68 = dma.hbm_to_vmem [thread:$0]  %s7138_s4, 1024, %s63_s25, [#allocation9], %s5969_s20, %s5969_s20, %s5970_s21  }
  0x1b   :  { %s5846_s1 = scalar_lea.vmem %s89_s27, 512  ;;  %p5851_p11 = scmp.lt.s32.totalorder %s89_s27, %s89_s27 }
  0x1c   :  { %p5847_p10 = scmp.ne.s32.totalorder %s89_s27, %s5846_s1  ;;  %p5852_p12 = scmp.lt.s32.totalorder %s5846_s1, %s5846_s1 }
  0x1e   :  { %p5853_p13 = por %p5852_p12, %p5851_p11 }
  0x20   :  { %p5854_p0 = pnand %p5853_p13, %p5847_p10 }
  0x22   :  { %5857 = shalt.err (!%p5854_p0)
}
  0x23   :  { %94 = dma.hbm_to_vmem [thread:$0]  %s7141_s7, 512, %s89_s27, [#allocation12], %s5969_s20, %s5969_s20, %s5970_s21  }
  0x24   :  { %s5973_s14 = smov [#allocation2]   ;;  %s5974_s16 = smov [#allocation7]  }
  0x25   :  { %s27_s15 = sshll.u32 %s5973_s14, 4  ;;  %s48_s4 = sshll.u32 %s5974_s16, 4  ;;  %s28_s15 = int_to_ptr.vmem [resolvable:$true] %s27_s15  ;;  %s49_s4 = int_to_ptr.vmem [resolvable:$true] %s48_s4 }
  0x26   :  { %s5866_s17 = scalar_lea.vmem %s28_s15, 256  ;;  %p5871_p2 = scmp.lt.s32.totalorder %s28_s15, %s28_s15 }
  0x27   :  { %p5867_p1 = scmp.ne.s32.totalorder %s28_s15, %s5866_s17  ;;  %p5872_p3 = scmp.lt.s32.totalorder %s5866_s17, %s5866_s17 }
  0x29   :  { %p5873_p4 = por %p5872_p3, %p5871_p2 }
  0x2b   :  { %p5874_p5 = pnand %p5873_p4, %p5867_p1 }
  0x2d   :  { %5877 = shalt.err (!%p5874_p5)
}
  0x2e   :  { %30 = dma.hbm_to_vmem [thread:$0]  %s7134_s0, 256, %s28_s15, [#allocation3]  }
  0x2f   :  { %s5886_s22 = scalar_lea.vmem %s49_s4, 1024  ;;  %p5891_p7 = scmp.lt.s32.totalorder %s49_s4, %s49_s4 }
  0x30   :  { %p5887_p6 = scmp.ne.s32.totalorder %s49_s4, %s5886_s22  ;;  %p5892_p8 = scmp.lt.s32.totalorder %s5886_s22, %s5886_s22 }
  0x32   :  { %p5893_p9 = por %p5892_p8, %p5891_p7 }
  0x34   :  { %p5894_p10 = pnand %p5893_p9, %p5887_p6 }
  0x36   :  { %5897 = shalt.err (!%p5894_p10)
}
  0x37   :  { %54 = dma.hbm_to_vmem [thread:$0]  %s7136_s2, 1024, %s49_s4, [#allocation6], %s5969_s20, %s5969_s20, %s5970_s21  }
  0x38   :  { %s5975_s24 = smov [#allocation10]   ;;  %s5976_s26 = smov [#allocation13]  }
  0x39   :  { %s74_s25 = sshll.u32 %s5975_s24, 4  ;;  %s102_s0 = sshll.u32 %s5976_s26, 4  ;;  %s75_s25 = int_to_ptr.vmem [resolvable:$true] %s74_s25  ;;  %s103_s0 = int_to_ptr.vmem [resolvable:$true] %s102_s0 }
  0x3a   :  { %s5906_s27 = scalar_lea.vmem %s75_s25, 1024  ;;  %p5911_p12 = scmp.lt.s32.totalorder %s75_s25, %s75_s25 }
  0x3b   :  { %p5907_p11 = scmp.ne.s32.totalorder %s75_s25, %s5906_s27  ;;  %p5912_p13 = scmp.lt.s32.totalorder %s5906_s27, %s5906_s27 }
  0x3d   :  { %p5913_p0 = por %p5912_p13, %p5911_p12 }
  0x3f   :  { %p5914_p1 = pnand %p5913_p0, %p5907_p11 }
  0x41   :  { %5917 = shalt.err (!%p5914_p1)
}
  0x42   :  { %80 = dma.hbm_to_vmem [thread:$0]  %s7139_s5, 1024, %s75_s25, [#allocation9], %s5969_s20, %s5969_s20, %s5970_s21  }
  0x43   :  { %s5926_s2 = scalar_lea.vmem %s103_s0, 512  ;;  %p5931_p3 = scmp.lt.s32.totalorder %s103_s0, %s103_s0 }
  0x44   :  { %p5927_p2 = scmp.ne.s32.totalorder %s103_s0, %s5926_s2  ;;  %p5932_p4 = scmp.lt.s32.totalorder %s5926_s2, %s5926_s2 }
  0x46   :  { %p5933_p5 = por %p5932_p4, %p5931_p3 }
  0x48   :  { %p5934_p6 = pnand %p5933_p5, %p5927_p2 }
  0x4a   :  { %5937 = shalt.err (!%p5934_p6)
}
  0x4b   :  { %108 = dma.hbm_to_vmem [thread:$0]  %s7143_s9, 512, %s103_s0, [#allocation12], %s5969_s20, %s5969_s20, %s5970_s21  }
  0x4c   :  { %5958 = dma.done.wait [#allocation3], 256  }
  0x4d   :  { %5959 = vsyncadd [#allocation3], 4294967040 }
  0x4e   :  { %5960 = dma.done.wait [#allocation6], 2048  }
  0x4f   :  { %5961 = vsyncadd [#allocation6], 4294965248 }
  0x50   :  { %5962 = dma.done.wait [#allocation9], 2048  }
  0x51   :  { %5963 = vsyncadd [#allocation9], 4294965248 }
  0x52   :  { %5964 = dma.done.wait [#allocation12], 1024  }
  0x53   :  { %5965 = vsyncadd [#allocation12], 4294966272  ;;  %v5977_v0 = vmov 0.0   ;;  %vm5978_vm0 = vmmov 0   ;;  %v6089_v1 = vld [vmem:[#allocation7 + $0x18] sm:$0xff]  ;;  %v6093_v3 = vld [vmem:[#allocation7 + $0x10] sm:$0xff]  ;;  %v132_v10 = vlaneseq }
  0x54   :  { %5048 = vmatprep.subr.mxu0 %v5977_v0  ;;  %5059 = vmatprep.subr.mxu1 %v5977_v0  ;;  %v6091_v2 = vld [vmem:[#allocation5 + $0x18] sm:$0xff]  ;;  %v6097_v4 = vld [vmem:[#allocation5 + $0x10] sm:$0xff]  ;;  %v6101_v5 = vld [vmem:[#allocation7 + $0x8] sm:$0xff]  ;;  %vm161_vm1 = vcmask 261120   ;;  %v5979_v17 = vmov 1.0   ;;  %s5980_s20 = smov 64  }
  0x55   :  { %5056 = vmatprep.mubr.msk.f32.mxu0 %vm5978_vm0, %v5977_v0  ;;  %5067 = vmatprep.mubr.msk.f32.mxu1 %vm5978_vm0, %v5977_v0  ;;  %v6103_v6 = vld [vmem:[#allocation5 + $0x8] sm:$0xff]  ;;  %v6109_v7 = vld [vmem:[#allocation7] sm:$0xff]  ;;  %v6115_v9 = vld [vmem:[#allocation2] sm:$0xff]  ;;  %v133_v11 = vand.u32 127, %v132_v10  ;;  %s5981_s21 = smov 32   ;;  %s5982_s12 = smov 96  }
  0x56   :  { %5049 = vmatpush3.msra.mxu0 %v6089_v1  ;;  %5060 = vmatpush3.msra.mxu1 %v6091_v2  ;;  %v6111_v8 = vld [vmem:[#allocation5] sm:$0xff]  ;;  %v6138_v14 = vld [vmem:[%s7137_s3] ss:$0 sm:$0xff]  ;;  %v6158_v35 = vld [vmem:[#allocation7 + $0x38] sm:$0xff]  ;;  %vm4685_vm5 = vcmask 523264   ;;  %vm4687_vm6 = vcmask 785408  }
  0x57   :  { %5050 = vmatprep.subr.mxu0 %v5977_v0  ;;  %5061 = vmatprep.subr.mxu1 %v5977_v0  ;;  %vm134_vm2 = vcmp.ge.s32.totalorder %v133_v11, 64  ;;  %vm135_vm3 = vcmp.lt.s32.totalorder %v133_v11, 96  ;;  %v6160_v36 = vld [vmem:[#allocation7 + $0x30] sm:$0xff]  ;;  %v6165_v37 = vld [vmem:[#allocation5 + $0x38] sm:$0xff]  ;;  %v6170_v39 = vld [vmem:[#allocation7 + $0x28] sm:$0xff] }
  0x58   :  { %5051 = vmatpush3.msra.mxu0 %v6093_v3  ;;  %5062 = vmatpush3.msra.mxu1 %v6097_v4  ;;  %vm6131_vm4 = vmand %vm134_vm2, %vm135_vm3  ;;  %v6167_v38 = vld [vmem:[#allocation5 + $0x30] sm:$0xff]  ;;  %v6175_v40 = vld [vmem:[#allocation5 + $0x28] sm:$0xff] }
  0x59   :  { %5052 = vmatprep.subr.mxu0 %v5977_v0  ;;  %5063 = vmatprep.subr.mxu1 %v5977_v0  ;;  %v6142_v18 = vsel %vm6131_vm4, 2.0, %v5979_v17  ;;  %v6149_v27 = vsel %vm6131_vm4, 1.0, %v5977_v0  ;;  %v6178_v41 = vld [vmem:[#allocation7 + $0x20] sm:$0xff]  ;;  %v6241_v50 = vld [vmem:[%s7137_s3 + $0x1] ss:$0 sm:$0xff] }
  0x5a   :  { %5053 = vmatpush3.msra.mxu0 %v6101_v5  ;;  %5064 = vmatpush3.msra.mxu1 %v6103_v6  ;;  %v6185_v42 = vld [vmem:[#allocation5 + $0x20] sm:$0xff] }
  0x5b   :  { %5054 = vmatprep.subr.mxu0 %v5977_v0  ;;  %5065 = vmatprep.subr.mxu1 %v5977_v0 }
  0x5c   :  { %5055 = vmatpush3.msra.mxu0 %v6109_v7  ;;  %5066 = vmatpush3.msra.mxu1 %v6111_v8 }
  0x5d   :  { %5057 = vmatmul.mubr.f32.vlgmr.msra.gmra.mxu0 %v5977_v0  ;;  %5068 = vmatmul.mubr.msk.f32.vlgmr.msra.gmra.mxu1 %vm161_vm1, %v6115_v9 }
  0x5e   :  { %5070 = vmatprep.subr.mxu0 %v5977_v0  ;;  %5081 = vmatprep.subr.mxu1 %v5977_v0 }
  0x5f   :  { %5078 = vmatprep.mubr.msk.f32.mxu0 %vm5978_vm0, %v5977_v0  ;;  %5089 = vmatprep.mubr.msk.f32.mxu1 %vm5978_vm0, %v5977_v0 }
  0x60   :  { %5071 = vmatpush3.msra.mxu0 %v6158_v35  ;;  %5082 = vmatpush3.msra.mxu1 %v6165_v37 }
  0x61   :  { %5072 = vmatprep.subr.mxu0 %v5977_v0  ;;  %5083 = vmatprep.subr.mxu1 %v5977_v0 }
  0x62   :  { %5073 = vmatpush3.msra.mxu0 %v6160_v36  ;;  %5084 = vmatpush3.msra.mxu1 %v6167_v38 }
  0x63   :  { %5074 = vmatprep.subr.mxu0 %v5977_v0  ;;  %5085 = vmatprep.subr.mxu1 %v5977_v0 }
  0x64   :  { %5075 = vmatpush3.msra.mxu0 %v6170_v39  ;;  %5086 = vmatpush3.msra.mxu1 %v6175_v40 }
  0x65   :  { %5076 = vmatprep.subr.mxu0 %v5977_v0  ;;  %5087 = vmatprep.subr.mxu1 %v5977_v0 }
  0x66   :  { %5077 = vmatpush3.msra.mxu0 %v6178_v41  ;;  %5088 = vmatpush3.msra.mxu1 %v6185_v42 }
  0x67   :  { %5092 = vmatprep.subr.mxu0 %v5977_v0  ;;  %5079 = vmatmul.mubr.f32.vlgmr.msra.gmra.mxu0 %v5977_v0 }
  0x68   :  { %5093 = vmatpush3.msra.mxu0 %v6089_v1  ;;  %5100 = vmatprep.mubr.msk.f32.mxu0 %vm5978_vm0, %v5977_v0 }
  0x69   :  { %5094 = vmatprep.subr.mxu0 %v5977_v0  ;;  %5103 = vmatprep.subr.mxu1 %v5977_v0 }
  0x6a   :  { %5095 = vmatpush3.msra.mxu0 %v6093_v3 }
  0x6b   :  { %5096 = vmatprep.subr.mxu0 %v5977_v0 }
  0x6c   :  { %5097 = vmatpush3.msra.mxu0 %v6101_v5 }
  0x6d   :  { %5098 = vmatprep.subr.mxu0 %v5977_v0 }
  0x6e   :  { %5099 = vmatpush3.msra.mxu0 %v6109_v7 }
  0x6f   :  { %5114 = vmatprep.subr.mxu0 %v5977_v0 }
 0x11d   :  { %v231_v13 = vpop.f32.mrf.mxu0  ;;  %v304_v15 = vpop.f32.mrf.mxu1 }
 0x11e   :  { %v305_v16 = vadd.f32 %v304_v15, %v231_v13 }
 0x11f   :  { %v5058_v19 = vpop.f32.mrf.mxu0  ;;  %v5069_v20 = vpop.f32.mrf.mxu1 }
 0x120   :  { %v314_v21 = vadd.f32 %v6138_v14, %v305_v16 }
 0x122   :  { %v315_v22 = vmul.f32 %v314_v21, %v6142_v18 }
 0x124   :  { %v4711_v23 = vmul.f32 -1.442695, %v315_v22 }
 0x126   :  { %5636 = vpow2.f32 %v4711_v23 }
 0x127   :  { %v407_v46 = vpop.f32.mrf.mxu0 }
 0x129   :  { %v5080_v47 = vpop.f32.mrf.mxu0 }
 0x133   :  { %v5637_v24 = vpop.eup %5636 }
 0x134   :  { %v319_v25 = vadd.f32 1.0, %v5637_v24 }
 0x136   :  { %5638 = vrcp.f32 %v319_v25 }
 0x143   :  { %v5639_v26 = vpop.eup %5638 }
 0x144   :  { %v322_v28 = vmul.f32 %v5639_v26, %v6142_v18 }
 0x146   :  { %v323_v29 = vsub.f32 %v322_v28, %v6149_v27 }
 0x148   :  { %326 = vrot.lane.b32.xlu0 %v323_v29, %s5980_s20  ;;  %v324_v32 = vmul.f32 0.0, %v323_v29 }
 0x1ba   :  { %v327_v30 = vpop.permute.xlu0 %326 }
 0x1bb   :  { %v329_v31 = vmul.f32 %v327_v30, %v323_v29 }
 0x1bd   :  { %331 = vrot.lane.b32.xlu0 %v329_v31, %s5981_s21 }
 0x1c1   :  { %589 = vrot.lane.b32.xlu0 %v6115_v9, %s5982_s12 }
 0x22f   :  { %v332_v33 = vpop.permute.xlu0 %331 }
 0x230   :  { %v6155_v34 = vadd.f32 %v332_v33, %v324_v32 }
 0x232   :  { %5640 = vtanh.f32 %v6155_v34 }
 0x233   :  { %v590_v49 = vpop.permute.xlu0 %589 }
 0x23f   :  { %v5641_v43 = vpop.eup %5640 }
 0x240   :  { %337 = vrot.lane.b32.xlu1 %v5641_v43, %s5980_s20 }
 0x2b2   :  { %v338_v44 = vpop.permute.xlu1 %337 }
 0x2b3   :  { %v340_v45 = vmul.f32 %v338_v44, %v323_v29 }
 0x2b5   :  { %412 = vrot.lane.b32.xlu1 %v340_v45, %s5981_s21 }
 0x327   :  { %v413_v48 = vpop.permute.xlu1 %412 }
 0x328   :  { %5090 = vmatmul.mubr.msk.f32.vlgmr.msra.gmra.mxu1 %vm161_vm1, %v413_v48  ;;  %5101 = vmatmul.mubr.msk.f32.vlgmr.msra.gmra.mxu0 %vm161_vm1, %v413_v48 }
 0x329   :  { %5104 = vmatpush3.msra.mxu1 %v6091_v2  ;;  %5111 = vmatprep.mubr.msk.f32.mxu1 %vm5978_vm0, %v5977_v0 }
 0x32a   :  { %5105 = vmatprep.subr.mxu1 %v5977_v0  ;;  %5115 = vmatpush3.msra.mxu0 %v6158_v35 }
 0x32b   :  { %5106 = vmatpush3.msra.mxu1 %v6097_v4  ;;  %5116 = vmatprep.subr.mxu0 %v5977_v0 }
 0x32c   :  { %5107 = vmatprep.subr.mxu1 %v5977_v0  ;;  %5117 = vmatpush3.msra.mxu0 %v6160_v36 }
 0x32d   :  { %5108 = vmatpush3.msra.mxu1 %v6103_v6  ;;  %5118 = vmatprep.subr.mxu0 %v5977_v0 }
 0x32e   :  { %5109 = vmatprep.subr.mxu1 %v5977_v0  ;;  %5119 = vmatpush3.msra.mxu0 %v6170_v39 }
 0x32f   :  { %5110 = vmatpush3.msra.mxu1 %v6111_v8  ;;  %5120 = vmatprep.subr.mxu0 %v5977_v0 }
 0x330   :  { %5112 = vmatmul.mubr.msk.f32.vlgmr.msra.gmra.mxu1 %vm161_vm1, %v590_v49  ;;  %5121 = vmatpush3.msra.mxu0 %v6178_v41 }
 0x331   :  { %5125 = vmatprep.subr.mxu1 %v5977_v0  ;;  %5122 = vmatprep.mubr.msk.f32.mxu0 %vm5978_vm0, %v5977_v0 }
 0x332   :  { %5126 = vmatpush3.msra.mxu1 %v6165_v37  ;;  %5136 = vmatprep.subr.mxu0 %v5977_v0 }
 0x333   :  { %5127 = vmatprep.subr.mxu1 %v5977_v0  ;;  %5133 = vmatprep.mubr.msk.f32.mxu1 %vm5978_vm0, %v5977_v0 }
 0x334   :  { %5128 = vmatpush3.msra.mxu1 %v6167_v38 }
 0x335   :  { %5129 = vmatprep.subr.mxu1 %v5977_v0 }
 0x336   :  { %5130 = vmatpush3.msra.mxu1 %v6175_v40 }
 0x337   :  { %5131 = vmatprep.subr.mxu1 %v5977_v0 }
 0x338   :  { %5132 = vmatpush3.msra.mxu1 %v6185_v42 }
 0x339   :  { %5147 = vmatprep.subr.mxu1 %v5977_v0 }
 0x3e8   :  { %v482_v51 = vpop.f32.mrf.mxu1  ;;  %v585_v52 = vpop.f32.mrf.mxu0 }
 0x3e9   :  { %v483_v53 = vadd.f32 %v482_v51, %v407_v46 }
 0x3ea   :  { %v5091_v54 = vpop.f32.mrf.mxu1  ;;  %v5102_v55 = vpop.f32.mrf.mxu0 }
 0x3eb   :  { %v492_v56 = vadd.f32 %v6241_v50, %v483_v53 }
 0x3ed   :  { %v493_v57 = vmul.f32 %v492_v56, %v6142_v18 }
 0x3ef   :  { %v4714_v58 = vmul.f32 -1.442695, %v493_v57 }
 0x3f0   :  { %v659_v59 = vpop.f32.mrf.mxu1 }
 0x3f1   :  { %5642 = vpow2.f32 %v4714_v58  ;;  %v660_v60 = vadd.f32 %v659_v59, %v585_v52 }
 0x3f2   :  { %v5113_v61 = vpop.f32.mrf.mxu1 }
 0x3f3   :  { %v663_v62 = vadd.f32 %v6138_v14, %v660_v60 }
 0x3f5   :  { %v664_v63 = vmul.f32 %v663_v62, %v6142_v18 }
 0x3f7   :  { %v4717_v11 = vmul.f32 -1.442695, %v664_v63 }
 0x3f9   :  { %5644 = vpow2.f32 %v4717_v11 }
 0x3fe   :  { %v5643_v12 = vpop.eup %5642 }
 0x3ff   :  { %v497_v13 = vadd.f32 1.0, %v5643_v12 }
 0x401   :  { %5646 = vrcp.f32 %v497_v13 }
 0x406   :  { %v5645_v15 = vpop.eup %5644 }
 0x407   :  { %v668_v16 = vadd.f32 1.0, %v5645_v15 }
 0x409   :  { %5648 = vrcp.f32 %v668_v16 }
 0x40e   :  { %v5647_v17 = vpop.eup %5646 }
 0x40f   :  { %v500_v19 = vmul.f32 %v5647_v17, %v6142_v18 }
 0x411   :  { %v501_v20 = vsub.f32 %v500_v19, %v6149_v27 }
 0x413   :  { %504 = vrot.lane.b32.xlu1 %v501_v20, %s5980_s20  ;;  %v502_v29 = vmul.f32 0.0, %v501_v20 }
 0x416   :  { %v5649_v21 = vpop.eup %5648 }
 0x417   :  { %v671_v22 = vmul.f32 %v5649_v21, %v6142_v18 }
 0x419   :  { %v672_v23 = vsub.f32 %v671_v22, %v6149_v27 }
 0x41b   :  { %675 = vrot.lane.b32.xlu0 %v672_v23, %s5980_s20  ;;  %v673_v32 = vmul.f32 %v672_v23, %v6155_v34 }
 0x485   :  { %v505_v24 = vpop.permute.xlu1 %504 }
 0x486   :  { %v507_v25 = vmul.f32 %v505_v24, %v501_v20 }
 0x488   :  { %509 = vrot.lane.b32.xlu1 %v507_v25, %s5981_s21 }
 0x48d   :  { %v676_v26 = vpop.permute.xlu0 %675 }
 0x48e   :  { %v678_v28 = vmul.f32 %v676_v26, %v672_v23 }
 0x490   :  { %680 = vrot.lane.b32.xlu0 %v678_v28, %s5981_s21 }
 0x4fa   :  { %v510_v30 = vpop.permute.xlu1 %509 }
 0x4fb   :  { %v6255_v31 = vadd.f32 %v510_v30, %v502_v29 }
 0x4fd   :  { %5650 = vtanh.f32 %v6255_v31 }
 0x502   :  { %v681_v33 = vpop.permute.xlu0 %680 }
 0x503   :  { %v6259_v43 = vadd.f32 %v681_v33, %v673_v32 }
 0x505   :  { %5652 = vtanh.f32 %v6259_v43 }
 0x50a   :  { %v5651_v44 = vpop.eup %5650 }
 0x50b   :  { %515 = vrot.lane.b32.xlu1 %v5651_v44, %s5980_s20 }
 0x512   :  { %v5653_v45 = vpop.eup %5652 }
 0x513   :  { %686 = vrot.lane.b32.xlu0 %v5653_v45, %s5980_s20 }
 0x57d   :  { %v516_v46 = vpop.permute.xlu1 %515 }
 0x57e   :  { %v518_v47 = vmul.f32 %v516_v46, %v501_v20 }
 0x580   :  { %691 = vrot.lane.b32.xlu1 %v518_v47, %s5981_s21 }
 0x584   :  { %937 = vrot.lane.b32.xlu1 %v6115_v9, %s5980_s20 }
 0x585   :  { %v687_v48 = vpop.permute.xlu0 %686 }
 0x586   :  { %v689_v34 = vmul.f32 %v687_v48, %v672_v23 }
 0x588   :  { %766 = vrot.lane.b32.xlu0 %v689_v34, %s5981_s21 }
 0x5f2   :  { %v692_v49 = vpop.permute.xlu1 %691 }
 0x5f3   :  { %5123 = vmatmul.mubr.msk.f32.vlgmr.msra.gmra.mxu0 %vm161_vm1, %v692_v49 }
 0x5f4   :  { %5137 = vmatpush3.msra.mxu0 %v6089_v1  ;;  %5144 = vmatprep.mubr.msk.f32.mxu0 %vm5978_vm0, %v5977_v0 }
 0x5f5   :  { %5138 = vmatprep.subr.mxu0 %v5977_v0 }
 0x5f6   :  { %5139 = vmatpush3.msra.mxu0 %v6093_v3  ;;  %v938_v52 = vpop.permute.xlu1 %937 }
 0x5f7   :  { %5140 = vmatprep.subr.mxu0 %v5977_v0 }
 0x5f8   :  { %5141 = vmatpush3.msra.mxu0 %v6101_v5 }
 0x5f9   :  { %5142 = vmatprep.subr.mxu0 %v5977_v0 }
 0x5fa   :  { %5143 = vmatpush3.msra.mxu0 %v6109_v7  ;;  %v767_v51 = vpop.permute.xlu0 %766 }
 0x5fb   :  { %5134 = vmatmul.mubr.msk.f32.vlgmr.msra.gmra.mxu1 %vm161_vm1, %v767_v51  ;;  %5145 = vmatmul.mubr.msk.f32.vlgmr.msra.gmra.mxu0 %vm161_vm1, %v767_v51 }
 0x5fc   :  { %5148 = vmatpush3.msra.mxu1 %v6091_v2  ;;  %5155 = vmatprep.mubr.msk.f32.mxu1 %vm5978_vm0, %v5977_v0 }
 0x5fd   :  { %5149 = vmatprep.subr.mxu1 %v5977_v0  ;;  %5158 = vmatprep.subr.mxu0 %v5977_v0 }
 0x5fe   :  { %5150 = vmatpush3.msra.mxu1 %v6097_v4  ;;  %5159 = vmatpush3.msra.mxu0 %v6158_v35 }
 0x5ff   :  { %5151 = vmatprep.subr.mxu1 %v5977_v0  ;;  %5160 = vmatprep.subr.mxu0 %v5977_v0 }
 0x600   :  { %5152 = vmatpush3.msra.mxu1 %v6103_v6  ;;  %5161 = vmatpush3.msra.mxu0 %v6160_v36 }
 0x601   :  { %5153 = vmatprep.subr.mxu1 %v5977_v0  ;;  %5162 = vmatprep.subr.mxu0 %v5977_v0 }
 0x602   :  { %5154 = vmatpush3.msra.mxu1 %v6111_v8  ;;  %5163 = vmatpush3.msra.mxu0 %v6170_v39 }
 0x603   :  { %5156 = vmatmul.mubr.msk.f32.vlgmr.msra.gmra.mxu1 %vm161_vm1, %v938_v52  ;;  %5164 = vmatprep.subr.mxu0 %v5977_v0 }
 0x604   :  { %5165 = vmatpush3.msra.mxu0 %v6178_v41  ;;  %5169 = vmatprep.subr.mxu1 %v5977_v0 }
 0x605   :  { %5166 = vmatprep.mubr.msk.f32.mxu0 %vm5978_vm0, %v5977_v0  ;;  %5170 = vmatpush3.msra.mxu1 %v6165_v37 }
 0x606   :  { %5180 = vmatprep.subr.mxu0 %v5977_v0  ;;  %5171 = vmatprep.subr.mxu1 %v5977_v0 }
 0x607   :  { %5172 = vmatpush3.msra.mxu1 %v6167_v38  ;;  %5177 = vmatprep.mubr.msk.f32.mxu1 %vm5978_vm0, %v5977_v0 }
 0x608   :  { %5173 = vmatprep.subr.mxu1 %v5977_v0 }
 0x609   :  { %5174 = vmatpush3.msra.mxu1 %v6175_v40 }
 0x60a   :  { %5175 = vmatprep.subr.mxu1 %v5977_v0 }
 0x60b   :  { %5176 = vmatpush3.msra.mxu1 %v6185_v42 }
 0x60c   :  { %5191 = vmatprep.subr.mxu1 %v5977_v0 }
 0x6b3   :  { %v761_v53 = vpop.f32.mrf.mxu0 }
 0x6b5   :  { %v5124_v54 = vpop.f32.mrf.mxu0 }
 0x6bb   :  { %v836_v55 = vpop.f32.mrf.mxu1  ;;  %v933_v56 = vpop.f32.mrf.mxu0 }
 0x6bc   :  { %v837_v57 = vadd.f32 %v836_v55, %v761_v53 }
 0x6bd   :  { %v5135_v58 = vpop.f32.mrf.mxu1  ;;  %v5146_v59 = vpop.f32.mrf.mxu0 }
 0x6be   :  { %v840_v60 = vadd.f32 %v6241_v50, %v837_v57 }
 0x6c0   :  { %v841_v61 = vmul.f32 %v840_v60, %v6142_v18 }
 0x6c2   :  { %v4720_v62 = vmul.f32 -1.442695, %v841_v61 }
 0x6c3   :  { %v1007_v63 = vpop.f32.mrf.mxu1 }
 0x6c4   :  { %5654 = vpow2.f32 %v4720_v62  ;;  %v1008_v11 = vadd.f32 %v1007_v63, %v933_v56 }
 0x6c5   :  { %v5157_v12 = vpop.f32.mrf.mxu1 }
 0x6c6   :  { %v1011_v13 = vadd.f32 %v6138_v14, %v1008_v11 }
 0x6c8   :  { %v1012_v15 = vmul.f32 %v1011_v13, %v6142_v18 }
 0x6ca   :  { %v4723_v16 = vmul.f32 -1.442695, %v1012_v15 }
 0x6cc   :  { %5656 = vpow2.f32 %v4723_v16 }
 0x6d1   :  { %v5655_v17 = vpop.eup %5654 }
 0x6d2   :  { %v845_v19 = vadd.f32 1.0, %v5655_v17 }
 0x6d4   :  { %5658 = vrcp.f32 %v845_v19 }
 0x6d9   :  { %v5657_v20 = vpop.eup %5656 }
 0x6da   :  { %v1016_v21 = vadd.f32 1.0, %v5657_v20 }
 0x6dc   :  { %5660 = vrcp.f32 %v1016_v21 }
 0x6e1   :  { %v5659_v22 = vpop.eup %5658 }
 0x6e2   :  { %v848_v23 = vmul.f32 %v5659_v22, %v6142_v18 }
 0x6e4   :  { %v849_v24 = vsub.f32 %v848_v23, %v6149_v27 }
 0x6e6   :  { %852 = vrot.lane.b32.xlu0 %v849_v24, %s5980_s20  ;;  %v850_v44 = vmul.f32 %v849_v24, %v6255_v31 }
 0x6e9   :  { %v5661_v25 = vpop.eup %5660 }
 0x6ea   :  { %v1019_v26 = vmul.f32 %v5661_v25, %v6142_v18 }
 0x6ec   :  { %v1020_v28 = vsub.f32 %v1019_v26, %v6149_v27 }
 0x6ee   :  { %1023 = vrot.lane.b32.xlu1 %v1020_v28, %s5980_s20  ;;  %v1021_v47 = vmul.f32 %v1020_v28, %v6259_v43 }
 0x758   :  { %v853_v29 = vpop.permute.xlu0 %852 }
 0x759   :  { %v855_v30 = vmul.f32 %v853_v29, %v849_v24 }
 0x75b   :  { %857 = vrot.lane.b32.xlu0 %v855_v30, %s5981_s21 }
 0x760   :  { %v1024_v32 = vpop.permute.xlu1 %1023 }
 0x761   :  { %v1026_v33 = vmul.f32 %v1024_v32, %v1020_v28 }
 0x763   :  { %1028 = vrot.lane.b32.xlu1 %v1026_v33, %s5981_s21 }
 0x7cd   :  { %v858_v45 = vpop.permute.xlu0 %857 }
 0x7ce   :  { %v6325_v46 = vadd.f32 %v858_v45, %v850_v44 }
 0x7d0   :  { %5662 = vtanh.f32 %v6325_v46 }
 0x7d5   :  { %v1029_v48 = vpop.permute.xlu1 %1028 }
 0x7d6   :  { %v6329_v34 = vadd.f32 %v1029_v48, %v1021_v47 }
 0x7d8   :  { %5664 = vtanh.f32 %v6329_v34 }
 0x7dd   :  { %v5663_v49 = vpop.eup %5662 }
 0x7de   :  { %863 = vrot.lane.b32.xlu0 %v5663_v49, %s5980_s20 }
 0x7e5   :  { %v5665_v51 = vpop.eup %5664 }
 0x7e6   :  { %1034 = vrot.lane.b32.xlu1 %v5665_v51, %s5980_s20 }
 0x850   :  { %v864_v52 = vpop.permute.xlu0 %863 }
 0x851   :  { %v866_v31 = vmul.f32 %v864_v52, %v849_v24 }
 0x853   :  { %1039 = vrot.lane.b32.xlu0 %v866_v31, %s5981_s21 }
 0x857   :  { %1285 = vrot.lane.b32.xlu0 %v6115_v9, %s5981_s21 }
 0x858   :  { %v1035_v53 = vpop.permute.xlu1 %1034 }
 0x859   :  { %v1037_v43 = vmul.f32 %v1035_v53, %v1020_v28 }
 0x85b   :  { %1114 = vrot.lane.b32.xlu1 %v1037_v43, %s5981_s21 }
 0x8c5   :  { %v1040_v54 = vpop.permute.xlu0 %1039 }
 0x8c6   :  { %5167 = vmatmul.mubr.msk.f32.vlgmr.msra.gmra.mxu0 %vm161_vm1, %v1040_v54 }
 0x8c7   :  { %5181 = vmatpush3.msra.mxu0 %v6089_v1  ;;  %5188 = vmatprep.mubr.msk.f32.mxu0 %vm5978_vm0, %v5977_v0 }
 0x8c8   :  { %5182 = vmatprep.subr.mxu0 %v5977_v0 }
 0x8c9   :  { %5183 = vmatpush3.msra.mxu0 %v6093_v3  ;;  %v1286_v55 = vpop.permute.xlu0 %1285 }
 0x8ca   :  { %5184 = vmatprep.subr.mxu0 %v5977_v0 }
 0x8cb   :  { %5185 = vmatpush3.msra.mxu0 %v6101_v5 }
 0x8cc   :  { %5186 = vmatprep.subr.mxu0 %v5977_v0 }
 0x8cd   :  { %5187 = vmatpush3.msra.mxu0 %v6109_v7  ;;  %v1115_v9 = vpop.permute.xlu1 %1114 }
 0x8ce   :  { %5178 = vmatmul.mubr.msk.f32.vlgmr.msra.gmra.mxu1 %vm161_vm1, %v1115_v9  ;;  %5189 = vmatmul.mubr.msk.f32.vlgmr.msra.gmra.mxu0 %vm161_vm1, %v1115_v9 }
 0x8cf   :  { %5192 = vmatpush3.msra.mxu1 %v6091_v2  ;;  %5199 = vmatprep.mubr.msk.f32.mxu1 %vm5978_vm0, %v5977_v0 }
 0x8d0   :  { %5193 = vmatprep.subr.mxu1 %v5977_v0  ;;  %5202 = vmatprep.subr.mxu0 %v5977_v0 }
 0x8d1   :  { %5194 = vmatpush3.msra.mxu1 %v6097_v4  ;;  %5203 = vmatpush3.msra.mxu0 %v6158_v35 }
 0x8d2   :  { %5195 = vmatprep.subr.mxu1 %v5977_v0  ;;  %5204 = vmatprep.subr.mxu0 %v5977_v0 }
 0x8d3   :  { %5196 = vmatpush3.msra.mxu1 %v6103_v6  ;;  %5205 = vmatpush3.msra.mxu0 %v6160_v36 }
 0x8d4   :  { %5197 = vmatprep.subr.mxu1 %v5977_v0  ;;  %5206 = vmatprep.subr.mxu0 %v5977_v0 }
 0x8d5   :  { %5198 = vmatpush3.msra.mxu1 %v6111_v8  ;;  %5207 = vmatpush3.msra.mxu0 %v6170_v39 }
 0x8d6   :  { %5200 = vmatmul.mubr.msk.f32.vlgmr.msra.gmra.mxu1 %vm161_vm1, %v1286_v55  ;;  %5208 = vmatprep.subr.mxu0 %v5977_v0 }
 0x8d7   :  { %5209 = vmatpush3.msra.mxu0 %v6178_v41  ;;  %5213 = vmatprep.subr.mxu1 %v5977_v0 }
 0x8d8   :  { %5210 = vmatprep.mubr.msk.f32.mxu0 %vm5978_vm0, %v5977_v0  ;;  %5214 = vmatpush3.msra.mxu1 %v6165_v37 }
 0x8d9   :  { %5224 = vmatprep.subr.mxu0 %v5977_v0  ;;  %5215 = vmatprep.subr.mxu1 %v5977_v0 }
 0x8da   :  { %5216 = vmatpush3.msra.mxu1 %v6167_v38  ;;  %5221 = vmatprep.mubr.msk.f32.mxu1 %vm5978_vm0, %v5977_v0 }
 0x8db   :  { %5217 = vmatprep.subr.mxu1 %v5977_v0 }
 0x8dc   :  { %5218 = vmatpush3.msra.mxu1 %v6175_v40 }
 0x8dd   :  { %5219 = vmatprep.subr.mxu1 %v5977_v0 }
 0x8de   :  { %5220 = vmatpush3.msra.mxu1 %v6185_v42 }
 0x8df   :  { %5235 = vmatprep.subr.mxu1 %v5977_v0 }
 0x986   :  { %v1109_v56 = vpop.f32.mrf.mxu0 }
 0x988   :  { %v5168_v57 = vpop.f32.mrf.mxu0 }
 0x98e   :  { %v1184_v58 = vpop.f32.mrf.mxu1  ;;  %v1281_v59 = vpop.f32.mrf.mxu0 }
 0x98f   :  { %v1185_v60 = vadd.f32 %v1184_v58, %v1109_v56  ;;  %v6428_v58 = vld [vmem:[#allocation2 + $0x8] sm:$0xff] }
 0x990   :  { %v5179_v61 = vpop.f32.mrf.mxu1  ;;  %v5190_v62 = vpop.f32.mrf.mxu0 }
 0x991   :  { %v1188_v63 = vadd.f32 %v6241_v50, %v1185_v60 }
 0x993   :  { %v1189_v11 = vmul.f32 %v1188_v63, %v6142_v18 }
 0x995   :  { %v4726_v12 = vmul.f32 -1.442695, %v1189_v11 }
 0x996   :  { %v1355_v13 = vpop.f32.mrf.mxu1 }
 0x997   :  { %5666 = vpow2.f32 %v4726_v12  ;;  %v1356_v15 = vadd.f32 %v1355_v13, %v1281_v59 }
 0x998   :  { %v5201_v16 = vpop.f32.mrf.mxu1 }
 0x999   :  { %v1359_v17 = vadd.f32 %v6138_v14, %v1356_v15 }
 0x99b   :  { %v1360_v19 = vmul.f32 %v1359_v17, %v6142_v18 }
 0x99d   :  { %v4729_v20 = vmul.f32 -1.442695, %v1360_v19 }
 0x99f   :  { %5668 = vpow2.f32 %v4729_v20 }
 0x9a4   :  { %v5667_v21 = vpop.eup %5666 }
 0x9a5   :  { %v1193_v22 = vadd.f32 1.0, %v5667_v21 }
 0x9a7   :  { %5670 = vrcp.f32 %v1193_v22 }
 0x9ac   :  { %v5669_v23 = vpop.eup %5668 }
 0x9ad   :  { %v1364_v24 = vadd.f32 1.0, %v5669_v23 }
 0x9af   :  { %5672 = vrcp.f32 %v1364_v24 }
 0x9b4   :  { %v5671_v25 = vpop.eup %5670 }
 0x9b5   :  { %v1196_v26 = vmul.f32 %v5671_v25, %v6142_v18 }
 0x9b7   :  { %v1197_v28 = vsub.f32 %v1196_v26, %v6149_v27 }
 0x9b9   :  { %1200 = vrot.lane.b32.xlu1 %v1197_v28, %s5980_s20  ;;  %v1198_v48 = vmul.f32 %v1197_v28, %v6325_v46 }
 0x9bc   :  { %v5673_v29 = vpop.eup %5672 }
 0x9bd   :  { %v1367_v30 = vmul.f32 %v5673_v29, %v6142_v18 }
 0x9bf   :  { %v1368_v32 = vsub.f32 %v1367_v30, %v6149_v27 }
 0x9c1   :  { %1371 = vrot.lane.b32.xlu0 %v1368_v32, %s5980_s20  ;;  %v1369_v52 = vmul.f32 %v1368_v32, %v6329_v34 }
 0xa2b   :  { %v1201_v33 = vpop.permute.xlu1 %1200 }
 0xa2c   :  { %v1203_v44 = vmul.f32 %v1201_v33, %v1197_v28 }
 0xa2e   :  { %1205 = vrot.lane.b32.xlu1 %v1203_v44, %s5981_s21 }
 0xa33   :  { %v1372_v45 = vpop.permute.xlu0 %1371 }
 0xa34   :  { %v1374_v47 = vmul.f32 %v1372_v45, %v1368_v32 }
 0xa36   :  { %1376 = vrot.lane.b32.xlu0 %v1374_v47, %s5981_s21 }
 0xaa0   :  { %v1206_v49 = vpop.permute.xlu1 %1205 }
 0xaa1   :  { %v6395_v51 = vadd.f32 %v1206_v49, %v1198_v48 }
 0xaa3   :  { %5674 = vtanh.f32 %v6395_v51 }
 0xaa8   :  { %v1377_v31 = vpop.permute.xlu0 %1376 }
 0xaa9   :  { %v6399_v53 = vadd.f32 %v1377_v31, %v1369_v52 }
 0xaab   :  { %5676 = vtanh.f32 %v6399_v53 }
 0xab0   :  { %v5675_v43 = vpop.eup %5674 }
 0xab1   :  { %1211 = vrot.lane.b32.xlu1 %v5675_v43, %s5980_s20 }
 0xab8   :  { %v5677_v54 = vpop.eup %5676 }
 0xab9   :  { %1382 = vrot.lane.b32.xlu0 %v5677_v54, %s5980_s20 }
 0xb23   :  { %v1212_v9 = vpop.permute.xlu1 %1211 }
 0xb24   :  { %v1214_v46 = vmul.f32 %v1212_v9, %v1197_v28 }
 0xb26   :  { %1387 = vrot.lane.b32.xlu1 %v1214_v46, %s5981_s21 }
 0xb2b   :  { %v1383_v55 = vpop.permute.xlu0 %1382 }
 0xb2c   :  { %v1385_v56 = vmul.f32 %v1383_v55, %v1368_v32 }
 0xb2e   :  { %1462 = vrot.lane.b32.xlu0 %v1385_v56, %s5981_s21 }
 0xb98   :  { %v1388_v34 = vpop.permute.xlu1 %1387 }
 0xb99   :  { %5211 = vmatmul.mubr.msk.f32.vlgmr.msra.gmra.mxu0 %vm161_vm1, %v1388_v34 }
 0xb9a   :  { %5225 = vmatpush3.msra.mxu0 %v6089_v1  ;;  %5232 = vmatprep.mubr.msk.f32.mxu0 %vm5978_vm0, %v5977_v0 }
 0xb9b   :  { %5226 = vmatprep.subr.mxu0 %v5977_v0 }
 0xb9c   :  { %5227 = vmatpush3.msra.mxu0 %v6093_v3 }
 0xb9d   :  { %5228 = vmatprep.subr.mxu0 %v5977_v0 }
 0xb9e   :  { %5229 = vmatpush3.msra.mxu0 %v6101_v5 }
 0xb9f   :  { %5230 = vmatprep.subr.mxu0 %v5977_v0 }
 0xba0   :  { %5231 = vmatpush3.msra.mxu0 %v6109_v7  ;;  %v1463_v57 = vpop.permute.xlu0 %1462 }
 0xba1   :  { %5222 = vmatmul.mubr.msk.f32.vlgmr.msra.gmra.mxu1 %vm161_vm1, %v1463_v57  ;;  %5233 = vmatmul.mubr.msk.f32.vlgmr.msra.gmra.mxu0 %vm161_vm1, %v1463_v57 }
 0xba2   :  { %5236 = vmatpush3.msra.mxu1 %v6091_v2  ;;  %5243 = vmatprep.mubr.msk.f32.mxu1 %vm5978_vm0, %v5977_v0 }
 0xba3   :  { %5237 = vmatprep.subr.mxu1 %v5977_v0  ;;  %5246 = vmatprep.subr.mxu0 %v5977_v0 }
 0xba4   :  { %5238 = vmatpush3.msra.mxu1 %v6097_v4  ;;  %5247 = vmatpush3.msra.mxu0 %v6158_v35 }
 0xba5   :  { %5239 = vmatprep.subr.mxu1 %v5977_v0  ;;  %5248 = vmatprep.subr.mxu0 %v5977_v0 }
 0xba6   :  { %5240 = vmatpush3.msra.mxu1 %v6103_v6  ;;  %5249 = vmatpush3.msra.mxu0 %v6160_v36 }
 0xba7   :  { %5241 = vmatprep.subr.mxu1 %v5977_v0  ;;  %5250 = vmatprep.subr.mxu0 %v5977_v0 }
 0xba8   :  { %5242 = vmatpush3.msra.mxu1 %v6111_v8  ;;  %5251 = vmatpush3.msra.mxu0 %v6170_v39 }
 0xba9   :  { %5244 = vmatmul.mubr.msk.f32.vlgmr.msra.gmra.mxu1 %vm161_vm1, %v6428_v58  ;;  %5252 = vmatprep.subr.mxu0 %v5977_v0 }
 0xbaa   :  { %5253 = vmatpush3.msra.mxu0 %v6178_v41  ;;  %5257 = vmatprep.subr.mxu1 %v5977_v0 }
 0xbab   :  { %5254 = vmatprep.mubr.msk.f32.mxu0 %vm5978_vm0, %v5977_v0  ;;  %5258 = vmatpush3.msra.mxu1 %v6165_v37 }
 0xbac   :  { %5268 = vmatprep.subr.mxu0 %v5977_v0  ;;  %5259 = vmatprep.subr.mxu1 %v5977_v0 }
 0xbad   :  { %5260 = vmatpush3.msra.mxu1 %v6167_v38  ;;  %5265 = vmatprep.mubr.msk.f32.mxu1 %vm5978_vm0, %v5977_v0 }
 0xbae   :  { %5261 = vmatprep.subr.mxu1 %v5977_v0 }
 0xbaf   :  { %5262 = vmatpush3.msra.mxu1 %v6175_v40 }
 0xbb0   :  { %5263 = vmatprep.subr.mxu1 %v5977_v0 }
 0xbb1   :  { %5264 = vmatpush3.msra.mxu1 %v6185_v42 }
 0xbb2   :  { %5279 = vmatprep.subr.mxu1 %v5977_v0 }
 0xc59   :  { %v1457_v59 = vpop.f32.mrf.mxu0 }
 0xc5b   :  { %v5212_v60 = vpop.f32.mrf.mxu0 }
 0xc61   :  { %v1532_v61 = vpop.f32.mrf.mxu1  ;;  %v1630_v62 = vpop.f32.mrf.mxu0 }
 0xc62   :  { %v1533_v63 = vadd.f32 %v1532_v61, %v1457_v59 }
 0xc63   :  { %v5223_v11 = vpop.f32.mrf.mxu1  ;;  %v5234_v12 = vpop.f32.mrf.mxu0 }
 0xc64   :  { %v1536_v13 = vadd.f32 %v6241_v50, %v1533_v63 }
 0xc66   :  { %v1537_v15 = vmul.f32 %v1536_v13, %v6142_v18 }
 0xc68   :  { %v4732_v16 = vmul.f32 -1.442695, %v1537_v15 }
 0xc69   :  { %v1703_v17 = vpop.f32.mrf.mxu1 }
 0xc6a   :  { %5678 = vpow2.f32 %v4732_v16  ;;  %v1704_v19 = vadd.f32 %v1703_v17, %v1630_v62 }
 0xc6b   :  { %v5245_v20 = vpop.f32.mrf.mxu1 }
 0xc6c   :  { %v1707_v21 = vadd.f32 %v6138_v14, %v1704_v19 }
 0xc6e   :  { %v1708_v22 = vmul.f32 %v1707_v21, %v6142_v18 }
 0xc70   :  { %v4735_v23 = vmul.f32 -1.442695, %v1708_v22 }
 0xc72   :  { %5680 = vpow2.f32 %v4735_v23 }
 0xc77   :  { %v5679_v24 = vpop.eup %5678 }
 0xc78   :  { %v1541_v25 = vadd.f32 1.0, %v5679_v24 }
 0xc7a   :  { %5682 = vrcp.f32 %v1541_v25 }
 0xc7f   :  { %v5681_v26 = vpop.eup %5680 }
 0xc80   :  { %v1712_v28 = vadd.f32 1.0, %v5681_v26 }
 0xc82   :  { %5684 = vrcp.f32 %v1712_v28 }
 0xc87   :  { %v5683_v29 = vpop.eup %5682 }
 0xc88   :  { %v1544_v30 = vmul.f32 %v5683_v29, %v6142_v18 }
 0xc8a   :  { %v1545_v32 = vsub.f32 %v1544_v30, %v6149_v27 }
 0xc8c   :  { %1548 = vrot.lane.b32.xlu1 %v1545_v32, %s5980_s20  ;;  %v1546_v52 = vmul.f32 %v1545_v32, %v6395_v51 }
 0xc8f   :  { %v5685_v33 = vpop.eup %5684 }
 0xc90   :  { %v1715_v14 = vmul.f32 %v5685_v33, %v6142_v18 }
 0xc92   :  { %v1716_v44 = vsub.f32 %v1715_v14, %v6149_v27 }
 0xc94   :  { %1719 = vrot.lane.b32.xlu0 %v1716_v44, %s5980_s20  ;;  %v1717_v54 = vmul.f32 %v1716_v44, %v6399_v53 }
 0xcfe   :  { %v1549_v45 = vpop.permute.xlu1 %1548 }
 0xcff   :  { %v1551_v47 = vmul.f32 %v1549_v45, %v1545_v32 }
 0xd01   :  { %1553 = vrot.lane.b32.xlu1 %v1551_v47, %s5981_s21 }
 0xd06   :  { %v1720_v48 = vpop.permute.xlu0 %1719 }
 0xd07   :  { %v1722_v49 = vmul.f32 %v1720_v48, %v1716_v44 }
 0xd09   :  { %1724 = vrot.lane.b32.xlu0 %v1722_v49, %s5981_s21 }
 0xd73   :  { %v1554_v31 = vpop.permute.xlu1 %1553 }
 0xd74   :  { %v6466_v43 = vadd.f32 %v1554_v31, %v1546_v52  ;;  %v6555_v31 = vld [vmem:[#allocation7 + $0x18] sm:$0xff] }
 0xd76   :  { %5686 = vtanh.f32 %v6466_v43 }
 0xd7b   :  { %v1725_v9 = vpop.permute.xlu0 %1724 }
 0xd7c   :  { %v6470_v46 = vadd.f32 %v1725_v9, %v1717_v54  ;;  %v6565_v54 = vld [vmem:[#allocation7 + $0x8] sm:$0xff]  ;;  %v6569_v9 = vld [vmem:[#allocation7] sm:$0xff] }
 0xd7e   :  { %5688 = vtanh.f32 %v6470_v46 }
 0xd83   :  { %v5687_v55 = vpop.eup %5686 }
 0xd84   :  { %1559 = vrot.lane.b32.xlu1 %v5687_v55, %s5980_s20  ;;  %v6574_v55 = vld [vmem:[#allocation5 + $0x18] sm:$0xff] }
 0xd8b   :  { %v5689_v56 = vpop.eup %5688 }
 0xd8c   :  { %1730 = vrot.lane.b32.xlu0 %v5689_v56, %s5980_s20  ;;  %v6581_v56 = vld [vmem:[#allocation5 + $0x10] sm:$0xff] }
 0xdf6   :  { %v1560_v34 = vpop.permute.xlu1 %1559 }
 0xdf7   :  { %v1562_v51 = vmul.f32 %v1560_v34, %v1545_v32  ;;  %v6584_v34 = vld [vmem:[#allocation7 + $0x38] sm:$0xff] }
 0xdf9   :  { %1735 = vrot.lane.b32.xlu1 %v1562_v51, %s5981_s21  ;;  %v6589_v51 = vld [vmem:[#allocation5 + $0x8] sm:$0xff] }
 0xdfd   :  { %1981 = vrot.lane.b32.xlu1 %v6428_v58, %s5982_s12 }
 0xdfe   :  { %v1731_v57 = vpop.permute.xlu0 %1730 }
 0xdff   :  { %v1733_v53 = vmul.f32 %v1731_v57, %v1716_v44 }
 0xe01   :  { %1810 = vrot.lane.b32.xlu0 %v1733_v53, %s5981_s21  ;;  %v6592_v53 = vld [vmem:[#allocation7 + $0x30] sm:$0xff] }
 0xe6b   :  { %v1736_v59 = vpop.permute.xlu1 %1735 }
 0xe6c   :  { %5255 = vmatmul.mubr.msk.f32.vlgmr.msra.gmra.mxu0 %vm161_vm1, %v1736_v59  ;;  %v6597_v59 = vld [vmem:[#allocation5] sm:$0xff] }
 0xe6d   :  { %5269 = vmatpush3.msra.mxu0 %v6089_v1  ;;  %5276 = vmatprep.mubr.msk.f32.mxu0 %vm5978_vm0, %v5977_v0 }
 0xe6e   :  { %5270 = vmatprep.subr.mxu0 %v5977_v0 }
 0xe6f   :  { %5271 = vmatpush3.msra.mxu0 %v6093_v3  ;;  %v1982_v1 = vpop.permute.xlu1 %1981 }
 0xe70   :  { %5272 = vmatprep.subr.mxu0 %v5977_v0 }
 0xe71   :  { %5273 = vmatpush3.msra.mxu0 %v6101_v5 }
 0xe72   :  { %5274 = vmatprep.subr.mxu0 %v5977_v0 }
 0xe73   :  { %5275 = vmatpush3.msra.mxu0 %v6109_v7  ;;  %v1811_v60 = vpop.permute.xlu0 %1810 }
 0xe74   :  { %5266 = vmatmul.mubr.msk.f32.vlgmr.msra.gmra.mxu1 %vm161_vm1, %v1811_v60  ;;  %5277 = vmatmul.mubr.msk.f32.vlgmr.msra.gmra.mxu0 %vm161_vm1, %v1811_v60  ;;  %v6600_v60 = vld [vmem:[#allocation7 + $0x28] sm:$0xff] }
 0xe75   :  { %5280 = vmatpush3.msra.mxu1 %v6091_v2  ;;  %5287 = vmatprep.mubr.msk.f32.mxu1 %vm5978_vm0, %v5977_v0 }
 0xe76   :  { %5281 = vmatprep.subr.mxu1 %v5977_v0  ;;  %5290 = vmatprep.subr.mxu0 %v5977_v0 }
 0xe77   :  { %5282 = vmatpush3.msra.mxu1 %v6097_v4  ;;  %5291 = vmatpush3.msra.mxu0 %v6158_v35 }
 0xe78   :  { %5283 = vmatprep.subr.mxu1 %v5977_v0  ;;  %5292 = vmatprep.subr.mxu0 %v5977_v0 }
 0xe79   :  { %5284 = vmatpush3.msra.mxu1 %v6103_v6  ;;  %5293 = vmatpush3.msra.mxu0 %v6160_v36 }
 0xe7a   :  { %5285 = vmatprep.subr.mxu1 %v5977_v0  ;;  %5294 = vmatprep.subr.mxu0 %v5977_v0 }
 0xe7b   :  { %5286 = vmatpush3.msra.mxu1 %v6111_v8  ;;  %5295 = vmatpush3.msra.mxu0 %v6170_v39 }
 0xe7c   :  { %5288 = vmatmul.mubr.msk.f32.vlgmr.msra.gmra.mxu1 %vm161_vm1, %v1982_v1  ;;  %5296 = vmatprep.subr.mxu0 %v5977_v0  ;;  %v6605_v1 = vld [vmem:[#allocation7 + $0x20] sm:$0xff] }
 0xe7d   :  { %5297 = vmatpush3.msra.mxu0 %v6178_v41  ;;  %5301 = vmatprep.subr.mxu1 %v5977_v0  ;;  %v6528_v41 = vld [vmem:[%s7137_s3] ss:$0 sm:$0xff] }
 0xe7e   :  { %5298 = vmatprep.mubr.msk.f32.mxu0 %vm5978_vm0, %v5977_v0  ;;  %5302 = vmatpush3.msra.mxu1 %v6165_v37 }
 0xe7f   :  { %5312 = vmatprep.subr.mxu0 %v5977_v0  ;;  %5303 = vmatprep.subr.mxu1 %v5977_v0 }
 0xe80   :  { %5304 = vmatpush3.msra.mxu1 %v6167_v38  ;;  %5309 = vmatprep.mubr.msk.f32.mxu1 %vm5978_vm0, %v5977_v0 }
 0xe81   :  { %5305 = vmatprep.subr.mxu1 %v5977_v0 }
 0xe82   :  { %5306 = vmatpush3.msra.mxu1 %v6175_v40 }
 0xe83   :  { %5307 = vmatprep.subr.mxu1 %v5977_v0 }
 0xe84   :  { %5308 = vmatpush3.msra.mxu1 %v6185_v42 }
 0xe85   :  { %5323 = vmatprep.subr.mxu1 %v5977_v0 }
 0xf2c   :  { %v1805_v2 = vpop.f32.mrf.mxu0 }
 0xf2e   :  { %v5256_v3 = vpop.f32.mrf.mxu0 }
 0xf2f   :  { %v6616_v3 = vld [vmem:[#allocation5 + $0x30] sm:$0xff] }
 0xf34   :  { %v1880_v4 = vpop.f32.mrf.mxu1  ;;  %v1977_v5 = vpop.f32.mrf.mxu0 }
 0xf35   :  { %v1881_v6 = vadd.f32 %v1880_v4, %v1805_v2  ;;  %v6611_v2 = vld [vmem:[#allocation5 + $0x38] sm:$0xff]  ;;  %v6622_v4 = vld [vmem:[#allocation5 + $0x28] sm:$0xff] }
 0xf36   :  { %v5267_v7 = vpop.f32.mrf.mxu1  ;;  %v5278_v8 = vpop.f32.mrf.mxu0 }
 0xf37   :  { %v1884_v35 = vadd.f32 %v6241_v50, %v1881_v6 }
 0xf39   :  { %v1885_v36 = vmul.f32 %v1884_v35, %v6142_v18 }
 0xf3b   :  { %v4738_v37 = vmul.f32 -1.442695, %v1885_v36 }
 0xf3c   :  { %v2051_v38 = vpop.f32.mrf.mxu1 }
 0xf3d   :  { %5690 = vpow2.f32 %v4738_v37  ;;  %v2052_v39 = vadd.f32 %v2051_v38, %v1977_v5  ;;  %v6626_v5 = vld [vmem:[#allocation5 + $0x20] sm:$0xff] }
 0xf3e   :  { %v5289_v40 = vpop.f32.mrf.mxu1 }
 0xf3f   :  { %v2055_v42 = vadd.f32 %v6528_v41, %v2052_v39 }
 0xf41   :  { %v2056_v61 = vmul.f32 %v2055_v42, %v6142_v18 }
 0xf43   :  { %v4741_v62 = vmul.f32 -1.442695, %v2056_v61 }
 0xf45   :  { %5692 = vpow2.f32 %v4741_v62 }
 0xf4a   :  { %v5691_v63 = vpop.eup %5690 }
 0xf4b   :  { %v1889_v11 = vadd.f32 1.0, %v5691_v63 }
 0xf4d   :  { %5694 = vrcp.f32 %v1889_v11 }
 0xf52   :  { %v5693_v12 = vpop.eup %5692 }
 0xf53   :  { %v2060_v13 = vadd.f32 1.0, %v5693_v12 }
 0xf55   :  { %5696 = vrcp.f32 %v2060_v13 }
 0xf5a   :  { %v5695_v15 = vpop.eup %5694 }
 0xf5b   :  { %v1892_v16 = vmul.f32 %v5695_v15, %v6142_v18 }
 0xf5d   :  { %v1893_v17 = vsub.f32 %v1892_v16, %v6149_v27 }
 0xf5f   :  { %1896 = vrot.lane.b32.xlu0 %v1893_v17, %s5980_s20  ;;  %v1894_v26 = vmul.f32 %v1893_v17, %v6466_v43  ;;  %v6561_v43 = vld [vmem:[#allocation7 + $0x10] sm:$0xff] }
 0xf62   :  { %v5697_v19 = vpop.eup %5696 }
 0xf63   :  { %v2063_v20 = vmul.f32 %v5697_v19, %v6142_v18 }
 0xf65   :  { %v2064_v21 = vsub.f32 %v2063_v20, %v6149_v27 }
 0xf67   :  { %2067 = vrot.lane.b32.xlu1 %v2064_v21, %s5980_s20  ;;  %v2065_v30 = vmul.f32 %v2064_v21, %v6470_v46 }
 0xfd1   :  { %v1897_v22 = vpop.permute.xlu0 %1896 }
 0xfd2   :  { %v1899_v23 = vmul.f32 %v1897_v22, %v1893_v17 }
 0xfd4   :  { %1901 = vrot.lane.b32.xlu0 %v1899_v23, %s5981_s21 }
 0xfd9   :  { %v2068_v24 = vpop.permute.xlu1 %2067 }
 0xfda   :  { %v2070_v25 = vmul.f32 %v2068_v24, %v2064_v21 }
 0xfdc   :  { %2072 = vrot.lane.b32.xlu1 %v2070_v25, %s5981_s21 }
0x1046   :  { %v1902_v28 = vpop.permute.xlu0 %1901 }
0x1047   :  { %v6541_v29 = vadd.f32 %v1902_v28, %v1894_v26 }
0x1049   :  { %5698 = vtanh.f32 %v6541_v29 }
0x104e   :  { %v2073_v32 = vpop.permute.xlu1 %2072 }
0x104f   :  { %v6545_v33 = vadd.f32 %v2073_v32, %v2065_v30 }
0x1051   :  { %5700 = vtanh.f32 %v6545_v33 }
0x1056   :  { %v5699_v14 = vpop.eup %5698 }
0x1057   :  { %1907 = vrot.lane.b32.xlu0 %v5699_v14, %s5980_s20 }
0x105e   :  { %v5701_v44 = vpop.eup %5700 }
0x105f   :  { %2078 = vrot.lane.b32.xlu1 %v5701_v44, %s5980_s20 }
0x10c9   :  { %v1908_v45 = vpop.permute.xlu0 %1907 }
0x10ca   :  { %v1910_v47 = vmul.f32 %v1908_v45, %v1893_v17 }
0x10cc   :  { %2083 = vrot.lane.b32.xlu0 %v1910_v47, %s5981_s21 }
0x10d0   :  { %2329 = vrot.lane.b32.xlu0 %v6428_v58, %s5980_s20 }
0x10d1   :  { %v2079_v48 = vpop.permute.xlu1 %2078 }
0x10d2   :  { %v2081_v49 = vmul.f32 %v2079_v48, %v2064_v21 }
0x10d4   :  { %2158 = vrot.lane.b32.xlu1 %v2081_v49, %s5981_s21 }
0x113e   :  { %v2084_v52 = vpop.permute.xlu0 %2083 }
0x113f   :  { %5299 = vmatmul.mubr.msk.f32.vlgmr.msra.gmra.mxu0 %vm161_vm1, %v2084_v52 }
0x1140   :  { %5313 = vmatpush3.msra.mxu0 %v6555_v31  ;;  %5320 = vmatprep.mubr.msk.f32.mxu0 %vm5978_vm0, %v5977_v0 }
0x1141   :  { %5314 = vmatprep.subr.mxu0 %v5977_v0 }
0x1142   :  { %5315 = vmatpush3.msra.mxu0 %v6561_v43  ;;  %v2330_v57 = vpop.permute.xlu0 %2329 }
0x1143   :  { %5316 = vmatprep.subr.mxu0 %v5977_v0 }
0x1144   :  { %5317 = vmatpush3.msra.mxu0 %v6565_v54 }
0x1145   :  { %5318 = vmatprep.subr.mxu0 %v5977_v0 }
0x1146   :  { %5319 = vmatpush3.msra.mxu0 %v6569_v9  ;;  %v2159_v46 = vpop.permute.xlu1 %2158 }
0x1147   :  { %5310 = vmatmul.mubr.msk.f32.vlgmr.msra.gmra.mxu1 %vm161_vm1, %v2159_v46  ;;  %5321 = vmatmul.mubr.msk.f32.vlgmr.msra.gmra.mxu0 %vm161_vm1, %v2159_v46 }
0x1148   :  { %5324 = vmatpush3.msra.mxu1 %v6574_v55  ;;  %5331 = vmatprep.mubr.msk.f32.mxu1 %vm5978_vm0, %v5977_v0 }
0x1149   :  { %5325 = vmatprep.subr.mxu1 %v5977_v0  ;;  %5334 = vmatprep.subr.mxu0 %v5977_v0 }
0x114a   :  { %5326 = vmatpush3.msra.mxu1 %v6581_v56  ;;  %5335 = vmatpush3.msra.mxu0 %v6584_v34 }
0x114b   :  { %5327 = vmatprep.subr.mxu1 %v5977_v0  ;;  %5336 = vmatprep.subr.mxu0 %v5977_v0 }
0x114c   :  { %5328 = vmatpush3.msra.mxu1 %v6589_v51  ;;  %5337 = vmatpush3.msra.mxu0 %v6592_v53 }
0x114d   :  { %5329 = vmatprep.subr.mxu1 %v5977_v0  ;;  %5338 = vmatprep.subr.mxu0 %v5977_v0 }
0x114e   :  { %5330 = vmatpush3.msra.mxu1 %v6597_v59  ;;  %5339 = vmatpush3.msra.mxu0 %v6600_v60 }
0x114f   :  { %5332 = vmatmul.mubr.msk.f32.vlgmr.msra.gmra.mxu1 %vm161_vm1, %v2330_v57  ;;  %5340 = vmatprep.subr.mxu0 %v5977_v0 }
0x1150   :  { %5341 = vmatpush3.msra.mxu0 %v6605_v1  ;;  %5345 = vmatprep.subr.mxu1 %v5977_v0 }
0x1151   :  { %5342 = vmatprep.mubr.msk.f32.mxu0 %vm5978_vm0, %v5977_v0  ;;  %5346 = vmatpush3.msra.mxu1 %v6611_v2 }
0x1152   :  { %5356 = vmatprep.subr.mxu0 %v5977_v0  ;;  %5347 = vmatprep.subr.mxu1 %v5977_v0 }
0x1153   :  { %5348 = vmatpush3.msra.mxu1 %v6616_v3  ;;  %5353 = vmatprep.mubr.msk.f32.mxu1 %vm5978_vm0, %v5977_v0 }
0x1154   :  { %5349 = vmatprep.subr.mxu1 %v5977_v0 }
0x1155   :  { %5350 = vmatpush3.msra.mxu1 %v6622_v4 }
0x1156   :  { %5351 = vmatprep.subr.mxu1 %v5977_v0 }
0x1157   :  { %5352 = vmatpush3.msra.mxu1 %v6626_v5 }
0x1158   :  { %5367 = vmatprep.subr.mxu1 %v5977_v0 }
0x11ff   :  { %v2153_v6 = vpop.f32.mrf.mxu0 }
0x1201   :  { %v5300_v7 = vpop.f32.mrf.mxu0 }
0x1207   :  { %v2228_v8 = vpop.f32.mrf.mxu1  ;;  %v2325_v35 = vpop.f32.mrf.mxu0 }
0x1208   :  { %v2229_v36 = vadd.f32 %v2228_v8, %v2153_v6 }
0x1209   :  { %v5311_v37 = vpop.f32.mrf.mxu1  ;;  %v5322_v38 = vpop.f32.mrf.mxu0 }
0x120a   :  { %v2232_v39 = vadd.f32 %v6241_v50, %v2229_v36 }
0x120c   :  { %v2233_v40 = vmul.f32 %v2232_v39, %v6142_v18 }
0x120e   :  { %v4744_v42 = vmul.f32 -1.442695, %v2233_v40 }
0x120f   :  { %v2399_v61 = vpop.f32.mrf.mxu1 }
0x1210   :  { %5702 = vpow2.f32 %v4744_v42  ;;  %v2400_v62 = vadd.f32 %v2399_v61, %v2325_v35 }
0x1211   :  { %v5333_v63 = vpop.f32.mrf.mxu1 }
0x1212   :  { %v2403_v11 = vadd.f32 %v6528_v41, %v2400_v62 }
0x1214   :  { %v2404_v12 = vmul.f32 %v2403_v11, %v6142_v18 }
0x1216   :  { %v4747_v13 = vmul.f32 -1.442695, %v2404_v12 }
0x1218   :  { %5704 = vpow2.f32 %v4747_v13 }
0x121d   :  { %v5703_v15 = vpop.eup %5702 }
0x121e   :  { %v2237_v16 = vadd.f32 1.0, %v5703_v15 }
0x1220   :  { %5706 = vrcp.f32 %v2237_v16 }
0x1225   :  { %v5705_v17 = vpop.eup %5704 }
0x1226   :  { %v2408_v19 = vadd.f32 1.0, %v5705_v17 }
0x1228   :  { %5708 = vrcp.f32 %v2408_v19 }
0x122d   :  { %v5707_v50 = vpop.eup %5706 }
0x122e   :  { %v2240_v20 = vmul.f32 %v5707_v50, %v6142_v18 }
0x1230   :  { %v2241_v21 = vsub.f32 %v2240_v20, %v6149_v27 }
0x1232   :  { %2244 = vrot.lane.b32.xlu1 %v2241_v21, %s5980_s20  ;;  %v2242_v32 = vmul.f32 %v2241_v21, %v6541_v29 }
0x1235   :  { %v5709_v22 = vpop.eup %5708 }
0x1236   :  { %v2411_v23 = vmul.f32 %v5709_v22, %v6142_v18 }
0x1238   :  { %v2412_v24 = vsub.f32 %v2411_v23, %v6149_v27 }
0x123a   :  { %2415 = vrot.lane.b32.xlu0 %v2412_v24, %s5980_s20  ;;  %v2413_v45 = vmul.f32 %v2412_v24, %v6545_v33 }
0x12a4   :  { %v2245_v25 = vpop.permute.xlu1 %2244 }
0x12a5   :  { %v2247_v26 = vmul.f32 %v2245_v25, %v2241_v21 }
0x12a7   :  { %2249 = vrot.lane.b32.xlu1 %v2247_v26, %s5981_s21 }
0x12ac   :  { %v2416_v28 = vpop.permute.xlu0 %2415 }
0x12ad   :  { %v2418_v30 = vmul.f32 %v2416_v28, %v2412_v24  ;;  %v6732_v28 = vld [vmem:[#allocation10 + $0x18] sm:$0xff] }
0x12af   :  { %2420 = vrot.lane.b32.xlu0 %v2418_v30, %s5981_s21 }
0x1319   :  { %v2250_v14 = vpop.permute.xlu1 %2249 }
0x131a   :  { %v6643_v44 = vadd.f32 %v2250_v14, %v2242_v32  ;;  %v6735_v32 = vld [vmem:[#allocation10 + $0x10] sm:$0xff]  ;;  %v6741_v14 = vld [vmem:[#allocation10 + $0x8] sm:$0xff] }
0x131c   :  { %5710 = vtanh.f32 %v6643_v44 }
0x1321   :  { %v2421_v47 = vpop.permute.xlu0 %2420 }
0x1322   :  { %v6647_v48 = vadd.f32 %v2421_v47, %v2413_v45  ;;  %v2958_v45 = vld [vmem:[#allocation8 + $0x18] sm:$0xff] }
0x1324   :  { %5712 = vtanh.f32 %v6647_v48 }
0x1329   :  { %v5711_v49 = vpop.eup %5710 }
0x132a   :  { %2255 = vrot.lane.b32.xlu1 %v5711_v49, %s5980_s20  ;;  %v2956_v49 = vld [vmem:[#allocation8 + $0x8] sm:$0xff] }
0x1331   :  { %v5713_v52 = vpop.eup %5712 }
0x1332   :  { %2426 = vrot.lane.b32.xlu0 %v5713_v52, %s5980_s20  ;;  %v2955_v52 = vld [vmem:[#allocation8] sm:$0xff] }
0x139c   :  { %v2256_v46 = vpop.permute.xlu1 %2255 }
0x139d   :  { %v2258_v29 = vmul.f32 %v2256_v46, %v2241_v21 }
0x139f   :  { %2431 = vrot.lane.b32.xlu1 %v2258_v29, %s5981_s21 }
0x13a3   :  { %2677 = vrot.lane.b32.xlu1 %v6428_v58, %s5981_s21 }
0x13a4   :  { %v2427_v57 = vpop.permute.xlu0 %2426 }
0x13a5   :  { %v2429_v33 = vmul.f32 %v2427_v57, %v2412_v24  ;;  %v6766_v57 = vshrl.u32 %v132_v10, 7 }
0x13a7   :  { %2506 = vrot.lane.b32.xlu0 %v2429_v33, %s5981_s21 }
0x1411   :  { %v2432_v6 = vpop.permute.xlu1 %2431 }
0x1412   :  { %5343 = vmatmul.mubr.msk.f32.vlgmr.msra.gmra.mxu0 %vm161_vm1, %v2432_v6 }
0x1413   :  { %5357 = vmatpush3.msra.mxu0 %v6555_v31  ;;  %5364 = vmatprep.mubr.msk.f32.mxu0 %vm5978_vm0, %v5977_v0 }
0x1414   :  { %5358 = vmatprep.subr.mxu0 %v5977_v0 }
0x1415   :  { %5359 = vmatpush3.msra.mxu0 %v6561_v43  ;;  %v6678_v31 = vpop.permute.xlu1 %2677 }
0x1416   :  { %5360 = vmatprep.subr.mxu0 %v5977_v0 }
0x1417   :  { %5361 = vmatpush3.msra.mxu0 %v6565_v54 }
0x1418   :  { %5362 = vmatprep.subr.mxu0 %v5977_v0 }
0x1419   :  { %5363 = vmatpush3.msra.mxu0 %v6569_v9  ;;  %v2507_v58 = vpop.permute.xlu0 %2506 }
0x141a   :  { %5354 = vmatmul.mubr.msk.f32.vlgmr.msra.gmra.mxu1 %vm161_vm1, %v2507_v58  ;;  %5365 = vmatmul.mubr.msk.f32.vlgmr.msra.gmra.mxu0 %vm161_vm1, %v2507_v58 }
0x141b   :  { %5368 = vmatpush3.msra.mxu1 %v6574_v55  ;;  %5375 = vmatprep.mubr.msk.f32.mxu1 %vm5978_vm0, %v5977_v0 }
0x141c   :  { %5369 = vmatprep.subr.mxu1 %v5977_v0  ;;  %5378 = vmatprep.subr.mxu0 %v5977_v0 }
0x141d   :  { %5370 = vmatpush3.msra.mxu1 %v6581_v56  ;;  %5379 = vmatpush3.msra.mxu0 %v6584_v34 }
0x141e   :  { %5371 = vmatprep.subr.mxu1 %v5977_v0  ;;  %5380 = vmatprep.subr.mxu0 %v5977_v0 }
0x141f   :  { %5372 = vmatpush3.msra.mxu1 %v6589_v51  ;;  %5381 = vmatpush3.msra.mxu0 %v6592_v53  ;;  %v6706_v53 = vld [vmem:[%s7137_s3 + $0x1] ss:$0 sm:$0xff] }
0x1420   :  { %5373 = vmatprep.subr.mxu1 %v5977_v0  ;;  %5382 = vmatprep.subr.mxu0 %v5977_v0 }
0x1421   :  { %5374 = vmatpush3.msra.mxu1 %v6597_v59  ;;  %5383 = vmatpush3.msra.mxu0 %v6600_v60 }
0x1422   :  { %5376 = vmatmul.mubr.msk.f32.vlgmr.msra.gmra.mxu1 %vm161_vm1, %v6678_v31  ;;  %5384 = vmatprep.subr.mxu0 %v5977_v0 }
0x1423   :  { %5385 = vmatpush3.msra.mxu0 %v6605_v1  ;;  %5389 = vmatprep.subr.mxu1 %v5977_v0 }
0x1424   :  { %5386 = vmatprep.mubr.msk.f32.mxu0 %vm5978_vm0, %v5977_v0  ;;  %5390 = vmatpush3.msra.mxu1 %v6611_v2 }
0x1425   :  { %5400 = vmatprep.subr.mxu0 %v5977_v0  ;;  %5391 = vmatprep.subr.mxu1 %v5977_v0 }
0x1426   :  { %5392 = vmatpush3.msra.mxu1 %v6616_v3  ;;  %5397 = vmatprep.mubr.msk.f32.mxu1 %vm5978_vm0, %v5977_v0 }
0x1427   :  { %5393 = vmatprep.subr.mxu1 %v5977_v0 }
0x1428   :  { %5394 = vmatpush3.msra.mxu1 %v6622_v4 }
0x1429   :  { %5395 = vmatprep.subr.mxu1 %v5977_v0 }
0x142a   :  { %5396 = vmatpush3.msra.mxu1 %v6626_v5 }
0x142b   :  { %5411 = vmatprep.subr.mxu1 %v5977_v0 }
0x14d2   :  { %v2501_v43 = vpop.f32.mrf.mxu0 }
0x14d4   :  { %v5344_v54 = vpop.f32.mrf.mxu0 }
0x14da   :  { %v2576_v9 = vpop.f32.mrf.mxu1  ;;  %v2673_v55 = vpop.f32.mrf.mxu0 }
0x14db   :  { %v2577_v56 = vadd.f32 %v2576_v9, %v2501_v43 }
0x14dc   :  { %v5355_v34 = vpop.f32.mrf.mxu1  ;;  %v5366_v51 = vpop.f32.mrf.mxu0 }
0x14dd   :  { %v2580_v59 = vadd.f32 %v6706_v53, %v2577_v56 }
0x14df   :  { %v2581_v60 = vmul.f32 %v2580_v59, %v6142_v18 }
0x14e1   :  { %v4750_v1 = vmul.f32 -1.442695, %v2581_v60 }
0x14e2   :  { %v2747_v2 = vpop.f32.mrf.mxu1 }
0x14e3   :  { %5714 = vpow2.f32 %v4750_v1  ;;  %v2748_v3 = vadd.f32 %v2747_v2, %v2673_v55  ;;  %v3130_v55 = vsub.s32 0, %v6766_v57 }
0x14e4   :  { %v5377_v4 = vpop.f32.mrf.mxu1 }
0x14e5   :  { %v2751_v5 = vadd.f32 %v6528_v41, %v2748_v3 }
0x14e7   :  { %v2752_v7 = vmul.f32 %v2751_v5, %v6142_v18 }
0x14e9   :  { %v4753_v8 = vmul.f32 -1.442695, %v2752_v7 }
0x14eb   :  { %5716 = vpow2.f32 %v4753_v8 }
0x14f0   :  { %v5715_v35 = vpop.eup %5714 }
0x14f1   :  { %v2585_v36 = vadd.f32 1.0, %v5715_v35 }
0x14f3   :  { %5718 = vrcp.f32 %v2585_v36 }
0x14f8   :  { %v5717_v37 = vpop.eup %5716 }
0x14f9   :  { %v2756_v38 = vadd.f32 1.0, %v5717_v37 }
0x14fb   :  { %5720 = vrcp.f32 %v2756_v38 }
0x1500   :  { %v5719_v39 = vpop.eup %5718 }
0x1501   :  { %v2588_v40 = vmul.f32 %v5719_v39, %v6142_v18 }
0x1503   :  { %v2589_v42 = vsub.f32 %v2588_v40, %v6149_v27 }
0x1505   :  { %2592 = vrot.lane.b32.xlu0 %v2589_v42, %s5980_s20  ;;  %v2590_v15 = vmul.f32 %v2589_v42, %v6643_v44  ;;  %v6745_v44 = vld [vmem:[#allocation10] sm:$0xff] }
0x1508   :  { %v5721_v61 = vpop.eup %5720 }
0x1509   :  { %v2759_v41 = vmul.f32 %v5721_v61, %v6142_v18 }
0x150b   :  { %v2760_v62 = vsub.f32 %v2759_v41, %v6149_v27 }
0x150d   :  { %2763 = vrot.lane.b32.xlu1 %v2760_v62, %s5980_s20  ;;  %v2761_v19 = vmul.f32 %v2760_v62, %v6647_v48  ;;  %v2957_v48 = vld [vmem:[#allocation8 + $0x10] sm:$0xff] }
0x1577   :  { %v2593_v63 = vpop.permute.xlu0 %2592 }
0x1578   :  { %v2595_v11 = vmul.f32 %v2593_v63, %v2589_v42 }
0x157a   :  { %2597 = vrot.lane.b32.xlu0 %v2595_v11, %s5981_s21 }
0x157f   :  { %v2764_v12 = vpop.permute.xlu1 %2763 }
0x1580   :  { %v2766_v13 = vmul.f32 %v2764_v12, %v2760_v62 }
0x1582   :  { %2768 = vrot.lane.b32.xlu1 %v2766_v13, %s5981_s21 }
0x15ec   :  { %v2598_v16 = vpop.permute.xlu0 %2597 }
0x15ed   :  { %v6721_v17 = vadd.f32 %v2598_v16, %v2590_v15  ;;  %v6796_v16 = vld [vmem:[#allocation10 + $0x38] sm:$0xff] }
0x15ef   :  { %5722 = vtanh.f32 %v6721_v17 }
0x15f4   :  { %v2769_v50 = vpop.permute.xlu1 %2768 }
0x15f5   :  { %v6725_v20 = vadd.f32 %v2769_v50, %v2761_v19  ;;  %v6798_v19 = vld [vmem:[#allocation10 + $0x30] sm:$0xff]  ;;  %v6801_v50 = vld [vmem:[#allocation8 + $0x38] sm:$0xff] }
0x15f7   :  { %5724 = vtanh.f32 %v6725_v20 }
0x15fc   :  { %v5723_v21 = vpop.eup %5722 }
0x15fd   :  { %2603 = vrot.lane.b32.xlu0 %v5723_v21, %s5980_s20  ;;  %v6804_v21 = vld [vmem:[#allocation10 + $0x28] sm:$0xff] }
0x1604   :  { %v5725_v22 = vpop.eup %5724 }
0x1605   :  { %2774 = vrot.lane.b32.xlu1 %v5725_v22, %s5980_s20 }
0x166f   :  { %v2604_v23 = vpop.permute.xlu0 %2603 }
0x1670   :  { %v2606_v24 = vmul.f32 %v2604_v23, %v2589_v42  ;;  %v6818_v23 = vld [vmem:[#allocation8 + $0x30] sm:$0xff] }
0x1672   :  { %2779 = vrot.lane.b32.xlu0 %v2606_v24, %s5981_s21  ;;  %v6820_v24 = vld [vmem:[#allocation8 + $0x28] sm:$0xff] }
0x1677   :  { %v2775_v25 = vpop.permute.xlu1 %2774 }
0x1678   :  { %v2777_v26 = vmul.f32 %v2775_v25, %v2760_v62  ;;  %v6824_v25 = vld [vmem:[#allocation8 + $0x20] sm:$0xff] }
0x167a   :  { %2854 = vrot.lane.b32.xlu1 %v2777_v26, %s5981_s21 }
0x16e4   :  { %v2780_v30 = vpop.permute.xlu0 %2779 }
0x16e5   :  { %5387 = vmatmul.mubr.msk.f32.vlgmr.msra.gmra.mxu0 %vm161_vm1, %v2780_v30 }
0x16e6   :  { %5401 = vmatpush3.msra.mxu0 %v6732_v28  ;;  %5408 = vmatprep.mubr.msk.f32.mxu0 %vm5978_vm0, %v5977_v0 }
0x16e7   :  { %5402 = vmatprep.subr.mxu0 %v5977_v0 }
0x16e8   :  { %5403 = vmatpush3.msra.mxu0 %v6735_v32 }
0x16e9   :  { %5404 = vmatprep.subr.mxu0 %v5977_v0 }
0x16ea   :  { %5405 = vmatpush3.msra.mxu0 %v6741_v14 }
0x16eb   :  { %5406 = vmatprep.subr.mxu0 %v5977_v0 }
0x16ec   :  { %5407 = vmatpush3.msra.mxu0 %v6745_v44  ;;  %v2855_v47 = vpop.permute.xlu1 %2854 }
0x16ed   :  { %5398 = vmatmul.mubr.msk.f32.vlgmr.msra.gmra.mxu1 %vm161_vm1, %v2855_v47  ;;  %5409 = vmatmul.mubr.msk.f32.vlgmr.msra.gmra.mxu0 %vm161_vm1, %v2855_v47 }
0x16ee   :  { %5412 = vmatpush3.msra.mxu1 %v2958_v45  ;;  %5419 = vmatprep.mubr.msk.f32.mxu1 %vm5978_vm0, %v5977_v0 }
0x16ef   :  { %5413 = vmatprep.subr.mxu1 %v5977_v0  ;;  %5422 = vmatprep.subr.mxu0 %v5977_v0 }
0x16f0   :  { %5414 = vmatpush3.msra.mxu1 %v2957_v48  ;;  %5430 = vmatprep.mubr.msk.f32.mxu0 %vm5978_vm0, %v5977_v0 }
0x16f1   :  { %5415 = vmatprep.subr.mxu1 %v5977_v0  ;;  %5423 = vmatpush3.msra.mxu0 %v6796_v16 }
0x16f2   :  { %5416 = vmatpush3.msra.mxu1 %v2956_v49  ;;  %5424 = vmatprep.subr.mxu0 %v5977_v0 }
0x16f3   :  { %5417 = vmatprep.subr.mxu1 %v5977_v0  ;;  %5425 = vmatpush3.msra.mxu0 %v6798_v19 }
0x16f4   :  { %5418 = vmatpush3.msra.mxu1 %v2955_v52  ;;  %5426 = vmatprep.subr.mxu0 %v5977_v0 }
0x16f5   :  { %5420 = vmatmul.mubr.msk.f32.vlgmr.msra.gmra.mxu1 %vm161_vm1, %v6678_v31  ;;  %5433 = vmatprep.subr.mxu1 %v5977_v0  ;;  %v6773_v31 = vld [vmem:[%s7140_s6] sm:$0x1] }
0x16f6   :  { %5441 = vmatprep.mubr.msk.f32.mxu1 %vm5978_vm0, %v5977_v0  ;;  %v3131_v10 = vrot.slane %v6773_v31, %v3130_v55  ;;  %5434 = vmatpush3.msra.mxu1 %v6801_v50 }
0x16f7   :  { %5435 = vmatprep.subr.mxu1 %v5977_v0  ;;  %5427 = vmatpush3.msra.mxu0 %v6804_v21 }
0x16f8   :  { %5428 = vmatprep.subr.mxu0 %v5977_v0  ;;  %5436 = vmatpush3.msra.mxu1 %v6818_v23 }
0x16f9   :  { %5437 = vmatprep.subr.mxu1 %v5977_v0 }
0x16fa   :  { %5438 = vmatpush3.msra.mxu1 %v6820_v24 }
0x16fb   :  { %5439 = vmatprep.subr.mxu1 %v5977_v0 }
0x16fc   :  { %5440 = vmatpush3.msra.mxu1 %v6824_v25 }
0x16fd   :  { %5455 = vmatprep.subr.mxu1 %v5977_v0 }
0x17a5   :  { %v2849_v46 = vpop.f32.mrf.mxu0 }
0x17a7   :  { %v5388_v29 = vpop.f32.mrf.mxu0 }
0x17a8   :  { %v6860_v29 = vld [vmem:[%s7140_s6 + $0x1] ss:$0 sm:$0xff] }
0x17ad   :  { %v2924_v33 = vpop.f32.mrf.mxu1  ;;  %v3053_v6 = vpop.f32.mrf.mxu0 }
0x17ae   :  { %v2925_v58 = vadd.f32 %v2924_v33, %v2849_v46 }
0x17af   :  { %v5399_v43 = vpop.f32.mrf.mxu1  ;;  %v5410_v54 = vpop.f32.mrf.mxu0 }
0x17b0   :  { %v2928_v9 = vadd.f32 %v6706_v53, %v2925_v58 }
0x17b2   :  { %v2929_v56 = vmul.f32 %v2928_v9, %v6142_v18 }
0x17b4   :  { %v4756_v34 = vmul.f32 -1.442695, %v2929_v56 }
0x17b5   :  { %v3123_v51 = vpop.f32.mrf.mxu1 }
0x17b6   :  { %5726 = vpow2.f32 %v4756_v34  ;;  %v3124_v59 = vadd.f32 %v3123_v51, %v3053_v6 }
0x17b7   :  { %v5421_v60 = vpop.f32.mrf.mxu1 }
0x17b8   :  { %v3133_v1 = vadd.f32 %v3131_v10, %v3124_v59 }
0x17ba   :  { %v3134_v53 = vmul.f32 %v3133_v1, %v6142_v18 }
0x17bc   :  { %v4760_v2 = vmul.f32 -1.442695, %v3134_v53 }
0x17be   :  { %5728 = vpow2.f32 %v4760_v2 }
0x17c3   :  { %v5727_v3 = vpop.eup %5726 }
0x17c4   :  { %v2933_v4 = vadd.f32 1.0, %v5727_v3 }
0x17c6   :  { %5730 = vrcp.f32 %v2933_v4 }
0x17cb   :  { %v5729_v5 = vpop.eup %5728 }
0x17cc   :  { %v3138_v7 = vadd.f32 1.0, %v5729_v5 }
0x17ce   :  { %5732 = vrcp.f32 %v3138_v7  ;;  %v6874_v7 = vld [vmem:[#allocation11 + $0x18] sm:$0xff] }
0x17d3   :  { %v5731_v8 = vpop.eup %5730 }
0x17d4   :  { %v2936_v35 = vmul.f32 %v5731_v8, %v6142_v18  ;;  %v6876_v8 = vld [vmem:[#allocation11 + $0x10] sm:$0xff] }
0x17d6   :  { %v2937_v36 = vsub.f32 %v2936_v35, %v6149_v27  ;;  %v6880_v35 = vld [vmem:[#allocation11 + $0x8] sm:$0xff] }
0x17d8   :  { %2940 = vrot.lane.b32.xlu0 %v2937_v36, %s5980_s20  ;;  %v2938_v62 = vmul.f32 %v2937_v36, %v6721_v17 }
0x17db   :  { %v5733_v37 = vpop.eup %5732 }
0x17dc   :  { %v3141_v38 = vmul.f32 %v5733_v37, %v6142_v18 }
0x17de   :  { %v3142_v39 = vsub.f32 %v3141_v38, %v6149_v27 }
0x17e0   :  { %3145 = vrot.lane.b32.xlu1 %v3142_v39, %s5980_s20  ;;  %v3143_v12 = vmul.f32 %v3142_v39, %v6725_v20  ;;  %v6810_v20 = vld [vmem:[#allocation10 + $0x20] sm:$0xff] }
0x17e1   :  { %5429 = vmatpush3.msra.mxu0 %v6810_v20 }
0x17e2   :  { %5444 = vmatprep.subr.mxu0 %v5977_v0 }
0x184a   :  { %v2941_v40 = vpop.permute.xlu0 %2940 }
0x184b   :  { %v2943_v42 = vmul.f32 %v2941_v40, %v2937_v36  ;;  %v6892_v40 = vld [vmem:[#allocation13 + $0x18] sm:$0xff] }
0x184d   :  { %2945 = vrot.lane.b32.xlu0 %v2943_v42, %s5981_s21 }
0x1852   :  { %v3146_v61 = vpop.permute.xlu1 %3145 }
0x1853   :  { %v3148_v41 = vmul.f32 %v3146_v61, %v3142_v39  ;;  %v6896_v61 = vld [vmem:[#allocation13 + $0x10] sm:$0xff] }
0x1855   :  { %3150 = vrot.lane.b32.xlu1 %v3148_v41, %s5981_s21  ;;  %v6902_v41 = vld [vmem:[#allocation13 + $0x8] sm:$0xff] }
0x18bf   :  { %v2946_v63 = vpop.permute.xlu0 %2945 }
0x18c0   :  { %v6789_v11 = vadd.f32 %v2946_v63, %v2938_v62  ;;  %v6908_v62 = vld [vmem:[#allocation13] sm:$0xff]  ;;  %v2980_v63 = vld [vmem:[%s7144_s10] sm:$0x1] }
0x18c2   :  { %5734 = vtanh.f32 %v6789_v11 }
0x18c7   :  { %v3151_v13 = vpop.permute.xlu1 %3150 }
0x18c8   :  { %v6793_v15 = vadd.f32 %v3151_v13, %v3143_v12 }
0x18ca   :  { %5736 = vtanh.f32 %v6793_v15 }
0x18cf   :  { %v5735_v17 = vpop.eup %5734 }
0x18d0   :  { %2951 = vrot.lane.b32.xlu0 %v5735_v17, %s5980_s20 }
0x18d7   :  { %v5737_v22 = vpop.eup %5736 }
0x18d8   :  { %3156 = vrot.lane.b32.xlu1 %v5737_v22, %s5980_s20  ;;  %v2981_v22 = vadd.f32 %v2980_v63, %v6773_v31 }
0x1942   :  { %v2952_v26 = vpop.permute.xlu0 %2951 }
0x1943   :  { %v2954_v30 = vmul.f32 %v2952_v26, %v2937_v36  ;;  %v6884_v36 = vld [vmem:[#allocation11] sm:$0xff]  ;;  %v6941_v26 = vrot.slane %v2981_v22, %v3130_v55 }
0x1945   :  { %3161 = vrot.lane.b32.xlu0 %v2954_v30, %s5981_s21 }
0x194a   :  { %v3157_v45 = vpop.permute.xlu1 %3156 }
0x194b   :  { %v3159_v47 = vmul.f32 %v3157_v45, %v3142_v39 }
0x194d   :  { %3236 = vrot.lane.b32.xlu1 %v3159_v47, %s5981_s21 }
0x19b7   :  { %v3162_v48 = vpop.permute.xlu0 %3161 }
0x19b8   :  { %5431 = vmatmul.mubr.msk.f32.vlgmr.msra.gmra.mxu0 %vm161_vm1, %v3162_v48 }
0x19b9   :  { %5452 = vmatprep.mubr.msk.f32.mxu0 %vm5978_vm0, %v5977_v0  ;;  %5445 = vmatpush3.msra.mxu0 %v6874_v7 }
0x19ba   :  { %5446 = vmatprep.subr.mxu0 %v5977_v0 }
0x19bb   :  { %5447 = vmatpush3.msra.mxu0 %v6876_v8 }
0x19bc   :  { %5448 = vmatprep.subr.mxu0 %v5977_v0 }
0x19bd   :  { %5449 = vmatpush3.msra.mxu0 %v6880_v35 }
0x19be   :  { %5450 = vmatprep.subr.mxu0 %v5977_v0 }
0x19bf   :  { %v3237_v49 = vpop.permute.xlu1 %3236  ;;  %5451 = vmatpush3.msra.mxu0 %v6884_v36 }
0x19c0   :  { %5442 = vmatmul.mubr.msk.f32.vlgmr.msra.gmra.mxu1 %vm161_vm1, %v3237_v49  ;;  %5466 = vmatprep.subr.mxu0 %v5977_v0 }
0x19c1   :  { %5456 = vmatpush3.msra.mxu1 %v6732_v28  ;;  %5463 = vmatprep.mubr.msk.f32.mxu1 %vm5978_vm0, %v5977_v0 }
0x19c2   :  { %5457 = vmatprep.subr.mxu1 %v5977_v0 }
0x19c3   :  { %5458 = vmatpush3.msra.mxu1 %v6735_v32 }
0x19c4   :  { %5459 = vmatprep.subr.mxu1 %v5977_v0 }
0x19c5   :  { %5460 = vmatpush3.msra.mxu1 %v6741_v14 }
0x19c6   :  { %5461 = vmatprep.subr.mxu1 %v5977_v0 }
0x19c7   :  { %5462 = vmatpush3.msra.mxu1 %v6745_v44 }
0x19c8   :  { %5464 = vmatmul.mubr.msk.f32.vlgmr.msra.gmra.mxu1 %vm161_vm1, %v3237_v49  ;;  %5477 = vmatprep.subr.mxu1 %v5977_v0 }
0x19c9   :  { %5478 = vmatpush3.msra.mxu1 %v6796_v16  ;;  %5485 = vmatprep.mubr.msk.f32.mxu1 %vm5978_vm0, %v5977_v0 }
0x19ca   :  { %5479 = vmatprep.subr.mxu1 %v5977_v0 }
0x19cb   :  { %5480 = vmatpush3.msra.mxu1 %v6798_v19 }
0x19cc   :  { %5481 = vmatprep.subr.mxu1 %v5977_v0 }
0x19cd   :  { %5482 = vmatpush3.msra.mxu1 %v6804_v21 }
0x19ce   :  { %5483 = vmatprep.subr.mxu1 %v5977_v0 }
0x19cf   :  { %5484 = vmatpush3.msra.mxu1 %v6810_v20 }
0x19d0   :  { %5499 = vmatprep.subr.mxu1 %v5977_v0 }
0x1a78   :  { %v3231_v52 = vpop.f32.mrf.mxu0 }
0x1a7a   :  { %v5432_v46 = vpop.f32.mrf.mxu0 }
0x1a80   :  { %v3306_v33 = vpop.f32.mrf.mxu1 }
0x1a81   :  { %v3307_v6 = vadd.f32 %v3306_v33, %v3231_v52 }
0x1a82   :  { %v5443_v58 = vpop.f32.mrf.mxu1 }
0x1a83   :  { %v3316_v43 = vadd.f32 %v6860_v29, %v3307_v6 }
0x1a85   :  { %v3317_v54 = vmul.f32 %v3316_v43, %v6142_v18 }
0x1a87   :  { %v4764_v9 = vmul.f32 -1.442695, %v3317_v54 }
0x1a88   :  { %v6864_v56 = vpop.f32.mrf.mxu1 }
0x1a89   :  { %5738 = vpow2.f32 %v4764_v9 }
0x1a8a   :  { %v5465_v34 = vpop.f32.mrf.mxu1 }
0x1a96   :  { %v5739_v10 = vpop.eup %5738 }
0x1a97   :  { %v3321_v51 = vadd.f32 1.0, %v5739_v10 }
0x1a99   :  { %5740 = vrcp.f32 %v3321_v51 }
0x1aa6   :  { %v5741_v59 = vpop.eup %5740 }
0x1aa7   :  { %v3324_v60 = vmul.f32 %v5741_v59, %v6142_v18 }
0x1aa9   :  { %v3325_v1 = vsub.f32 %v3324_v60, %v6149_v27 }
0x1aab   :  { %3328 = vrot.lane.b32.xlu0 %v3325_v1, %s5980_s20  ;;  %v3326_v3 = vmul.f32 %v3325_v1, %v6789_v11 }
0x1b1d   :  { %v3329_v53 = vpop.permute.xlu0 %3328 }
0x1b1e   :  { %v3331_v2 = vmul.f32 %v3329_v53, %v3325_v1 }
0x1b20   :  { %3333 = vrot.lane.b32.xlu1 %v3331_v2, %s5981_s21 }
0x1b92   :  { %v3334_v4 = vpop.permute.xlu1 %3333 }
0x1b93   :  { %v6871_v5 = vadd.f32 %v3334_v4, %v3326_v3 }
0x1b95   :  { %5742 = vtanh.f32 %v6871_v5 }
0x1ba2   :  { %v5743_v37 = vpop.eup %5742 }
0x1ba3   :  { %3339 = vrot.lane.b32.xlu0 %v5743_v37, %s5980_s20 }
0x1c15   :  { %v3340_v38 = vpop.permute.xlu0 %3339 }
0x1c16   :  { %v3342_v39 = vmul.f32 %v3340_v38, %v3325_v1 }
0x1c18   :  { %3350 = vrot.lane.b32.xlu1 %v3342_v39, %s5981_s21 }
0x1c8a   :  { %v3351_v42 = vpop.permute.xlu1 %3350 }
0x1c8b   :  { %5453 = vmatmul.mubr.msk.f32.vlgmr.msra.gmra.mxu0 %vm161_vm1, %v3351_v42  ;;  %5486 = vmatmul.mubr.msk.f32.vlgmr.msra.gmra.mxu1 %vm161_vm1, %v3351_v42 }
0x1c8c   :  { %5467 = vmatpush3.msra.mxu0 %v6892_v40  ;;  %5474 = vmatprep.mubr.msk.f32.mxu0 %vm5978_vm0, %v5977_v0 }
0x1c8d   :  { %5468 = vmatprep.subr.mxu0 %v5977_v0  ;;  %5500 = vmatpush3.msra.mxu1 %v6874_v7 }
0x1c8e   :  { %5469 = vmatpush3.msra.mxu0 %v6896_v61  ;;  %5501 = vmatprep.subr.mxu1 %v5977_v0 }
0x1c8f   :  { %5470 = vmatprep.subr.mxu0 %v5977_v0  ;;  %5502 = vmatpush3.msra.mxu1 %v6876_v8 }
0x1c90   :  { %5471 = vmatpush3.msra.mxu0 %v6902_v41  ;;  %5503 = vmatprep.subr.mxu1 %v5977_v0 }
0x1c91   :  { %5472 = vmatprep.subr.mxu0 %v5977_v0  ;;  %5504 = vmatpush3.msra.mxu1 %v6880_v35 }
0x1c92   :  { %5473 = vmatpush3.msra.mxu0 %v6908_v62  ;;  %5505 = vmatprep.subr.mxu1 %v5977_v0 }
0x1c93   :  { %5475 = vmatmul.mubr.msk.f32.vlgmr.msra.gmra.mxu0 %vm161_vm1, %v3351_v42  ;;  %5488 = vmatprep.subr.mxu0 %v5977_v0 }
0x1c94   :  { %5489 = vmatpush3.msra.mxu0 %v6801_v50  ;;  %5496 = vmatprep.mubr.msk.f32.mxu0 %vm5978_vm0, %v5977_v0 }
0x1c95   :  { %5490 = vmatprep.subr.mxu0 %v5977_v0  ;;  %5506 = vmatpush3.msra.mxu1 %v6884_v36 }
0x1c96   :  { %5491 = vmatpush3.msra.mxu0 %v6818_v23  ;;  %5507 = vmatprep.mubr.msk.f32.mxu1 %vm5978_vm0, %v5977_v0 }
0x1c97   :  { %5492 = vmatprep.subr.mxu0 %v5977_v0  ;;  %5521 = vmatprep.subr.mxu1 %v5977_v0 }
0x1c98   :  { %5493 = vmatpush3.msra.mxu0 %v6820_v24 }
0x1c99   :  { %5494 = vmatprep.subr.mxu0 %v5977_v0 }
0x1c9a   :  { %5495 = vmatpush3.msra.mxu0 %v6824_v25 }
0x1c9b   :  { %5510 = vmatprep.subr.mxu0 %v5977_v0 }
0x1d4b   :  { %v6936_v11 = vpop.f32.mrf.mxu0  ;;  %v3663_v12 = vpop.f32.mrf.mxu1 }
0x1d4d   :  { %v5454_v13 = vpop.f32.mrf.mxu0  ;;  %v5487_v17 = vpop.f32.mrf.mxu1 }
0x1d53   :  { %v3560_v30 = vpop.f32.mrf.mxu0 }
0x1d54   :  { %v3561_v45 = vadd.f32 %v3560_v30, %v6864_v56 }
0x1d55   :  { %v5476_v47 = vpop.f32.mrf.mxu0 }
0x1d56   :  { %v3570_v48 = vadd.f32 %v6941_v26, %v3561_v45 }
0x1d58   :  { %v3571_v49 = vmul.f32 %v3570_v48, %v6142_v18 }
0x1d5a   :  { %v4769_v52 = vmul.f32 -1.442695, %v3571_v49 }
0x1d5c   :  { %5744 = vpow2.f32 %v4769_v52 }
0x1d69   :  { %v5745_v46 = vpop.eup %5744 }
0x1d6a   :  { %v3575_v33 = vadd.f32 1.0, %v5745_v46 }
0x1d6c   :  { %5746 = vrcp.f32 %v3575_v33 }
0x1d79   :  { %v5747_v6 = vpop.eup %5746 }
0x1d7a   :  { %v3578_v31 = vmul.f32 %v5747_v6, %v6142_v18 }
0x1d7c   :  { %v3579_v57 = vsub.f32 %v3578_v31, %v6149_v27 }
0x1d7e   :  { %3582 = vrot.lane.b32.xlu0 %v3579_v57, %s5980_s20  ;;  %v3580_v43 = vmul.f32 %v3579_v57, %v6793_v15 }
0x1df0   :  { %v3583_v55 = vpop.permute.xlu0 %3582 }
0x1df1   :  { %v3585_v58 = vmul.f32 %v3583_v55, %v3579_v57 }
0x1df3   :  { %3587 = vrot.lane.b32.xlu1 %v3585_v58, %s5981_s21 }
0x1e65   :  { %v3588_v54 = vpop.permute.xlu1 %3587 }
0x1e66   :  { %v6951_v9 = vadd.f32 %v3588_v54, %v3580_v43 }
0x1e68   :  { %5748 = vtanh.f32 %v6951_v9 }
0x1e75   :  { %v5749_v56 = vpop.eup %5748 }
0x1e76   :  { %3593 = vrot.lane.b32.xlu0 %v5749_v56, %s5980_s20 }
0x1ee8   :  { %v3594_v34 = vpop.permute.xlu0 %3593 }
0x1ee9   :  { %v3596_v10 = vmul.f32 %v3594_v34, %v3579_v57 }
0x1eeb   :  { %3668 = vrot.lane.b32.xlu1 %v3596_v10, %s5981_s21 }
0x1f5d   :  { %v3669_v51 = vpop.permute.xlu1 %3668 }
0x1f5e   :  { %5497 = vmatmul.mubr.msk.f32.vlgmr.msra.gmra.mxu0 %vm161_vm1, %v3669_v51 }
0x1f5f   :  { %5511 = vmatpush3.msra.mxu0 %v6732_v28  ;;  %5518 = vmatprep.mubr.msk.f32.mxu0 %vm5978_vm0, %v5977_v0 }
0x1f60   :  { %5512 = vmatprep.subr.mxu0 %v5977_v0 }
0x1f61   :  { %5513 = vmatpush3.msra.mxu0 %v6735_v32 }
0x1f62   :  { %5514 = vmatprep.subr.mxu0 %v5977_v0 }
0x1f63   :  { %5515 = vmatpush3.msra.mxu0 %v6741_v14 }
0x1f64   :  { %5516 = vmatprep.subr.mxu0 %v5977_v0 }
0x1f65   :  { %5517 = vmatpush3.msra.mxu0 %v6745_v44 }
0x1f66   :  { %5519 = vmatmul.mubr.msk.f32.vlgmr.msra.gmra.mxu0 %vm161_vm1, %v3669_v51  ;;  %5532 = vmatprep.subr.mxu0 %v5977_v0 }
0x1f67   :  { %5533 = vmatpush3.msra.mxu0 %v6796_v16  ;;  %5540 = vmatprep.mubr.msk.f32.mxu0 %vm5978_vm0, %v5977_v0 }
0x1f68   :  { %5534 = vmatprep.subr.mxu0 %v5977_v0 }
0x1f69   :  { %5535 = vmatpush3.msra.mxu0 %v6798_v19 }
0x1f6a   :  { %5536 = vmatprep.subr.mxu0 %v5977_v0 }
0x1f6b   :  { %5537 = vmatpush3.msra.mxu0 %v6804_v21 }
0x1f6c   :  { %5538 = vmatprep.subr.mxu0 %v5977_v0 }
0x1f6d   :  { %5539 = vmatpush3.msra.mxu0 %v6810_v20 }
0x1f6e   :  { %5554 = vmatprep.subr.mxu0 %v5977_v0 }
0x201e   :  { %v3738_v15 = vpop.f32.mrf.mxu0 }
0x201f   :  { %v3739_v59 = vadd.f32 %v3738_v15, %v3663_v12 }
0x2020   :  { %v5498_v60 = vpop.f32.mrf.mxu0 }
0x2021   :  { %v3742_v1 = vadd.f32 %v6860_v29, %v3739_v59 }
0x2023   :  { %v3743_v53 = vmul.f32 %v3742_v1, %v6142_v18 }
0x2025   :  { %v4772_v2 = vmul.f32 -1.442695, %v3743_v53 }
0x2026   :  { %v3910_v3 = vpop.f32.mrf.mxu0 }
0x2027   :  { %5750 = vpow2.f32 %v4772_v2 }
0x2028   :  { %v5520_v4 = vpop.f32.mrf.mxu0 }
0x2034   :  { %v5751_v37 = vpop.eup %5750 }
0x2035   :  { %v3747_v38 = vadd.f32 1.0, %v5751_v37 }
0x2037   :  { %5752 = vrcp.f32 %v3747_v38 }
0x2044   :  { %v5753_v39 = vpop.eup %5752 }
0x2045   :  { %v3750_v42 = vmul.f32 %v5753_v39, %v6142_v18 }
0x2047   :  { %v3751_v63 = vsub.f32 %v3750_v42, %v6149_v27 }
0x2049   :  { %3754 = vrot.lane.b32.xlu0 %v3751_v63, %s5980_s20  ;;  %v3752_v17 = vmul.f32 %v3751_v63, %v6871_v5 }
0x20bb   :  { %v3755_v12 = vpop.permute.xlu0 %3754 }
0x20bc   :  { %v3757_v13 = vmul.f32 %v3755_v12, %v3751_v63 }
0x20be   :  { %3759 = vrot.lane.b32.xlu1 %v3757_v13, %s5981_s21 }
0x2130   :  { %v3760_v22 = vpop.permute.xlu1 %3759 }
0x2131   :  { %v6985_v30 = vadd.f32 %v3760_v22, %v3752_v17 }
0x2133   :  { %5754 = vtanh.f32 %v6985_v30 }
0x2140   :  { %v5755_v45 = vpop.eup %5754 }
0x2141   :  { %3765 = vrot.lane.b32.xlu0 %v5755_v45, %s5980_s20 }
0x21b3   :  { %v3766_v47 = vpop.permute.xlu0 %3765 }
0x21b4   :  { %v3768_v48 = vmul.f32 %v3766_v47, %v3751_v63 }
0x21b6   :  { %3770 = vrot.lane.b32.xlu1 %v3768_v48, %s5981_s21 }
0x2228   :  { %v3771_v49 = vpop.permute.xlu1 %3770 }
0x2229   :  { %5508 = vmatmul.mubr.msk.f32.vlgmr.msra.gmra.mxu1 %vm161_vm1, %v3771_v49  ;;  %5541 = vmatmul.mubr.msk.f32.vlgmr.msra.gmra.mxu0 %vm161_vm1, %v3771_v49 }
0x222a   :  { %5522 = vmatpush3.msra.mxu1 %v6892_v40  ;;  %5529 = vmatprep.mubr.msk.f32.mxu1 %vm5978_vm0, %v5977_v0 }
0x222b   :  { %5523 = vmatprep.subr.mxu1 %v5977_v0  ;;  %5555 = vmatpush3.msra.mxu0 %v6874_v7 }
0x222c   :  { %5524 = vmatpush3.msra.mxu1 %v6896_v61  ;;  %5556 = vmatprep.subr.mxu0 %v5977_v0 }
0x222d   :  { %5525 = vmatprep.subr.mxu1 %v5977_v0  ;;  %5557 = vmatpush3.msra.mxu0 %v6876_v8 }
0x222e   :  { %5526 = vmatpush3.msra.mxu1 %v6902_v41  ;;  %5558 = vmatprep.subr.mxu0 %v5977_v0 }
0x222f   :  { %5527 = vmatprep.subr.mxu1 %v5977_v0  ;;  %5559 = vmatpush3.msra.mxu0 %v6880_v35 }
0x2230   :  { %5528 = vmatpush3.msra.mxu1 %v6908_v62  ;;  %5560 = vmatprep.subr.mxu0 %v5977_v0 }
0x2231   :  { %5530 = vmatmul.mubr.msk.f32.vlgmr.msra.gmra.mxu1 %vm161_vm1, %v3771_v49  ;;  %5543 = vmatprep.subr.mxu1 %v5977_v0 }
0x2232   :  { %5544 = vmatpush3.msra.mxu1 %v6801_v50  ;;  %5551 = vmatprep.mubr.msk.f32.mxu1 %vm5978_vm0, %v5977_v0 }
0x2233   :  { %5545 = vmatprep.subr.mxu1 %v5977_v0  ;;  %5561 = vmatpush3.msra.mxu0 %v6884_v36 }
0x2234   :  { %5546 = vmatpush3.msra.mxu1 %v6818_v23  ;;  %5562 = vmatprep.mubr.msk.f32.mxu0 %vm5978_vm0, %v5977_v0 }
0x2235   :  { %5547 = vmatprep.subr.mxu1 %v5977_v0  ;;  %5576 = vmatprep.subr.mxu0 %v5977_v0 }
0x2236   :  { %5548 = vmatpush3.msra.mxu1 %v6820_v24 }
0x2237   :  { %5549 = vmatprep.subr.mxu1 %v5977_v0 }
0x2238   :  { %5550 = vmatpush3.msra.mxu1 %v6824_v25 }
0x2239   :  { %5565 = vmatprep.subr.mxu1 %v5977_v0 }
0x22e9   :  { %v7023_v5 = vpop.f32.mrf.mxu1  ;;  %v4077_v52 = vpop.f32.mrf.mxu0 }
0x22eb   :  { %v5509_v46 = vpop.f32.mrf.mxu1  ;;  %v5542_v33 = vpop.f32.mrf.mxu0 }
0x22f1   :  { %v3980_v6 = vpop.f32.mrf.mxu1 }
0x22f2   :  { %v3981_v31 = vadd.f32 %v3980_v6, %v3910_v3 }
0x22f3   :  { %v5531_v57 = vpop.f32.mrf.mxu1 }
0x22f4   :  { %v3984_v55 = vadd.f32 %v3981_v31, %v6941_v26 }
0x22f6   :  { %v3985_v58 = vmul.f32 %v3984_v55, %v6142_v18 }
0x22f8   :  { %v4776_v43 = vmul.f32 -1.442695, %v3985_v58 }
0x22fa   :  { %5756 = vpow2.f32 %v4776_v43 }
0x2307   :  { %v5757_v54 = vpop.eup %5756 }
0x2308   :  { %v3989_v56 = vadd.f32 1.0, %v5757_v54 }
0x230a   :  { %5758 = vrcp.f32 %v3989_v56 }
0x2317   :  { %v5759_v34 = vpop.eup %5758 }
0x2318   :  { %v3992_v10 = vmul.f32 %v5759_v34, %v6142_v18 }
0x231a   :  { %v3993_v51 = vsub.f32 %v3992_v10, %v6149_v27 }
0x231c   :  { %3996 = vrot.lane.b32.xlu0 %v3993_v51, %s5980_s20  ;;  %v3994_v60 = vmul.f32 %v3993_v51, %v6951_v9 }
0x238e   :  { %v3997_v15 = vpop.permute.xlu0 %3996 }
0x238f   :  { %v3999_v59 = vmul.f32 %v3997_v15, %v3993_v51 }
0x2391   :  { %4001 = vrot.lane.b32.xlu1 %v3999_v59, %s5981_s21 }
0x2403   :  { %v4002_v1 = vpop.permute.xlu1 %4001 }
0x2404   :  { %v7032_v53 = vadd.f32 %v4002_v1, %v3994_v60 }
0x2406   :  { %5760 = vtanh.f32 %v7032_v53 }
0x2413   :  { %v5761_v2 = vpop.eup %5760 }
0x2414   :  { %4007 = vrot.lane.b32.xlu0 %v5761_v2, %s5980_s20 }
0x2486   :  { %v4008_v3 = vpop.permute.xlu0 %4007 }
0x2487   :  { %v4010_v4 = vmul.f32 %v4008_v3, %v3993_v51 }
0x2489   :  { %4082 = vrot.lane.b32.xlu1 %v4010_v4, %s5981_s21 }
0x24fb   :  { %v4083_v37 = vpop.permute.xlu1 %4082 }
0x24fc   :  { %5552 = vmatmul.mubr.msk.f32.vlgmr.msra.gmra.mxu1 %vm161_vm1, %v4083_v37 }
0x24fd   :  { %5566 = vmatpush3.msra.mxu1 %v6732_v28  ;;  %5573 = vmatprep.mubr.msk.f32.mxu1 %vm5978_vm0, %v5977_v0 }
0x24fe   :  { %5567 = vmatprep.subr.mxu1 %v5977_v0 }
0x24ff   :  { %5568 = vmatpush3.msra.mxu1 %v6735_v32 }
0x2500   :  { %5569 = vmatprep.subr.mxu1 %v5977_v0 }
0x2501   :  { %5570 = vmatpush3.msra.mxu1 %v6741_v14 }
0x2502   :  { %5571 = vmatprep.subr.mxu1 %v5977_v0 }
0x2503   :  { %5572 = vmatpush3.msra.mxu1 %v6745_v44 }
0x2504   :  { %5574 = vmatmul.mubr.msk.f32.vlgmr.msra.gmra.mxu1 %vm161_vm1, %v4083_v37  ;;  %5587 = vmatprep.subr.mxu1 %v5977_v0 }
0x2505   :  { %5588 = vmatpush3.msra.mxu1 %v6796_v16  ;;  %5595 = vmatprep.mubr.msk.f32.mxu1 %vm5978_vm0, %v5977_v0 }
0x2506   :  { %5589 = vmatprep.subr.mxu1 %v5977_v0 }
0x2507   :  { %5590 = vmatpush3.msra.mxu1 %v6798_v19 }
0x2508   :  { %5591 = vmatprep.subr.mxu1 %v5977_v0 }
0x2509   :  { %5592 = vmatpush3.msra.mxu1 %v6804_v21 }
0x250a   :  { %5593 = vmatprep.subr.mxu1 %v5977_v0 }
0x250b   :  { %5594 = vmatpush3.msra.mxu1 %v6810_v20 }
0x250c   :  { %5609 = vmatprep.subr.mxu1 %v5977_v0 }
0x25bc   :  { %v4152_v28 = vpop.f32.mrf.mxu1 }
0x25bd   :  { %v4153_v32 = vadd.f32 %v4152_v28, %v4077_v52 }
0x25be   :  { %v5553_v14 = vpop.f32.mrf.mxu1 }
0x25bf   :  { %v4156_v44 = vadd.f32 %v6860_v29, %v4153_v32 }
0x25c1   :  { %v4157_v16 = vmul.f32 %v4156_v44, %v6142_v18 }
0x25c3   :  { %v4779_v9 = vmul.f32 -1.442695, %v4157_v16 }
0x25c4   :  { %v4324_v38 = vpop.f32.mrf.mxu1 }
0x25c5   :  { %5762 = vpow2.f32 %v4779_v9 }
0x25c6   :  { %v5575_v19 = vpop.f32.mrf.mxu1 }
0x25d2   :  { %v5763_v39 = vpop.eup %5762 }
0x25d3   :  { %v4161_v42 = vadd.f32 1.0, %v5763_v39 }
0x25d5   :  { %5764 = vrcp.f32 %v4161_v42 }
0x25e2   :  { %v5765_v21 = vpop.eup %5764 }
0x25e3   :  { %v4164_v63 = vmul.f32 %v5765_v21, %v6142_v18 }
0x25e5   :  { %v4165_v20 = vsub.f32 %v4164_v63, %v6149_v27 }
0x25e7   :  { %4168 = vrot.lane.b32.xlu0 %v4165_v20, %s5980_s20  ;;  %v4166_v17 = vmul.f32 %v4165_v20, %v6985_v30 }
0x2659   :  { %v4169_v12 = vpop.permute.xlu0 %4168 }
0x265a   :  { %v4171_v13 = vmul.f32 %v4169_v12, %v4165_v20 }
0x265c   :  { %4173 = vrot.lane.b32.xlu1 %v4171_v13, %s5981_s21 }
0x26ce   :  { %v4174_v22 = vpop.permute.xlu1 %4173 }
0x26cf   :  { %v7066_v45 = vadd.f32 %v4174_v22, %v4166_v17 }
0x26d1   :  { %5766 = vtanh.f32 %v7066_v45 }
0x26de   :  { %v5767_v47 = vpop.eup %5766 }
0x26df   :  { %4179 = vrot.lane.b32.xlu0 %v5767_v47, %s5980_s20 }
0x2751   :  { %v4180_v48 = vpop.permute.xlu0 %4179 }
0x2752   :  { %v4182_v49 = vmul.f32 %v4180_v48, %v4165_v20 }
0x2754   :  { %4184 = vrot.lane.b32.xlu1 %v4182_v49, %s5981_s21 }
0x27c6   :  { %v4185_v52 = vpop.permute.xlu1 %4184 }
0x27c7   :  { %5563 = vmatmul.mubr.msk.f32.vlgmr.msra.gmra.mxu0 %vm161_vm1, %v4185_v52  ;;  %5596 = vmatmul.mubr.msk.f32.vlgmr.msra.gmra.mxu1 %vm161_vm1, %v4185_v52 }
0x27c8   :  { %5577 = vmatpush3.msra.mxu0 %v6892_v40  ;;  %5584 = vmatprep.mubr.msk.f32.mxu0 %vm5978_vm0, %v5977_v0 }
0x27c9   :  { %5578 = vmatprep.subr.mxu0 %v5977_v0  ;;  %5610 = vmatpush3.msra.mxu1 %v6874_v7 }
0x27ca   :  { %5579 = vmatpush3.msra.mxu0 %v6896_v61  ;;  %5611 = vmatprep.subr.mxu1 %v5977_v0 }
0x27cb   :  { %5580 = vmatprep.subr.mxu0 %v5977_v0  ;;  %5612 = vmatpush3.msra.mxu1 %v6876_v8 }
0x27cc   :  { %5581 = vmatpush3.msra.mxu0 %v6902_v41  ;;  %5613 = vmatprep.subr.mxu1 %v5977_v0 }
0x27cd   :  { %5582 = vmatprep.subr.mxu0 %v5977_v0  ;;  %5614 = vmatpush3.msra.mxu1 %v6880_v35 }
0x27ce   :  { %5583 = vmatpush3.msra.mxu0 %v6908_v62  ;;  %5615 = vmatprep.subr.mxu1 %v5977_v0 }
0x27cf   :  { %5585 = vmatmul.mubr.msk.f32.vlgmr.msra.gmra.mxu0 %vm161_vm1, %v4185_v52  ;;  %5598 = vmatprep.subr.mxu0 %v5977_v0 }
0x27d0   :  { %5599 = vmatpush3.msra.mxu0 %v6801_v50  ;;  %5606 = vmatprep.mubr.msk.f32.mxu0 %vm5978_vm0, %v5977_v0 }
0x27d1   :  { %5600 = vmatprep.subr.mxu0 %v5977_v0  ;;  %5616 = vmatpush3.msra.mxu1 %v6884_v36 }
0x27d2   :  { %5601 = vmatpush3.msra.mxu0 %v6818_v23  ;;  %5617 = vmatprep.mubr.msk.f32.mxu1 %vm5978_vm0, %v5977_v0 }
0x27d3   :  { %5602 = vmatprep.subr.mxu0 %v5977_v0 }
0x27d4   :  { %5603 = vmatpush3.msra.mxu0 %v6820_v24 }
0x27d5   :  { %5604 = vmatprep.subr.mxu0 %v5977_v0 }
0x27d6   :  { %5605 = vmatpush3.msra.mxu0 %v6824_v25 }
0x2887   :  { %v4254_v50 = vpop.f32.mrf.mxu0  ;;  %v4491_v7 = vpop.f32.mrf.mxu1 }
0x2889   :  { %v5564_v8 = vpop.f32.mrf.mxu0  ;;  %v5597_v35 = vpop.f32.mrf.mxu1 }
0x288f   :  { %v4394_v40 = vpop.f32.mrf.mxu0 }
0x2890   :  { %v4395_v61 = vadd.f32 %v4394_v40, %v4324_v38 }
0x2891   :  { %v5586_v36 = vpop.f32.mrf.mxu0 }
0x2892   :  { %v4398_v23 = vadd.f32 %v4395_v61, %v6941_v26 }
0x2894   :  { %v4399_v41 = vmul.f32 %v4398_v23, %v6142_v18 }
0x2896   :  { %v4783_v62 = vmul.f32 -1.442695, %v4399_v41 }
0x2898   :  { %5768 = vpow2.f32 %v4783_v62 }
0x28a5   :  { %v5769_v30 = vpop.eup %5768 }
0x28a6   :  { %v4403_v46 = vadd.f32 1.0, %v5769_v30 }
0x28a8   :  { %5770 = vrcp.f32 %v4403_v46 }
0x28b5   :  { %v5771_v24 = vpop.eup %5770 }
0x28b6   :  { %v4406_v0 = vmul.f32 %v5771_v24, %v6142_v18 }
0x28b8   :  { %v4407_v25 = vsub.f32 %v4406_v0, %v6149_v27 }
0x28ba   :  { %4410 = vrot.lane.b32.xlu0 %v4407_v25, %s5980_s20  ;;  %v4408_v26 = vmul.f32 %v4407_v25, %v7032_v53 }
0x292c   :  { %v4411_v33 = vpop.permute.xlu0 %4410 }
0x292d   :  { %v4413_v6 = vmul.f32 %v4411_v33, %v4407_v25 }
0x292f   :  { %4415 = vrot.lane.b32.xlu1 %v4413_v6, %s5981_s21 }
0x29a1   :  { %v4416_v31 = vpop.permute.xlu1 %4415 }
0x29a2   :  { %v4418_v57 = vadd.f32 %v4416_v31, %v4408_v26 }
0x29a4   :  { %5772 = vtanh.f32 %v4418_v57 }
0x29b1   :  { %v5773_v55 = vpop.eup %5772 }
0x29b2   :  { %4421 = vrot.lane.b32.xlu0 %v5773_v55, %s5980_s20 }
0x2a24   :  { %v4422_v58 = vpop.permute.xlu0 %4421 }
0x2a25   :  { %v4424_v43 = vmul.f32 %v4422_v58, %v4407_v25 }
0x2a27   :  { %4496 = vrot.lane.b32.xlu1 %v4424_v43, %s5981_s21 }
0x2a99   :  { %v4497_v54 = vpop.permute.xlu1 %4496 }
0x2a9a   :  { %5607 = vmatmul.mubr.msk.f32.vlgmr.msra.gmra.mxu0 %vm161_vm1, %v4497_v54 }
0x2b5a   :  { %v4566_v56 = vpop.f32.mrf.mxu0 }
0x2b5b   :  { %v4567_v34 = vadd.f32 %v4566_v56, %v4491_v7 }
0x2b5c   :  { %v5608_v10 = vpop.f32.mrf.mxu0 }
0x2b5d   :  { %v4570_v51 = vadd.f32 %v6860_v29, %v4567_v34 }
0x2b5f   :  { %v4571_v15 = vmul.f32 %v4570_v51, %v6142_v18 }
0x2b61   :  { %v4786_v59 = vmul.f32 -1.442695, %v4571_v15 }
0x2b63   :  { %5774 = vpow2.f32 %v4786_v59 }
0x2b70   :  { %v5775_v60 = vpop.eup %5774 }
0x2b71   :  { %v4575_v1 = vadd.f32 1.0, %v5775_v60 }
0x2b73   :  { %5776 = vrcp.f32 %v4575_v1 }
0x2b80   :  { %v5777_v53 = vpop.eup %5776 }
0x2b81   :  { %v4578_v2 = vmul.f32 %v5777_v53, %v6142_v18  ;;  %v4765_v18 = vld [vmem:[%s7142_s8] ss:$0 sm:$0xff]  ;;  %s5983_s8 = smov [#allocation14]  }
0x2b82   :  { %v4255_v9 = vadd.f32 %v4765_v18, %v4254_v50  ;;  %s4696_s24 = sshll.u32 %s5983_s8, 4  ;;  %s4697_s24 = int_to_ptr.vmem [resolvable:$true] %s4696_s24 }
0x2b83   :  { %v4579_v3 = vsub.f32 %v4578_v2, %v6149_v27  ;;  %v3841_v27 = vadd.f32 %v4765_v18, %v7023_v5  ;;  %v3421_v5 = vadd.f32 %v4765_v18, %v6936_v11  ;;  %s5938_s25 = scalar_lea.vmem %s4697_s24, 128  ;;  %p5943_p8 = scmp.lt.s32.totalorder %s4697_s24, %s4697_s24 }
0x2b84   :  { %p5939_p7 = scmp.ne.s32.totalorder %s4697_s24, %s5938_s25  ;;  %p5944_p9 = scmp.lt.s32.totalorder %s5938_s25, %s5938_s25 }
0x2b85   :  { %4582 = vrot.lane.b32.xlu0 %v4579_v3, %s5980_s20  ;;  %v4580_v29 = vmul.f32 %v4579_v3, %v7066_v45 }
0x2b86   :  { %p5945_p10 = por %p5944_p9, %p5943_p8 }
0x2b88   :  { %p5946_p11 = pnand %p5945_p10, %p5939_p7 }
0x2bf7   :  { %v4583_v4 = vpop.permute.xlu0 %4582 }
0x2bf8   :  { %v4585_v37 = vmul.f32 %v4583_v4, %v4579_v3 }
0x2bfa   :  { %4587 = vrot.lane.b32.xlu1 %v4585_v37, %s5981_s21 }
0x2c6c   :  { %v4588_v28 = vpop.permute.xlu1 %4587 }
0x2c6d   :  { %v4590_v32 = vadd.f32 %v4588_v28, %v4580_v29 }
0x2c6f   :  { %5778 = vtanh.f32 %v4590_v32 }
0x2c7c   :  { %v5779_v14 = vpop.eup %5778 }
0x2c7d   :  { %4593 = vrot.lane.b32.xlu0 %v5779_v14, %s5980_s20 }
0x2c81   :  { %4673 = vrot.lane.b32.xlu0 %v3841_v27, %s5981_s21 }
0x2cef   :  { %v4594_v44 = vpop.permute.xlu0 %4593 }
0x2cf0   :  { %v4596_v16 = vmul.f32 %v4594_v44, %v4579_v3 }
0x2cf2   :  { %4598 = vrot.lane.b32.xlu1 %v4596_v16, %s5981_s21 }
0x2cf3   :  { %v4674_v21 = vpop.permute.xlu0 %4673 }
0x2cf4   :  { %v4684_v20 = vsel %vm161_vm1, %v3421_v5, %v4674_v21 }
0x2cf6   :  { %4677 = vrot.lane.b32.xlu1 %v4255_v9, %s5980_s20 }
0x2d64   :  { %v4599_v38 = vpop.permute.xlu1 %4598 }
0x2d65   :  { %5618 = vmatmul.mubr.msk.f32.vlgmr.msra.gmra.mxu1 %vm161_vm1, %v4599_v38 }
0x2d68   :  { %v4678_v63 = vpop.permute.xlu1 %4677 }
0x2d69   :  { %v4686_v12 = vsel %vm4685_vm5, %v4684_v20, %v4678_v63 }
0x2e25   :  { %v4668_v19 = vpop.f32.mrf.mxu1 }
0x2e26   :  { %v4669_v39 = vadd.f32 %v4765_v18, %v4668_v19 }
0x2e27   :  { %v5619_v42 = vpop.f32.mrf.mxu1 }
0x2e28   :  { %4681 = vrot.lane.b32.xlu0 %v4669_v39, %s5982_s12 }
0x2e9a   :  { %v4682_v13 = vpop.permute.xlu0 %4681 }
0x2e9b   :  { %v4688_v17 = vsel %vm4687_vm6, %v4686_v12, %v4682_v13 }
0x2e9c   :  { %4689 = vst [vmem:[#allocation14] sm:$0xff] %v4688_v17 }
0x2e9d   :  { %5949 = shalt.err (!%p5946_p11)
}
0x2e9e   :  { %4699 = dma.vmem_to_hbm [thread:$0]  %s4697_s24, 128, %s7145_s11, [#allocation4]  }
0x2e9f   :  { %5966 = dma.done.wait [#allocation4], 128  }
0x2ea0   :  { %5967 = vsyncadd [#allocation4], 4294967168 }
0x2ea1   :  { %4703 = vsyncpa [#allocation3], 1 }
0x2ea2   :  { %4704 = vsyncpa [#allocation6], 1 }
0x2ea3   :  { %4705 = vsyncpa [#allocation9], 1 }
0x2ea4   :  { %4706 = vsyncpa [#allocation12], 1 }
0x2ea5   :  { %4707 = vsyncpa [#allocation4], 1 }

</bundles_post_ra>
